<compile_context>
chip_gen: v7x
topology: tpu7x:2x2x1
jax: 0.10.0
libtpu: 0.0.40
codegen_flags: <defaults>
</compile_context>

<pallas_src>
import math

import numpy as np
import jax
import jax.numpy as jnp
from jax.experimental import pallas as pl
from jax.experimental.pallas import tpu as pltpu


# ----------------------------- fused kernel ---------------------------------

def _cnn_kernel(x_ref, w1t_ref, b1t_ref, w2t_ref, b2t_ref,
                wf1_ref, bf1_ref, wf2_ref, bf2_ref, o_ref):
    f32, bf16 = jnp.float32, jnp.bfloat16
    bb = x_ref.shape[0]

    x = x_ref[...]                                                  # [bb, 36, 28]

    # ---- conv1 (5x5, C_in=1): row-im2col + Toeplitz GEMM --------------------
    # xr[b, r, i*28 + w] = x[b, r+i, w]
    xr = jnp.concatenate([x[:, i:i + 32, :] for i in range(5)], axis=-1)   # [bb,32,140]
    a1 = xr.reshape(bb * 32, 140).astype(bf16)
    h1 = jnp.dot(a1, w1t_ref[...], preferred_element_type=f32) + b1t_ref[...]
    h1 = h1.reshape(bb, 32, 576)      # [b, oh, ow*24+c]; rows >= 24 come from zero-pad

    # ---- max_pool 2x2 + relu, kept dense (downsampling folded into conv2 W) -
    h1s = jnp.concatenate([h1[:, :, 24:], h1[:, :, :24]], axis=-1)   # lane shift by one ow
    mw = jnp.maximum(h1, h1s)                                        # max over (ow, ow+1)
    m1 = jnp.maximum(jnp.maximum(mw[:, 0:31, :], mw[:, 1:32, :]), 0.0)      # [bb,31,576]
    # m1[b, 2*oh2, (2*ow2)*24 + c] == relu(maxpool(conv1))[b, oh2, ow2, c]

    # ---- conv2 (3x3 on the pooled map): dilated/strided Toeplitz GEMM -------
    a2 = jnp.concatenate([m1[:, 2 * i:2 * i + 24, :] for i in range(3)], axis=-1)  # [bb,24,1728]
    a2 = a2.reshape(bb * 24, 1728).astype(bf16)
    h2 = jnp.dot(a2, w2t_ref[...], preferred_element_type=f32) + b2t_ref[...]
    h2 = h2.reshape(bb, 24, 320)      # [b, s, ow3*32+d]; rows s = 2*oh3 (even) are valid

    # ---- max_pool 2x2 + relu -------------------------------------------------
    h2s = jnp.concatenate([h2[:, :, 32:], h2[:, :, :32]], axis=-1)
    m2w = jnp.maximum(h2, h2s)                                       # max over (ow3, ow3+1)
    m2 = jnp.maximum(jnp.maximum(m2w[:, 0:20, :], m2w[:, 2:22, :]), 0.0)    # [bb,20,320]
    # m2[b, 4*oh4, (2*ow4)*32 + d] == relu(maxpool(conv2))[b, oh4, ow4, d]

    # ---- flatten (torch NCHW order + stride-2 selection folded into wf1) ----
    flat = jnp.concatenate([m2[:, 4 * k, :] for k in range(5)], axis=-1)    # [bb,1600]

    # ---- fc1 + relu, fc2 (lane-padded to 128), log_softmax ------------------
    f1 = jnp.dot(flat.astype(bf16), wf1_ref[...], preferred_element_type=f32) + bf1_ref[...]
    f1 = jnp.maximum(f1, 0.0)
    f2 = jnp.dot(f1.astype(bf16), wf2_ref[...], preferred_element_type=f32) + bf2_ref[...]
    # padded lanes carry bias = -1e9 -> exp underflows to 0, max unaffected.
    m = jnp.max(f2, axis=-1, keepdims=True)
    s = f2 - m
    lse = jnp.log(jnp.sum(jnp.exp(s), axis=-1, keepdims=True))
    o_ref[...] = (s - lse).astype(o_ref.dtype)


# ------------------------ one-time host-side weight prep --------------------

def prepare_params(params):
    """Repack PyTorch-layout weights into the GEMM operands the fused kernel
    consumes (done once on the host; bf16 for MXU inputs, f32 biases)."""
    w1 = np.asarray(params["conv1_w"], np.float32)    # [24, 1, 5, 5]
    b1 = np.asarray(params["conv1_b"], np.float32)    # [24]
    w2 = np.asarray(params["conv2_w"], np.float32)    # [32, 24, 3, 3]
    b2 = np.asarray(params["conv2_b"], np.float32)    # [32]
    f1w = np.asarray(params["fc1_w"], np.float32)     # [256, 800]
    f1b = np.asarray(params["fc1_b"], np.float32)     # [256]
    f2w = np.asarray(params["fc2_w"], np.float32)     # [n_out, 256]
    f2b = np.asarray(params["fc2_b"], np.float32)     # [n_out]

    # conv1 row-Toeplitz: rows k = i*28 + w_in, cols = ow*24 + c
    w1t = np.zeros((5 * 28, 24 * 24), np.float32)
    for i in range(5):
        for j in range(5):
            for ow in range(24):
                w1t[i * 28 + ow + j, ow * 24:(ow + 1) * 24] = w1[:, 0, i, j]
    b1t = np.tile(b1, 24)[None, :]                    # [1, 576]

    # conv2 on the dense pooled map (dilation/stride 2 folded in):
    # rows = i2*576 + ow*24 + c, cols = ow3*32 + d, nonzero iff ow = 2*ow3 + 2*j2
    w2t = np.zeros((3 * 576, 10 * 32), np.float32)
    for i2 in range(3):
        for j2 in range(3):
            for ow3 in range(10):
                ow = 2 * ow3 + 2 * j2
                r0 = i2 * 576 + ow * 24
                w2t[r0:r0 + 24, ow3 * 32:(ow3 + 1) * 32] = w2[:, :, i2, j2].T   # [c, d]
    b2t = np.tile(b2, 10)[None, :]                    # [1, 320]

    # fc1: torch flatten order (c, h, w) and the even-ow3 selection of the dense
    # pooled map folded into the row layout; rows = oh4*320 + ow3*32 + d.
    wf1 = np.zeros((5 * 320, 256), np.float32)
    for oh4 in range(5):
        for ow4 in range(5):
            r0 = oh4 * 320 + (2 * ow4) * 32
            wf1[r0:r0 + 32, :] = f1w[:, (oh4 * 5 + ow4)::25].T      # columns d*25+oh4*5+ow4
    bf1 = f1b[None, :]                                # [1, 256]

    # fc2 lane-padded to a multiple of 128 so the last GEMM and the only HBM
    # output store are unmasked. Padded bias = -1e9 acts as -inf in log_softmax.
    n_out = f2w.shape[0]
    n_pad = ((n_out + 127) // 128) * 128
    wf2 = np.zeros((256, n_pad), np.float32)
    wf2[:, :n_out] = f2w.T
    bf2 = np.full((1, n_pad), -1e9, np.float32)
    bf2[0, :n_out] = f2b

    as_bf16 = lambda a: jnp.asarray(a, dtype=jnp.bfloat16)
    as_f32 = lambda a: jnp.asarray(a, dtype=jnp.float32)
    return {"w1t": as_bf16(w1t), "b1t": as_f32(b1t),
            "w2t": as_bf16(w2t), "b2t": as_f32(b2t),
            "wf1": as_bf16(wf1), "bf1": as_f32(bf1),
            "wf2": as_bf16(wf2), "bf2": as_f32(bf2)}


# ------------------------------- forward ------------------------------------

def cnn_forward(kparams, x_nchw, *, num_outputs=10, block_b=16):
    B, C, H, W = x_nchw.shape
    assert (C, H, W) == (1, 28, 28), "CNN expects [B, 1, 28, 28] inputs"
    n_pad = kparams["wf2"].shape[1]

    bb = min(block_b, B)
    n_tiles = -(-B // bb)
    Bp = n_tiles * bb

    x = x_nchw.reshape(B, 28, 28)
    # pad H 28 -> 36 so conv1 emits 32 (8-aligned) rows; pad batch to tile multiple.
    x = jnp.pad(x, ((0, Bp - B), (0, 8), (0, 0)))

    out = pl.pallas_call(
        _cnn_kernel,
        out_shape=jax.ShapeDtypeStruct((Bp, n_pad), jnp.float32),
        grid_spec=pltpu.PrefetchScalarGridSpec(
            num_scalar_prefetch=0,
            grid=(n_tiles,),
            in_specs=[
                pl.BlockSpec((bb, 36, 28), lambda i: (i, 0, 0)),     # x batch tile
                pl.BlockSpec((140, 576), lambda i: (0, 0)),          # conv1 Toeplitz (bf16)
                pl.BlockSpec((1, 576), lambda i: (0, 0)),
                pl.BlockSpec((1728, 320), lambda i: (0, 0)),         # conv2 Toeplitz (bf16)
                pl.BlockSpec((1, 320), lambda i: (0, 0)),
                pl.BlockSpec((1600, 256), lambda i: (0, 0)),         # fc1 (bf16, reordered)
                pl.BlockSpec((1, 256), lambda i: (0, 0)),
                pl.BlockSpec((256, n_pad), lambda i: (0, 0)),        # fc2 (bf16, pre-T, lane-padded)
                pl.BlockSpec((1, n_pad), lambda i: (0, 0)),
            ],
            out_specs=pl.BlockSpec((bb, n_pad), lambda i: (i, 0)),
        ),
        compiler_params=pltpu.CompilerParams(
            dimension_semantics=("parallel",)),
    )(x, kparams["w1t"], kparams["b1t"], kparams["w2t"], kparams["b2t"],
      kparams["wf1"], kparams["bf1"], kparams["wf2"], kparams["bf2"])
    return out[:B, :num_outputs]


# ------------------------------ reference -----------------------------------

def cnn_reference(params, x_nchw):
    """Pure-JAX reference of the PyTorch forward (weights rounded to bf16 to
    match the kernel's MXU input precision)."""
    q = lambda w: w.astype(jnp.bfloat16).astype(jnp.float32)
    dn = ("NCHW", "OIHW", "NCHW")
    y = jax.lax.conv_general_dilated(x_nchw, q(params["conv1_w"]), (1, 1), "VALID",
                                     dimension_numbers=dn)
    y = y + params["conv1_b"][None, :, None, None]
    y = jax.lax.reduce_window(y, -jnp.inf, jax.lax.max, (1, 1, 2, 2), (1, 1, 2, 2), "VALID")
    y = jnp.maximum(y, 0.0)
    y = jax.lax.conv_general_dilated(y, q(params["conv2_w"]), (1, 1), "VALID",
                                     dimension_numbers=dn)
    y = y + params["conv2_b"][None, :, None, None]
    y = jax.lax.reduce_window(y, -jnp.inf, jax.lax.max, (1, 1, 2, 2), (1, 1, 2, 2), "VALID")
    y = jnp.maximum(y, 0.0)
    y = y.reshape(y.shape[0], -1)
    y = jnp.maximum(y @ q(params["fc1_w"]).T + params["fc1_b"], 0.0)
    y = y @ q(params["fc2_w"]).T + params["fc2_b"]
    return jax.nn.log_softmax(y, axis=-1)


# ------------------------------ params & main --------------------------------

def init_params(key, num_outputs=10):
    """Deterministic synthetic params with PyTorch-default-like uniform bounds."""
    ks = jax.random.split(key, 8)

    def u(k, shape, fan_in):
        bound = 1.0 / math.sqrt(fan_in)
        return jax.random.uniform(k, shape, jnp.float32, -bound, bound)

    return {
        "conv1_w": u(ks[0], (24, 1, 5, 5), 1 * 5 * 5),
        "conv1_b": u(ks[1], (24,), 1 * 5 * 5),
        "conv2_w": u(ks[2], (32, 24, 3, 3), 24 * 3 * 3),
        "conv2_b": u(ks[3], (32,), 24 * 3 * 3),
        "fc1_w":   u(ks[4], (256, 800), 800),
        "fc1_b":   u(ks[5], (256,), 800),
        "fc2_w":   u(ks[6], (num_outputs, 256), 256),
        "fc2_b":   u(ks[7], (num_outputs,), 256),
    }


if __name__ == "__main__":
    key = jax.random.PRNGKey(0)
    pkey, xkey = jax.random.split(key)

    params = init_params(pkey, num_outputs=10)
    kparams = prepare_params(params)
    # 28x28 input is implied by fc1's 800 = 32 * 5 * 5 features.
    x = jax.random.normal(xkey, (2, 1, 28, 28), jnp.float32)

    fwd = jax.jit(cnn_forward)
    out = jax.block_until_ready(fwd(kparams, x))

    assert out.shape == (2, 10), out.shape
    assert bool(jnp.all(jnp.isfinite(out)))
    # log_softmax rows must sum (in prob space) to ~1.
    assert bool(jnp.all(jnp.abs(jnp.sum(jnp.exp(out), axis=1) - 1.0) < 1e-4))
    # match the pure-JAX reference (loose tol for bf16 MXU inputs).
    err = float(jnp.max(jnp.abs(out - cnn_reference(params, x))))
    assert err < 1.5e-1, f"mismatch vs reference: {err}"
    print("KERNEL_OK")
</pallas_src>

<mosaic_0001>
module attributes {stable_mosaic.version = 11 : i64} {
  func.func @_cnn_kernel(%arg0: i32, %arg1: memref<2x36x28xf32, #tpu.memory_space<vmem>>, %arg2: memref<140x576xbf16, #tpu.memory_space<vmem>>, %arg3: memref<1x576xf32, #tpu.memory_space<vmem>>, %arg4: memref<1728x320xbf16, #tpu.memory_space<vmem>>, %arg5: memref<1x320xf32, #tpu.memory_space<vmem>>, %arg6: memref<1600x256xbf16, #tpu.memory_space<vmem>>, %arg7: memref<1x256xf32, #tpu.memory_space<vmem>>, %arg8: memref<256x128xbf16, #tpu.memory_space<vmem>>, %arg9: memref<1x128xf32, #tpu.memory_space<vmem>>, %arg10: memref<2x128xf32, #tpu.memory_space<vmem>>) attributes {dimension_semantics = [#tpu.dimension_semantics<parallel>], iteration_bounds = array<i64: 1>, scalar_prefetch = 0 : i64, scratch_operands = 0 : i64, tpu.core_type = #tpu.core_type<tc>, window_params = [{transform_indices = @transform_0, window_bounds = array<i64: 2, 36, 28>}, {pipeline_mode = #tpu.pipeline_mode<synchronous>, transform_indices = @transform_1, window_bounds = array<i64: 140, 576>}, {pipeline_mode = #tpu.pipeline_mode<synchronous>, transform_indices = @transform_2, window_bounds = array<i64: 1, 576>}, {pipeline_mode = #tpu.pipeline_mode<synchronous>, transform_indices = @transform_3, window_bounds = array<i64: 1728, 320>}, {pipeline_mode = #tpu.pipeline_mode<synchronous>, transform_indices = @transform_4, window_bounds = array<i64: 1, 320>}, {pipeline_mode = #tpu.pipeline_mode<synchronous>, transform_indices = @transform_5, window_bounds = array<i64: 1600, 256>}, {pipeline_mode = #tpu.pipeline_mode<synchronous>, transform_indices = @transform_6, window_bounds = array<i64: 1, 256>}, {pipeline_mode = #tpu.pipeline_mode<synchronous>, transform_indices = @transform_7, window_bounds = array<i64: 256, 128>}, {pipeline_mode = #tpu.pipeline_mode<synchronous>, transform_indices = @transform_8, window_bounds = array<i64: 1, 128>}, {transform_indices = @transform_9, window_bounds = array<i64: 2, 128>}]} {
    %c0 = arith.constant 0 : index
    %c0_0 = arith.constant 0 : index
    %c0_1 = arith.constant 0 : index
    %0 = vector.load %arg1[%c0, %c0_0, %c0_1] : memref<2x36x28xf32, #tpu.memory_space<vmem>>, vector<2x36x28xf32>
    %1 = vector.extract_strided_slice %0 {offsets = [0, 0, 0], sizes = [2, 32, 28], strides = [1, 1, 1]} : vector<2x36x28xf32> to vector<2x32x28xf32>
    %2 = vector.extract_strided_slice %0 {offsets = [0, 1, 0], sizes = [2, 32, 28], strides = [1, 1, 1]} : vector<2x36x28xf32> to vector<2x32x28xf32>
    %3 = vector.extract_strided_slice %0 {offsets = [0, 2, 0], sizes = [2, 32, 28], strides = [1, 1, 1]} : vector<2x36x28xf32> to vector<2x32x28xf32>
    %4 = vector.extract_strided_slice %0 {offsets = [0, 3, 0], sizes = [2, 32, 28], strides = [1, 1, 1]} : vector<2x36x28xf32> to vector<2x32x28xf32>
    %5 = vector.extract_strided_slice %0 {offsets = [0, 4, 0], sizes = [2, 32, 28], strides = [1, 1, 1]} : vector<2x36x28xf32> to vector<2x32x28xf32>
    %6 = tpu.concatenate %1, %2, %3, %4, %5 in 2 : vector<2x32x28xf32>, vector<2x32x28xf32>, vector<2x32x28xf32>, vector<2x32x28xf32>, vector<2x32x28xf32> -> vector<2x32x140xf32>
    %7 = vector.shape_cast %6 : vector<2x32x140xf32> to vector<64x140xf32>
    %8 = arith.truncf %7 : vector<64x140xf32> to vector<64x140xbf16>
    %c0_2 = arith.constant 0 : index
    %c0_3 = arith.constant 0 : index
    %9 = vector.load %arg2[%c0_2, %c0_3] : memref<140x576xbf16, #tpu.memory_space<vmem>>, vector<140x576xbf16>
    %cst = arith.constant dense<0.000000e+00> : vector<64x576xf32>
    %10 = tpu.matmul %8, %9, %cst {dimension_numbers = #tpu.dot_dimension_numbers<[1], [0], [0], [1], [0, 0, 1, 1], [], []>} : vector<64x140xbf16>, vector<140x576xbf16>, vector<64x576xf32> -> vector<64x576xf32>
    %c0_4 = arith.constant 0 : index
    %c0_5 = arith.constant 0 : index
    %11 = vector.load %arg3[%c0_4, %c0_5] : memref<1x576xf32, #tpu.memory_space<vmem>>, vector<1x576xf32>
    %12 = vector.broadcast %11 : vector<1x576xf32> to vector<64x576xf32>
    %13 = arith.addf %10, %12 : vector<64x576xf32>
    %14 = vector.shape_cast %13 : vector<64x576xf32> to vector<2x32x576xf32>
    %15 = vector.extract_strided_slice %14 {offsets = [0, 0, 24], sizes = [2, 32, 552], strides = [1, 1, 1]} : vector<2x32x576xf32> to vector<2x32x552xf32>
    %16 = vector.extract_strided_slice %14 {offsets = [0, 0, 0], sizes = [2, 32, 24], strides = [1, 1, 1]} : vector<2x32x576xf32> to vector<2x32x24xf32>
    %17 = tpu.concatenate %15, %16 in 2 : vector<2x32x552xf32>, vector<2x32x24xf32> -> vector<2x32x576xf32>
    %18 = arith.maximumf %14, %17 : vector<2x32x576xf32>
    %19 = vector.extract_strided_slice %18 {offsets = [0, 0, 0], sizes = [2, 31, 576], strides = [1, 1, 1]} : vector<2x32x576xf32> to vector<2x31x576xf32>
    %20 = vector.extract_strided_slice %18 {offsets = [0, 1, 0], sizes = [2, 31, 576], strides = [1, 1, 1]} : vector<2x32x576xf32> to vector<2x31x576xf32>
    %21 = arith.maximumf %19, %20 : vector<2x31x576xf32>
    %cst_6 = arith.constant 0.000000e+00 : f32
    %22 = vector.broadcast %cst_6 : f32 to vector<2x31x576xf32>
    %23 = arith.maximumf %21, %22 : vector<2x31x576xf32>
    %24 = vector.extract_strided_slice %23 {offsets = [0, 0, 0], sizes = [2, 24, 576], strides = [1, 1, 1]} : vector<2x31x576xf32> to vector<2x24x576xf32>
    %25 = vector.extract_strided_slice %23 {offsets = [0, 2, 0], sizes = [2, 24, 576], strides = [1, 1, 1]} : vector<2x31x576xf32> to vector<2x24x576xf32>
    %26 = vector.extract_strided_slice %23 {offsets = [0, 4, 0], sizes = [2, 24, 576], strides = [1, 1, 1]} : vector<2x31x576xf32> to vector<2x24x576xf32>
    %27 = tpu.concatenate %24, %25, %26 in 2 : vector<2x24x576xf32>, vector<2x24x576xf32>, vector<2x24x576xf32> -> vector<2x24x1728xf32>
    %28 = vector.shape_cast %27 : vector<2x24x1728xf32> to vector<48x1728xf32>
    %29 = arith.truncf %28 : vector<48x1728xf32> to vector<48x1728xbf16>
    %c0_7 = arith.constant 0 : index
    %c0_8 = arith.constant 0 : index
    %30 = vector.load %arg4[%c0_7, %c0_8] : memref<1728x320xbf16, #tpu.memory_space<vmem>>, vector<1728x320xbf16>
    %cst_9 = arith.constant dense<0.000000e+00> : vector<48x320xf32>
    %31 = tpu.matmul %29, %30, %cst_9 {dimension_numbers = #tpu.dot_dimension_numbers<[1], [0], [0], [1], [0, 0, 1, 1], [], []>} : vector<48x1728xbf16>, vector<1728x320xbf16>, vector<48x320xf32> -> vector<48x320xf32>
    %c0_10 = arith.constant 0 : index
    %c0_11 = arith.constant 0 : index
    %32 = vector.load %arg5[%c0_10, %c0_11] : memref<1x320xf32, #tpu.memory_space<vmem>>, vector<1x320xf32>
    %33 = vector.broadcast %32 : vector<1x320xf32> to vector<48x320xf32>
    %34 = arith.addf %31, %33 : vector<48x320xf32>
    %35 = vector.shape_cast %34 : vector<48x320xf32> to vector<2x24x320xf32>
    %36 = vector.extract_strided_slice %35 {offsets = [0, 0, 32], sizes = [2, 24, 288], strides = [1, 1, 1]} : vector<2x24x320xf32> to vector<2x24x288xf32>
    %37 = vector.extract_strided_slice %35 {offsets = [0, 0, 0], sizes = [2, 24, 32], strides = [1, 1, 1]} : vector<2x24x320xf32> to vector<2x24x32xf32>
    %38 = tpu.concatenate %36, %37 in 2 : vector<2x24x288xf32>, vector<2x24x32xf32> -> vector<2x24x320xf32>
    %39 = arith.maximumf %35, %38 : vector<2x24x320xf32>
    %40 = vector.extract_strided_slice %39 {offsets = [0, 0, 0], sizes = [2, 20, 320], strides = [1, 1, 1]} : vector<2x24x320xf32> to vector<2x20x320xf32>
    %41 = vector.extract_strided_slice %39 {offsets = [0, 2, 0], sizes = [2, 20, 320], strides = [1, 1, 1]} : vector<2x24x320xf32> to vector<2x20x320xf32>
    %42 = arith.maximumf %40, %41 : vector<2x20x320xf32>
    %cst_12 = arith.constant 0.000000e+00 : f32
    %43 = vector.broadcast %cst_12 : f32 to vector<2x20x320xf32>
    %44 = arith.maximumf %42, %43 : vector<2x20x320xf32>
    %45 = vector.extract_strided_slice %44 {offsets = [0, 0, 0], sizes = [2, 1, 320], strides = [1, 1, 1]} : vector<2x20x320xf32> to vector<2x1x320xf32>
    %46 = vector.shape_cast %45 : vector<2x1x320xf32> to vector<2x320xf32>
    %47 = vector.extract_strided_slice %44 {offsets = [0, 4, 0], sizes = [2, 1, 320], strides = [1, 1, 1]} : vector<2x20x320xf32> to vector<2x1x320xf32>
    %48 = vector.shape_cast %47 : vector<2x1x320xf32> to vector<2x320xf32>
    %49 = vector.extract_strided_slice %44 {offsets = [0, 8, 0], sizes = [2, 1, 320], strides = [1, 1, 1]} : vector<2x20x320xf32> to vector<2x1x320xf32>
    %50 = vector.shape_cast %49 : vector<2x1x320xf32> to vector<2x320xf32>
    %51 = vector.extract_strided_slice %44 {offsets = [0, 12, 0], sizes = [2, 1, 320], strides = [1, 1, 1]} : vector<2x20x320xf32> to vector<2x1x320xf32>
    %52 = vector.shape_cast %51 : vector<2x1x320xf32> to vector<2x320xf32>
    %53 = vector.extract_strided_slice %44 {offsets = [0, 16, 0], sizes = [2, 1, 320], strides = [1, 1, 1]} : vector<2x20x320xf32> to vector<2x1x320xf32>
    %54 = vector.shape_cast %53 : vector<2x1x320xf32> to vector<2x320xf32>
    %55 = tpu.concatenate %46, %48, %50, %52, %54 in 1 : vector<2x320xf32>, vector<2x320xf32>, vector<2x320xf32>, vector<2x320xf32>, vector<2x320xf32> -> vector<2x1600xf32>
    %56 = arith.truncf %55 : vector<2x1600xf32> to vector<2x1600xbf16>
    %c0_13 = arith.constant 0 : index
    %c0_14 = arith.constant 0 : index
    %57 = vector.load %arg6[%c0_13, %c0_14] : memref<1600x256xbf16, #tpu.memory_space<vmem>>, vector<1600x256xbf16>
    %cst_15 = arith.constant dense<0.000000e+00> : vector<2x256xf32>
    %58 = tpu.matmul %56, %57, %cst_15 {dimension_numbers = #tpu.dot_dimension_numbers<[1], [0], [0], [1], [0, 0, 1, 1], [], []>} : vector<2x1600xbf16>, vector<1600x256xbf16>, vector<2x256xf32> -> vector<2x256xf32>
    %c0_16 = arith.constant 0 : index
    %c0_17 = arith.constant 0 : index
    %59 = vector.load %arg7[%c0_16, %c0_17] : memref<1x256xf32, #tpu.memory_space<vmem>>, vector<1x256xf32>
    %60 = vector.broadcast %59 : vector<1x256xf32> to vector<2x256xf32>
    %61 = arith.addf %58, %60 : vector<2x256xf32>
    %cst_18 = arith.constant 0.000000e+00 : f32
    %62 = vector.broadcast %cst_18 : f32 to vector<2x256xf32>
    %63 = arith.maximumf %61, %62 : vector<2x256xf32>
    %64 = arith.truncf %63 : vector<2x256xf32> to vector<2x256xbf16>
    %c0_19 = arith.constant 0 : index
    %c0_20 = arith.constant 0 : index
    %65 = vector.load %arg8[%c0_19, %c0_20] : memref<256x128xbf16, #tpu.memory_space<vmem>>, vector<256x128xbf16>
    %cst_21 = arith.constant dense<0.000000e+00> : vector<2x128xf32>
    %66 = tpu.matmul %64, %65, %cst_21 {dimension_numbers = #tpu.dot_dimension_numbers<[1], [0], [0], [1], [0, 0, 1, 1], [], []>} : vector<2x256xbf16>, vector<256x128xbf16>, vector<2x128xf32> -> vector<2x128xf32>
    %c0_22 = arith.constant 0 : index
    %c0_23 = arith.constant 0 : index
    %67 = vector.load %arg9[%c0_22, %c0_23] : memref<1x128xf32, #tpu.memory_space<vmem>>, vector<1x128xf32>
    %68 = vector.broadcast %67 : vector<1x128xf32> to vector<2x128xf32>
    %69 = arith.addf %66, %68 : vector<2x128xf32>
    %cst_24 = arith.constant dense<0xFF800000> : vector<2xf32>
    %70 = vector.multi_reduction <maximumf>, %69, %cst_24 [1] : vector<2x128xf32> to vector<2xf32>
    %71 = vector.shape_cast %70 : vector<2xf32> to vector<2x1xf32>
    %72 = vector.broadcast %71 : vector<2x1xf32> to vector<2x128xf32>
    %73 = arith.subf %69, %72 : vector<2x128xf32>
    %74 = math.exp %73 : vector<2x128xf32>
    %cst_25 = arith.constant dense<0.000000e+00> : vector<2xf32>
    %75 = vector.multi_reduction <add>, %74, %cst_25 [1] : vector<2x128xf32> to vector<2xf32>
    %76 = vector.shape_cast %75 : vector<2xf32> to vector<2x1xf32>
    %77 = math.log %76 : vector<2x1xf32>
    %78 = vector.broadcast %77 : vector<2x1xf32> to vector<2x128xf32>
    %79 = arith.subf %73, %78 : vector<2x128xf32>
    %c0_26 = arith.constant 0 : index
    %c0_27 = arith.constant 0 : index
    %80 = vector.load %arg10[%c0_26, %c0_27] : memref<2x128xf32, #tpu.memory_space<vmem>>, vector<2x128xf32>
    tpu.vector_store %arg10[%c0_26, %c0_27], %79 {strides = array<i32>} : memref<2x128xf32, #tpu.memory_space<vmem>>, vector<2x128xf32>,
    return
  }
  func.func @transform_0(%arg0: i32) -> (i32, i32, i32) {
    %c0_i32 = arith.constant 0 : i32
    %c0_i32_0 = arith.constant 0 : i32
    %c0_i32_1 = arith.constant 0 : i32
    return %arg0, %c0_i32, %c0_i32_0 : i32, i32, i32
  }
  func.func @transform_1(%arg0: i32) -> (i32, i32) {
    %c0_i32 = arith.constant 0 : i32
    %c0_i32_0 = arith.constant 0 : i32
    %c0_i32_1 = arith.constant 0 : i32
    return %c0_i32, %c0_i32_0 : i32, i32
  }
  func.func @transform_2(%arg0: i32) -> (i32, i32) {
    %c0_i32 = arith.constant 0 : i32
    %c0_i32_0 = arith.constant 0 : i32
    %c0_i32_1 = arith.constant 0 : i32
    return %c0_i32, %c0_i32_0 : i32, i32
  }
  func.func @transform_3(%arg0: i32) -> (i32, i32) {
    %c0_i32 = arith.constant 0 : i32
    %c0_i32_0 = arith.constant 0 : i32
    %c0_i32_1 = arith.constant 0 : i32
    return %c0_i32, %c0_i32_0 : i32, i32
  }
  func.func @transform_4(%arg0: i32) -> (i32, i32) {
    %c0_i32 = arith.constant 0 : i32
    %c0_i32_0 = arith.constant 0 : i32
    %c0_i32_1 = arith.constant 0 : i32
    return %c0_i32, %c0_i32_0 : i32, i32
  }
  func.func @transform_5(%arg0: i32) -> (i32, i32) {
    %c0_i32 = arith.constant 0 : i32
    %c0_i32_0 = arith.constant 0 : i32
    %c0_i32_1 = arith.constant 0 : i32
    return %c0_i32, %c0_i32_0 : i32, i32
  }
  func.func @transform_6(%arg0: i32) -> (i32, i32) {
    %c0_i32 = arith.constant 0 : i32
    %c0_i32_0 = arith.constant 0 : i32
    %c0_i32_1 = arith.constant 0 : i32
    return %c0_i32, %c0_i32_0 : i32, i32
  }
  func.func @transform_7(%arg0: i32) -> (i32, i32) {
    %c0_i32 = arith.constant 0 : i32
    %c0_i32_0 = arith.constant 0 : i32
    %c0_i32_1 = arith.constant 0 : i32
    return %c0_i32, %c0_i32_0 : i32, i32
  }
  func.func @transform_8(%arg0: i32) -> (i32, i32) {
    %c0_i32 = arith.constant 0 : i32
    %c0_i32_0 = arith.constant 0 : i32
    %c0_i32_1 = arith.constant 0 : i32
    return %c0_i32, %c0_i32_0 : i32, i32
  }
  func.func @transform_9(%arg0: i32) -> (i32, i32) {
    %c0_i32 = arith.constant 0 : i32
    %c0_i32_0 = arith.constant 0 : i32
    return %arg0, %c0_i32 : i32, i32
  }
}

</mosaic_0001>

<bundles_post_ra>
// kernel: cnn_forward.1
= control target key start
LH: loop header
LB: loop body
LE: loop exit
PB: predicated region body
PF: predicated region fallthrough
CT: control target
= control target key end

     0   :  { %vm54_vm0 = vcmask 1046528   ;;  %vm140_vm1 = vcmask 1044480   ;;  %vm97_vm2 = vcmask 1045504   ;;  %vm183_vm3 = vcmask 1043456   ;;  %s8881_s21 = smov 28   ;;  %s8882_s26 = smov 84   ;;  %s12560_s0 = inlined_call_operand.vmem [shape: f32[2,36,28], index: 0, kind: input, shape index: {}]   ;;  %s12561_s1 = inlined_call_operand.vmem [shape: bf16[140,576], index: 1, kind: input, shape index: {}]   ;;  %s12562_s2 = inlined_call_operand.vmem [shape: f32[1,576], index: 2, kind: input, shape index: {}]   ;;  %s12563_s3 = inlined_call_operand.vmem [shape: bf16[1728,320], index: 3, kind: input, shape index: {}]   ;;  %s12564_s4 = inlined_call_operand.vmem [shape: f32[1,320], index: 4, kind: input, shape index: {}]   ;;  %s12565_s5 = inlined_call_operand.vmem [shape: bf16[1600,256], index: 5, kind: input, shape index: {}]   ;;  %s12566_s6 = inlined_call_operand.vmem [shape: f32[1,256], index: 6, kind: input, shape index: {}]   ;;  %s12567_s7 = inlined_call_operand.vmem [shape: bf16[256,128], index: 7, kind: input, shape index: {}]   ;;  %s12568_s8 = inlined_call_operand.vmem [shape: f32[1,128], index: 8, kind: input, shape index: {}]   ;;  %s12569_s9 = inlined_call_operand.hbm [shape: f32[2,128], index: 9, kind: output, shape index: {}]  }
   0x1   :  { %v8945_v0 = vld [vmem:[%s12560_s0] sm:$0xff]  ;;  %v8950_v1 = vld [vmem:[%s12560_s0 + $0x8] sm:$0xff]  ;;  %v8955_v2 = vld [vmem:[%s12560_s0 + $0x10] sm:$0xff]  ;;  %s8883_s14 = smov 56   ;;  %s8884_s15 = smov 112   ;;  %vm226_vm4 = vcmask 228352  }
   0x2   :  { %v55_v3 = vrot.slane %v8945_v0, 1  ;;  %v56_v4 = vrot.slane %v8950_v1, 1  ;;  %v58_v5 = vrot.slane %v8955_v2, 1  ;;  %v141_v6 = vrot.slane %v8945_v0, 3  ;;  %v37_v14 = vld [vmem:[%s12560_s0 + $0x18] sm:$0xff]  ;;  %v8988_v28 = vld [vmem:[%s12560_s0 + $0x28] sm:$0xff] }
   0x3   :  { %v142_v7 = vrot.slane %v8950_v1, 3  ;;  %v144_v8 = vrot.slane %v8955_v2, 3  ;;  %v98_v9 = vrot.slane %v8945_v0, 2  ;;  %v99_v12 = vrot.slane %v8950_v1, 2  ;;  %v38_v18 = vld [vmem:[%s12560_s0 + $0x20] sm:$0xf] }
   0x4   :  { %v57_v10 = vsel %vm54_vm0, %v55_v3, %v56_v4  ;;  %v59_v11 = vsel %vm54_vm0, %v56_v4, %v58_v5  ;;  %v101_v13 = vrot.slane %v8955_v2, 2  ;;  %v184_v22 = vrot.slane %v8945_v0, 4  ;;  %v8036_v23 = vld [vmem:[%s12561_s1 + $0x4] ss:$20 sps:$4 sm:$0xff]   ;;  %v8038_v29 = vld [vmem:[%s12561_s1] ss:$20 sps:$4 sm:$0xff]  }
   0x5   :  { %v7706_v15 = vpack.i.bf16 %v59_v11, %v57_v10  ;;  %v143_v16 = vsel %vm140_vm1, %v141_v6, %v142_v7  ;;  %v145_v17 = vsel %vm140_vm1, %v142_v7, %v144_v8  ;;  %v100_v20 = vsel %vm97_vm2, %v98_v9, %v99_v12  ;;  %v8997_v34 = vld [vmem:[%s12560_s0 + $0x30] sm:$0xff]  ;;  %608 = vmatprep.subr.bf16.mxu1 %v8036_v23  ;;  %v9005_v39 = vld [vmem:[%s12560_s0 + $0x38] sm:$0xff]  ;;  %v8040_v44 = vld [vmem:[%s12561_s1 + $0x2c] ss:$20 sps:$4 sm:$0xff]  }
   0x6   :  { %v7716_v19 = vpack.i.bf16 %v145_v17, %v143_v16  ;;  %v102_v21 = vsel %vm97_vm2, %v99_v12, %v101_v13  ;;  %v185_v25 = vrot.slane %v8950_v1, 4  ;;  %v187_v26 = vrot.slane %v8955_v2, 4  ;;  %609 = vmatpush1.bf16.msra.mxu1 %v8038_v29  ;;  %v8042_v45 = vld [vmem:[%s12561_s1 + $0x28] ss:$20 sps:$4 sm:$0xff]   ;;  %v8046_v58 = vld [vmem:[%s12561_s1 + $0x50] ss:$20 sps:$4 sm:$0xff]  }
   0x7   :  { %7707 = vrot.lane.b32.xlu0 %v7706_v15, %s8881_s21  ;;  %v7711_v24 = vpack.i.bf16 %v102_v21, %v100_v20  ;;  %v60_v27 = vrot.slane %v37_v14, 1  ;;  %v62_v30 = vrot.slane %v38_v18, 1  ;;  %v103_v31 = vrot.slane %v37_v14, 2  ;;  %610 = vmatprep.subr.bf16.mxu1 %v8040_v44  ;;  %v8044_v53 = vld [vmem:[%s12561_s1 + $0x54] ss:$20 sps:$4 sm:$0xff]   ;;  %v9037_v63 = vld [vmem:[%s12560_s0 + $0x40] sm:$0xff] }
   0x8   :  { %7717 = vrot.lane.b32.xlu1 %v7716_v19, %s8882_s26  ;;  %v105_v32 = vrot.slane %v38_v18, 2  ;;  %v146_v33 = vrot.slane %v37_v14, 3  ;;  %v186_v35 = vsel %vm183_vm3, %v184_v22, %v185_v25  ;;  %v188_v36 = vsel %vm183_vm3, %v185_v25, %v187_v26  ;;  %v9046_v6 = vld [vmem:[%s12560_s0 + $0x48] sm:$0xf]  ;;  %v8048_v11 = vld [vmem:[%s12561_s1 + $0x7c] ss:$20 sps:$4 sm:$0xff]  }
   0x9   :  { %v61_v37 = vsel %vm54_vm0, %v58_v5, %v60_v27  ;;  %v148_v38 = vrot.slane %v38_v18, 3  ;;  %v7721_v40 = vpack.i.bf16 %v188_v36, %v186_v35  ;;  %v63_v41 = vsel %vm54_vm0, %v60_v27, %v62_v30  ;;  %v8050_v12 = vld [vmem:[%s12561_s1 + $0x78] ss:$20 sps:$4 sm:$0xff]   ;;  %v8039_v20 = vld [vmem:[%s12561_s1 + $0x10] ss:$20 sps:$4 sm:$0xff]  }
   0xa   :  { %v104_v42 = vsel %vm97_vm2, %v101_v13, %v103_v31  ;;  %v106_v43 = vsel %vm97_vm2, %v103_v31, %v105_v32  ;;  %v7726_v46 = vpack.i.bf16 %v63_v41, %v61_v37  ;;  %v147_v47 = vsel %vm140_vm1, %v144_v8, %v146_v33  ;;  %611 = vmatpush1.bf16.msra.mxu1 %v8042_v45  ;;  %v8052_v21 = vld [vmem:[%s12561_s1 + $0xa4] ss:$20 sps:$4 sm:$0xff]   ;;  %v8056_v29 = vld [vmem:[%s12561_s1 + $0xcc] ss:$20 sps:$4 sm:$0xff]  }
   0xb   :  { %7712 = vrot.lane.b32.xlu0 %v7711_v24, %s8883_s14  ;;  %v149_v48 = vsel %vm140_vm1, %v146_v33, %v148_v38  ;;  %v7731_v49 = vpack.i.bf16 %v106_v43, %v104_v42  ;;  %v189_v50 = vrot.slane %v37_v14, 4  ;;  %v191_v51 = vrot.slane %v38_v18, 4  ;;  %612 = vmatprep.subr.bf16.mxu1 %v8044_v53  ;;  %v8060_v43 = vld [vmem:[%s12561_s1 + $0xf4] ss:$20 sps:$4 sm:$0xff]  }
   0xc   :  { %7722 = vrot.lane.b32.xlu1 %v7721_v40, %s8884_s15  ;;  %v64_v52 = vrot.slane %v8988_v28, 1  ;;  %v65_v54 = vrot.slane %v8997_v34, 1  ;;  %v67_v55 = vrot.slane %v9005_v39, 1  ;;  %v107_v56 = vrot.slane %v8988_v28, 2 }
   0xd   :  { %v108_v57 = vrot.slane %v8997_v34, 2  ;;  %v7736_v59 = vpack.i.bf16 %v149_v48, %v147_v47  ;;  %v190_v60 = vsel %vm183_vm3, %v187_v26, %v189_v50  ;;  %v192_v61 = vsel %vm183_vm3, %v189_v50, %v191_v51  ;;  %v8047_v48 = vld [vmem:[%s12561_s1 + $0x60] ss:$20 sps:$4 sm:$0xff]   ;;  %v8062_v51 = vld [vmem:[%s12561_s1 + $0xf0] ss:$20 sps:$4 sm:$0xff]  }
   0xe   :  { %v110_v62 = vrot.slane %v9005_v39, 2  ;;  %v7741_v2 = vpack.i.bf16 %v192_v61, %v190_v60  ;;  %v66_v3 = vsel %vm54_vm0, %v64_v52, %v65_v54  ;;  %v68_v4 = vsel %vm54_vm0, %v65_v54, %v67_v55  ;;  %613 = vmatpush1.bf16.msra.mxu1 %v8046_v58  ;;  %v8064_v52 = vld [vmem:[%s12561_s1 + $0x11c] ss:$20 sps:$4 sm:$0xff]   ;;  %v8070_v58 = vld [vmem:[%s12561_s1 + $0x140] ss:$20 sps:$4 sm:$0x3f]  }
   0xf   :  { %7727 = vrot.lane.b32.xlu0 %v7726_v46, %s8881_s21  ;;  %v150_v5 = vrot.slane %v8988_v28, 3  ;;  %v109_v7 = vsel %vm97_vm2, %v107_v56, %v108_v57  ;;  %v151_v9 = vrot.slane %v8997_v34, 3  ;;  %v153_v10 = vrot.slane %v9005_v39, 3  ;;  %614 = vmatprep.subr.bf16.mxu1 %v8048_v11  ;;  %v8066_v56 = vld [vmem:[%s12561_s1 + $0x118] ss:$20 sps:$4 sm:$0xff]  }
  0x10   :  { %7732 = vrot.lane.b32.xlu1 %v7731_v49, %s8883_s14  ;;  %v111_v8 = vsel %vm97_vm2, %v108_v57, %v110_v62  ;;  %v193_v13 = vrot.slane %v8988_v28, 4  ;;  %v194_v14 = vrot.slane %v8997_v34, 4  ;;  %v196_v15 = vrot.slane %v9005_v39, 4  ;;  %v8054_v28 = vld [vmem:[%s12561_s1 + $0xa0] ss:$20 sps:$4 sm:$0xff]  }
  0x11   :  { %v7746_v16 = vpack.i.bf16 %v68_v4, %v66_v3  ;;  %v7751_v17 = vpack.i.bf16 %v111_v8, %v109_v7  ;;  %v152_v18 = vsel %vm140_vm1, %v150_v5, %v151_v9  ;;  %v69_v19 = vrot.slane %v9037_v63, 1  ;;  %v8043_v34 = vld [vmem:[%s12561_s1 + $0x38] ss:$20 sps:$4 sm:$0xff]   ;;  %v8058_v39 = vld [vmem:[%s12561_s1 + $0xc8] ss:$20 sps:$4 sm:$0xff]  }
  0x12   :  { %v154_v22 = vsel %vm140_vm1, %v151_v9, %v153_v10  ;;  %v195_v23 = vsel %vm183_vm3, %v193_v13, %v194_v14  ;;  %v197_v24 = vsel %vm183_vm3, %v194_v14, %v196_v15  ;;  %v71_v25 = vrot.slane %v9046_v6, 1  ;;  %615 = vmatpush1.bf16.msra.mxu1 %v8050_v12  ;;  %v8068_v57 = vld [vmem:[%s12561_s1 + $0x144] ss:$20 sps:$4 sm:$0x3f]   ;;  %v8074_v61 = vld [vmem:[%s12561_s1 + $0xc] ss:$20 sps:$4 sm:$0xff]  }
  0x13   :  { %7737 = vrot.lane.b32.xlu0 %v7736_v59, %s8882_s26  ;;  %v112_v26 = vrot.slane %v9037_v63, 2  ;;  %v114_v27 = vrot.slane %v9046_v6, 2  ;;  %616 = vmatprep.subr.bf16.mxu1 %v8052_v21  ;;  %v7756_v30 = vpack.i.bf16 %v154_v22, %v152_v18  ;;  %v7761_v31 = vpack.i.bf16 %v197_v24, %v195_v23  ;;  %v8055_v59 = vld [vmem:[%s12561_s1 + $0xb0] ss:$20 sps:$4 sm:$0xff]   ;;  %v8072_v21 = vld [vmem:[%s12561_s1 + $0x8] ss:$20 sps:$4 sm:$0xff]  }
  0x14   :  { %7742 = vrot.lane.b32.xlu1 %v7741_v2, %s8884_s15  ;;  %v70_v32 = vsel %vm54_vm0, %v67_v55, %v69_v19  ;;  %v12570_v33 = vmov 0   ;;  %v72_v35 = vsel %vm54_vm0, %v69_v19, %v71_v25  ;;  %v155_v36 = vrot.slane %v9037_v63, 3  ;;  %v8051_v55 = vld [vmem:[%s12561_s1 + $0x88] ss:$20 sps:$4 sm:$0xff]  }
  0x15   :  { %754 = vmatprep.subr.bf16.mxu0 %v12570_v33  ;;  %v157_v37 = vrot.slane %v9046_v6, 3  ;;  %v198_v38 = vrot.slane %v9037_v63, 4  ;;  %v113_v40 = vsel %vm97_vm2, %v110_v62, %v112_v26  ;;  %v115_v41 = vsel %vm97_vm2, %v112_v26, %v114_v27  ;;  %v8059_v62 = vld [vmem:[%s12561_s1 + $0xd8] ss:$20 sps:$4 sm:$0xff]   ;;  %v8063_v63 = vld [vmem:[%s12561_s1 + $0x100] ss:$20 sps:$4 sm:$0xff]  }
  0x16   :  { %755 = vmatpush1.bf16.msra.mxu0 %v8039_v20  ;;  %v200_v42 = vrot.slane %v9046_v6, 4  ;;  %617 = vmatpush1.bf16.msra.mxu1 %v8054_v28  ;;  %v7766_v44 = vpack.i.bf16 %v72_v35, %v70_v32  ;;  %v7771_v45 = vpack.i.bf16 %v115_v41, %v113_v40  ;;  %v156_v46 = vsel %vm140_vm1, %v153_v10, %v155_v36  ;;  %v8067_v2 = vld [vmem:[%s12561_s1 + $0x128] ss:$20 sps:$4 sm:$0xff]   ;;  %v8071_v3 = vld [vmem:[%s12561_s1 + $0x150] ss:$20 sps:$4 sm:$0x3f]  }
  0x17   :  { %7747 = vrot.lane.b32.xlu0 %v7746_v16, %s8881_s21  ;;  %756 = vmatprep.subr.bf16.mxu0 %v12570_v33  ;;  %v158_v47 = vsel %vm140_vm1, %v155_v36, %v157_v37  ;;  %v199_v49 = vsel %vm183_vm3, %v196_v15, %v198_v38  ;;  %v594_v60 = vsel %vm97_vm2, %v8070_v58, 0  ;;  %v606_v4 = vsel %vm97_vm2, %v8071_v3, 0  ;;  %v8852_v36 = vld [vmem:[%s12560_s0 + $0x10] sm:$0xff] }
  0x18   :  { %7752 = vrot.lane.b32.xlu1 %v7751_v17, %s8883_s14  ;;  %618 = vmatprep.subr.bf16.mxu1 %v8056_v29  ;;  %v201_v50 = vsel %vm183_vm3, %v198_v38, %v200_v42  ;;  %v7776_v53 = vpack.i.bf16 %v158_v47, %v156_v46  ;;  %vm235_vm5 = vcmask 457728   ;;  %vm244_vm6 = vcmask 687104   ;;  %v8075_v38 = vld [vmem:[%s12561_s1 + $0x30] ss:$20 sps:$4 sm:$0xff]  }
  0x19   :  { %v7781_v54 = vpack.i.bf16 %v201_v50, %v199_v49  ;;  %vm253_vm7 = vcmask 916480   ;;  %vm580_vm8 = vcmask 97280   ;;  %v8080_v42 = vld [vmem:[%s12561_s1 + $0x5c] ss:$20 sps:$4 sm:$0xff]   ;;  %v8078_v50 = vld [vmem:[%s12561_s1 + $0x58] ss:$20 sps:$4 sm:$0xff]  }
  0x1a   :  { %757 = vmatpush1.bf16.msra.mxu0 %v8043_v34  ;;  %619 = vmatpush1.bf16.msra.mxu1 %v8058_v39  ;;  %v8851_v34 = vld [vmem:[%s12560_s0 + $0x18] sm:$0xff] }
  0x1b   :  { %7757 = vrot.lane.b32.xlu0 %v7756_v30, %s8882_s26  ;;  %758 = vmatprep.subr.bf16.mxu0 %v12570_v33 }
  0x1c   :  { %7762 = vrot.lane.b32.xlu1 %v7761_v31, %s8884_s15  ;;  %620 = vmatprep.subr.bf16.mxu1 %v8060_v43 }
  0x1e   :  { %759 = vmatpush1.bf16.msra.mxu0 %v8047_v48  ;;  %621 = vmatpush1.bf16.msra.mxu1 %v8062_v51 }
  0x1f   :  { %7767 = vrot.lane.b32.xlu0 %v7766_v44, %s8881_s21  ;;  %760 = vmatprep.subr.bf16.mxu0 %v12570_v33 }
  0x20   :  { %7772 = vrot.lane.b32.xlu1 %v7771_v45, %s8883_s14  ;;  %622 = vmatprep.subr.bf16.mxu1 %v8064_v52 }
  0x22   :  { %761 = vmatpush1.bf16.msra.mxu0 %v8051_v55  ;;  %623 = vmatpush1.bf16.msra.mxu1 %v8066_v56  ;;  %v8083_v55 = vld [vmem:[%s12561_s1 + $0x84] ss:$20 sps:$4 sm:$0xff]  }
  0x23   :  { %7777 = vrot.lane.b32.xlu0 %v7776_v53, %s8882_s26  ;;  %762 = vmatprep.subr.bf16.mxu0 %v12570_v33 }
  0x24   :  { %7782 = vrot.lane.b32.xlu1 %v7781_v54, %s8884_s15  ;;  %6799 = vmatprep.subr.msk.bf16.mxu1 %vm97_vm2, %v8068_v57 }
  0x26   :  { %763 = vmatpush1.bf16.msra.mxu0 %v8055_v59  ;;  %625 = vmatpush1.bf16.msra.mxu1 %v594_v60 }
  0x27   :  { %764 = vmatprep.subr.bf16.mxu0 %v12570_v33  ;;  %681 = vmatprep.subr.bf16.mxu1 %v8074_v61 }
  0x2a   :  { %765 = vmatpush1.bf16.msra.mxu0 %v8059_v62  ;;  %v8853_v62 = vld [vmem:[%s12560_s0 + $0x30] sm:$0xff] }
  0x2b   :  { %766 = vmatprep.subr.bf16.mxu0 %v12570_v33 }
  0x2e   :  { %767 = vmatpush1.bf16.msra.mxu0 %v8063_v63 }
  0x2f   :  { %768 = vmatprep.subr.bf16.mxu0 %v12570_v33 }
  0x32   :  { %769 = vmatpush1.bf16.msra.mxu0 %v8067_v2  ;;  %v8854_v2 = vld [vmem:[%s12560_s0 + $0x28] sm:$0xff] }
  0x33   :  { %770 = vmatprep.subr.bf16.mxu0 %v12570_v33 }
  0x36   :  { %771 = vmatpush1.bf16.msra.mxu0 %v606_v4  ;;  %v8081_v4 = vld [vmem:[%s12561_s1 + $0x80] ss:$20 sps:$4 sm:$0xff]  }
  0x79   :  { %v7708_v5 = vpop.permute.xlu0 %7707 }
  0x7a   :  { %v7718_v6 = vpop.permute.xlu1 %7717  ;;  %v7710_v7 = vunpack.i.h.bf16 %v7708_v5  ;;  %v7709_v8 = vunpack.i.l.bf16 %v7708_v5 }
  0x7b   :  { %v7720_v10 = vunpack.i.h.bf16 %v7718_v6  ;;  %v7719_v11 = vunpack.i.l.bf16 %v7718_v6 }
  0x7c   :  { %v228_v15 = vsel %vm226_vm4, %v8950_v1, %v7710_v7  ;;  %v227_v16 = vsel %vm226_vm4, %v8945_v0, %v7709_v8  ;;  %v8077_v0 = vld [vmem:[%s12561_s1 + $0x34] ss:$20 sps:$4 sm:$0xff]   ;;  %v8086_v8 = vld [vmem:[%s12561_s1 + $0xac] ss:$20 sps:$4 sm:$0xff]  }
  0x7d   :  { %v7713_v9 = vpop.permute.xlu0 %7712 }
  0x7e   :  { %v7715_v12 = vunpack.i.h.bf16 %v7713_v9  ;;  %v7714_v13 = vunpack.i.l.bf16 %v7713_v9  ;;  %v7723_v14 = vpop.permute.xlu1 %7722 }
  0x7f   :  { %v7725_v17 = vunpack.i.h.bf16 %v7723_v14  ;;  %v7724_v18 = vunpack.i.l.bf16 %v7723_v14 }
  0x80   :  { %v236_v19 = vsel %vm235_vm5, %v227_v16, %v7714_v13  ;;  %v237_v20 = vsel %vm235_vm5, %v228_v15, %v7715_v12  ;;  %v8084_v16 = vld [vmem:[%s12561_s1 + $0xa8] ss:$20 sps:$4 sm:$0xff]  }
  0x81   :  { %v9173_v22 = vpack.c.bf16 %v7725_v17, %v7724_v18  ;;  %v7728_v23 = vpop.permute.xlu0 %7727  ;;  %v245_v24 = vsel %vm244_vm6, %v236_v19, %v7719_v11  ;;  %v246_v1 = vsel %vm244_vm6, %v237_v20, %v7720_v10 }
  0x82   :  { %v7730_v25 = vunpack.i.h.bf16 %v7728_v23  ;;  %v7729_v26 = vunpack.i.l.bf16 %v7728_v23  ;;  %v7733_v27 = vpop.permute.xlu1 %7732  ;;  %v254_v28 = vsel %vm253_vm7, %v245_v24, %v7724_v18  ;;  %v255_v29 = vsel %vm253_vm7, %v246_v1, %v7725_v17 }
  0x83   :  { %v7735_v30 = vunpack.i.h.bf16 %v7733_v27  ;;  %v7734_v31 = vunpack.i.l.bf16 %v7733_v27  ;;  %6800 = vmatprep.mubr.msk.bf16.mxu1 %vm580_vm8, %v9173_v22  ;;  %6809 = vmatprep.mubr.msk.bf16.mxu0 %vm580_vm8, %v9173_v22  ;;  %v9186_v32 = vpack.c.bf16 %v255_v29, %v254_v28  ;;  %v8855_v27 = vld [vmem:[%s12560_s0 + $0x40] sm:$0xff]  ;;  %v8856_v29 = vld [vmem:[%s12560_s0 + $0x38] sm:$0xff] }
  0x84   :  { %v230_v35 = vsel %vm226_vm4, %v8851_v34, %v7730_v25  ;;  %v229_v37 = vsel %vm226_vm4, %v8852_v36, %v7729_v26 }
  0x85   :  { %v238_v39 = vsel %vm235_vm5, %v229_v37, %v7734_v31  ;;  %v239_v40 = vsel %vm235_vm5, %v230_v35, %v7735_v30  ;;  %641 = vmatmul.mubr.bf16.vlgmr.msra.gmra.mrb[0].mxu1 %v9186_v32  ;;  %787 = vmatmul.mubr.bf16.vlgmr.msra.gmra.mrb[0].mxu0 %v9186_v32  ;;  %v7738_v41 = vpop.permute.xlu0 %7737  ;;  %v8087_v31 = vld [vmem:[%s12561_s1 + $0xd0] ss:$20 sps:$4 sm:$0xff]  }
  0x86   :  { %682 = vmatpush1.bf16.msra.mxu1 %v8072_v21  ;;  %v7740_v43 = vunpack.i.h.bf16 %v7738_v41  ;;  %v7739_v44 = vunpack.i.l.bf16 %v7738_v41  ;;  %v7743_v45 = vpop.permute.xlu1 %7742  ;;  %v8089_v21 = vld [vmem:[%s12561_s1 + $0xd4] ss:$20 sps:$4 sm:$0xff]   ;;  %v8092_v37 = vld [vmem:[%s12561_s1 + $0xfc] ss:$20 sps:$4 sm:$0xff]  }
  0x87   :  { %v7745_v46 = vunpack.i.h.bf16 %v7743_v45  ;;  %v7744_v47 = vunpack.i.l.bf16 %v7743_v45  ;;  %683 = vmatprep.subr.bf16.mxu1 %v8077_v0  ;;  %v8090_v45 = vld [vmem:[%s12561_s1 + $0xf8] ss:$20 sps:$4 sm:$0xff]  }
  0x88   :  { %v247_v48 = vsel %vm244_vm6, %v238_v39, %v7739_v44  ;;  %v248_v49 = vsel %vm244_vm6, %v239_v40, %v7740_v43 }
  0x89   :  { %v9211_v51 = vpack.c.bf16 %v7745_v46, %v7744_v47  ;;  %v7748_v52 = vpop.permute.xlu0 %7747  ;;  %v256_v53 = vsel %vm253_vm7, %v247_v48, %v7744_v47  ;;  %v257_v54 = vsel %vm253_vm7, %v248_v49, %v7745_v46  ;;  %v8095_v49 = vld [vmem:[%s12561_s1 + $0x124] ss:$20 sps:$4 sm:$0xff]  }
  0x8a   :  { %684 = vmatpush1.bf16.msra.mxu1 %v8075_v38  ;;  %v7750_v56 = vunpack.i.h.bf16 %v7748_v52  ;;  %v7749_v57 = vunpack.i.l.bf16 %v7748_v52  ;;  %v7753_v58 = vpop.permute.xlu1 %7752  ;;  %v9218_v59 = vpack.c.bf16 %v257_v54, %v256_v53  ;;  %v8093_v52 = vld [vmem:[%s12561_s1 + $0x120] ss:$20 sps:$4 sm:$0xff]   ;;  %v8098_v54 = vld [vmem:[%s12561_s1 + $0x148] ss:$20 sps:$4 sm:$0x3f]  }
  0x8b   :  { %v7755_v60 = vunpack.i.h.bf16 %v7753_v58  ;;  %v7754_v61 = vunpack.i.l.bf16 %v7753_v58  ;;  %6801 = vmatprep.mubr.msk.bf16.mxu1 %vm580_vm8, %v9211_v51  ;;  %685 = vmatprep.subr.bf16.mxu1 %v8080_v42  ;;  %v8096_v53 = vld [vmem:[%s12561_s1 + $0x14c] ss:$20 sps:$4 sm:$0x3f]  }
  0x8c   :  { %v232_v63 = vsel %vm226_vm4, %v8853_v62, %v7750_v56  ;;  %v231_v3 = vsel %vm226_vm4, %v8854_v2, %v7749_v57  ;;  %6810 = vmatprep.mubr.msk.bf16.mxu0 %vm580_vm8, %v9211_v51 }
  0x8d   :  { %v240_v5 = vsel %vm235_vm5, %v231_v3, %v7754_v61  ;;  %v241_v6 = vsel %vm235_vm5, %v232_v63, %v7755_v60  ;;  %651 = vmatmul.mubr.bf16.gmra.mrb[4].mxu1 %v9218_v59  ;;  %795 = vmatmul.mubr.bf16.gmra.mrb[4].mxu0 %v9218_v59  ;;  %v7758_v7 = vpop.permute.xlu0 %7757 }
  0x8e   :  { %686 = vmatpush1.bf16.msra.mxu1 %v8078_v50  ;;  %v7760_v9 = vunpack.i.h.bf16 %v7758_v7  ;;  %v7759_v10 = vunpack.i.l.bf16 %v7758_v7  ;;  %v7763_v11 = vpop.permute.xlu1 %7762 }
  0x8f   :  { %v7765_v12 = vunpack.i.h.bf16 %v7763_v11  ;;  %v7764_v13 = vunpack.i.l.bf16 %v7763_v11  ;;  %687 = vmatprep.subr.bf16.mxu1 %v8083_v55  ;;  %v600_v55 = vsel %vm97_vm2, %v8098_v54, 0 }
  0x90   :  { %v249_v14 = vsel %vm244_vm6, %v240_v5, %v7759_v10  ;;  %v250_v15 = vsel %vm244_vm6, %v241_v6, %v7760_v9 }
  0x91   :  { %v267_v17 = vpack.c.bf16 %v7765_v12, %v7764_v13  ;;  %v7768_v18 = vpop.permute.xlu0 %7767  ;;  %v258_v19 = vsel %vm253_vm7, %v249_v14, %v7764_v13  ;;  %v259_v20 = vsel %vm253_vm7, %v250_v15, %v7765_v12 }
  0x92   :  { %688 = vmatpush1.bf16.msra.mxu1 %v8081_v4  ;;  %v7770_v23 = vunpack.i.h.bf16 %v7768_v18  ;;  %v7769_v24 = vunpack.i.l.bf16 %v7768_v18  ;;  %v7773_v1 = vpop.permute.xlu1 %7772  ;;  %v266_v0 = vpack.c.bf16 %v259_v20, %v258_v19 }
  0x93   :  { %v7775_v25 = vunpack.i.h.bf16 %v7773_v1  ;;  %v7774_v26 = vunpack.i.l.bf16 %v7773_v1  ;;  %6802 = vmatprep.mubr.msk.bf16.mxu1 %vm580_vm8, %v267_v17  ;;  %689 = vmatprep.subr.bf16.mxu1 %v8086_v8 }
  0x94   :  { %v234_v28 = vsel %vm226_vm4, %v8855_v27, %v7770_v23  ;;  %v233_v30 = vsel %vm226_vm4, %v8856_v29, %v7769_v24  ;;  %6811 = vmatprep.mubr.msk.bf16.mxu0 %vm580_vm8, %v267_v17 }
  0x95   :  { %v242_v34 = vsel %vm235_vm5, %v233_v30, %v7774_v26  ;;  %v243_v35 = vsel %vm235_vm5, %v234_v28, %v7775_v25  ;;  %661 = vmatmul.mubr.bf16.gmra.mrb[8].mxu1 %v266_v0  ;;  %803 = vmatmul.mubr.bf16.gmra.mrb[8].mxu0 %v266_v0  ;;  %v7778_v36 = vpop.permute.xlu0 %7777 }
  0x96   :  { %690 = vmatpush1.bf16.msra.mxu1 %v8084_v16  ;;  %v7780_v38 = vunpack.i.h.bf16 %v7778_v36  ;;  %v7779_v39 = vunpack.i.l.bf16 %v7778_v36  ;;  %v7783_v40 = vpop.permute.xlu1 %7782 }
  0x97   :  { %v7785_v41 = vunpack.i.h.bf16 %v7783_v40  ;;  %v7784_v42 = vunpack.i.l.bf16 %v7783_v40  ;;  %691 = vmatprep.subr.bf16.mxu1 %v8089_v21 }
  0x98   :  { %v251_v43 = vsel %vm244_vm6, %v242_v34, %v7779_v39  ;;  %v252_v44 = vsel %vm244_vm6, %v243_v35, %v7780_v38 }
  0x99   :  { %v269_v46 = vpack.c.bf16 %v7785_v41, %v7784_v42  ;;  %v260_v47 = vsel %vm253_vm7, %v251_v43, %v7784_v42  ;;  %v261_v48 = vsel %vm253_vm7, %v252_v44, %v7785_v41 }
  0x9a   :  { %692 = vmatpush1.bf16.msra.mxu1 %v8087_v31  ;;  %v268_v50 = vpack.c.bf16 %v261_v48, %v260_v47 }
  0x9b   :  { %6803 = vmatprep.mubr.msk.bf16.mxu1 %vm580_vm8, %v269_v46  ;;  %693 = vmatprep.subr.bf16.mxu1 %v8092_v37 }
  0x9c   :  { %6812 = vmatprep.mubr.msk.bf16.mxu0 %vm580_vm8, %v269_v46 }
  0x9d   :  { %671 = vmatmul.mubr.bf16.gmra.mrb[12].mxu1 %v268_v50  ;;  %811 = vmatmul.mubr.bf16.gmra.mrb[12].mxu0 %v268_v50 }
  0x9e   :  { %694 = vmatpush1.bf16.msra.mxu1 %v8090_v45  ;;  %6805 = vmatprep.mubr.msk.bf16.mxu1 %vm580_vm8, %v9173_v22 }
  0x9f   :  { %695 = vmatprep.subr.bf16.mxu1 %v8095_v49 }
  0xa2   :  { %696 = vmatpush1.bf16.msra.mxu1 %v8093_v52 }
  0xa3   :  { %6804 = vmatprep.subr.msk.bf16.mxu1 %vm97_vm2, %v8096_v53 }
  0xa6   :  { %698 = vmatpush1.bf16.msra.mxu1 %v600_v55 }
  0xa9   :  { %714 = vmatmul.mubr.bf16.vlgmr.msra.gmra.mrb[16].mxu1 %v9186_v32 }
  0xaa   :  { %6806 = vmatprep.mubr.msk.bf16.mxu1 %vm580_vm8, %v9211_v51 }
  0xb1   :  { %724 = vmatmul.mubr.bf16.gmra.mrb[20].mxu1 %v9218_v59 }
  0xb2   :  { %6807 = vmatprep.mubr.msk.bf16.mxu1 %vm580_vm8, %v267_v17 }
  0xb9   :  { %734 = vmatmul.mubr.bf16.gmra.mrb[24].mxu1 %v266_v0 }
  0xba   :  { %6808 = vmatprep.mubr.msk.bf16.mxu1 %vm580_vm8, %v269_v46 }
  0xc1   :  { %744 = vmatmul.mubr.bf16.gmra.mrb[28].mxu1 %v268_v50 }
  0xc2   :  { %14 = vsyncpa [#allocation3], 0  ;;  %v8099_v22 = vld [vmem:[%s12563_s3] ss:$12 sps:$4 sm:$0xff]   ;;  %v8101_v32 = vld [vmem:[%s12563_s3 + $0x4] ss:$12 sps:$4 sm:$0xff]   ;;  %v326_v43 = vlaneseq }
  0xc3   :  { %v8104_v51 = vld [vmem:[%s12563_s3 + $0x1c] ss:$12 sps:$4 sm:$0xff]   ;;  %3874 = vmatprep.subr.bf16.mxu1 %v8101_v32  ;;  %v8102_v56 = vld [vmem:[%s12563_s3 + $0x18] ss:$12 sps:$4 sm:$0xff]   ;;  %v8107_v57 = vld [vmem:[%s12563_s3 + $0x34] ss:$12 sps:$4 sm:$0xff]  }
  0xc4   :  { %3875 = vmatpush1.bf16.msra.mxu1 %v8099_v22  ;;  %v8126_v58 = vld [vmem:[%s12563_s3 + $0xc8] ss:$12 sps:$4 sm:$0xff]   ;;  %v8105_v60 = vld [vmem:[%s12563_s3 + $0x30] ss:$12 sps:$4 sm:$0xff]   ;;  %v8131_v61 = vld [vmem:[%s12563_s3 + $0xe0] ss:$12 sps:$4 sm:$0xff]  }
  0xc5   :  { %3876 = vmatprep.subr.bf16.mxu1 %v8104_v51  ;;  %v8127_v59 = vld [vmem:[%s12563_s3 + $0x8] ss:$12 sps:$4 sm:$0xff]   ;;  %v8110_v62 = vld [vmem:[%s12563_s3 + $0x4c] ss:$12 sps:$4 sm:$0xff]   ;;  %7361 = vmatprep.subr.bf16.mxu0 %v8126_v58  ;;  %v8113_v4 = vld [vmem:[%s12563_s3 + $0x64] ss:$12 sps:$4 sm:$0xff]  }
  0xc6   :  { %7362 = vmatpush3.bf16.msra.mxu0 %v8127_v59  ;;  %v8132_v63 = vld [vmem:[%s12563_s3 + $0x20] ss:$12 sps:$4 sm:$0xff]   ;;  %v8136_v2 = vld [vmem:[%s12563_s3 + $0xf8] ss:$12 sps:$4 sm:$0xff]   ;;  %v8108_v3 = vld [vmem:[%s12563_s3 + $0x48] ss:$12 sps:$4 sm:$0xff]  }
  0xc7   :  { %7363 = vmatprep.subr.bf16.mxu0 %v8131_v61  ;;  %v8111_v5 = vld [vmem:[%s12563_s3 + $0x60] ss:$12 sps:$4 sm:$0xff]   ;;  %v8116_v6 = vld [vmem:[%s12563_s3 + $0x7c] ss:$12 sps:$4 sm:$0xff]   ;;  %v8114_v7 = vld [vmem:[%s12563_s3 + $0x78] ss:$12 sps:$4 sm:$0xff]  }
  0xc8   :  { %3877 = vmatpush1.bf16.msra.mxu1 %v8102_v56  ;;  %v8119_v8 = vld [vmem:[%s12563_s3 + $0x94] ss:$12 sps:$4 sm:$0xff]   ;;  %v8117_v9 = vld [vmem:[%s12563_s3 + $0x90] ss:$12 sps:$4 sm:$0xff]   ;;  %v8122_v10 = vld [vmem:[%s12563_s3 + $0xac] ss:$12 sps:$4 sm:$0xff]  }
  0xc9   :  { %3878 = vmatprep.subr.bf16.mxu1 %v8107_v57  ;;  %v8120_v11 = vld [vmem:[%s12563_s3 + $0xa8] ss:$12 sps:$4 sm:$0xff]   ;;  %v8125_v12 = vld [vmem:[%s12563_s3 + $0xc4] ss:$12 sps:$4 sm:$0xff]   ;;  %v8123_v13 = vld [vmem:[%s12563_s3 + $0xc0] ss:$12 sps:$4 sm:$0xff]  }
  0xca   :  { %7364 = vmatpush3.bf16.msra.mxu0 %v8132_v63  ;;  %v8130_v14 = vld [vmem:[%s12563_s3 + $0xdc] ss:$12 sps:$4 sm:$0xff]   ;;  %v8128_v15 = vld [vmem:[%s12563_s3 + $0xd8] ss:$12 sps:$4 sm:$0xff]   ;;  %v8135_v16 = vld [vmem:[%s12563_s3 + $0xf4] ss:$12 sps:$4 sm:$0xff]  }
  0xcb   :  { %7365 = vmatprep.subr.bf16.mxu0 %v8136_v2  ;;  %v8133_v19 = vld [vmem:[%s12563_s3 + $0xf0] ss:$12 sps:$4 sm:$0xff]   ;;  %v9420_v46 = vshrl.u32 %v326_v43, 7  ;;  %v8137_v52 = vld [vmem:[%s12563_s3 + $0x38] ss:$12 sps:$4 sm:$0xff]   ;;  %s8886_s25 = smov 104  }
  0xcc   :  { %3879 = vmatpush1.bf16.msra.mxu1 %v8105_v60  ;;  %v8140_v32 = vld [vmem:[%s12563_s3 + $0x10c] ss:$12 sps:$4 sm:$0xff]   ;;  %v8141_v51 = vld [vmem:[%s12563_s3 + $0x110] ss:$12 sps:$4 sm:$0xff]   ;;  %v9446_v56 = vld [vmem:[%s12562_s2] sm:$0x1f] }
  0xcd   :  { %3880 = vmatprep.subr.bf16.mxu1 %v8110_v62  ;;  %12617 = vst [vmem:[#allocation5_spill] sm:$0xff] %v9420_v46  ;;  %v9434_v55 = vsub.s32 1, %v9420_v46  ;;  %v12572_v22 = vsub.s32 2, %v9420_v46  ;;  %v8138_v57 = vld [vmem:[%s12563_s3 + $0x108] ss:$12 sps:$4 sm:$0xff]   ;;  %v9470_v63 = vsub.s32 0, %v9420_v46 }
  0xce   :  { %7366 = vmatpush3.bf16.msra.mxu0 %v8137_v52  ;;  %v8142_v58 = vld [vmem:[%s12563_s3 + $0x50] ss:$12 sps:$4 sm:$0xff]   ;;  %v8146_v62 = vld [vmem:[%s12563_s3 + $0x128] ss:$12 sps:$4 sm:$0xff]   ;;  %v8143_v2 = vld [vmem:[%s12563_s3 + $0x120] ss:$12 sps:$4 sm:$0xff]  }
  0xcf   :  { %12618 = vst [vmem:[#allocation6_spill] sm:$0xff] %v9434_v55  ;;  %7367 = vmatprep.subr.bf16.mxu0 %v8141_v51  ;;  %v9456_v59 = vrot.slane %v9446_v56, %v9434_v55  ;;  %v9461_v60 = vrot.slane %v9446_v56, %v12572_v22  ;;  %v8145_v61 = vld [vmem:[%s12563_s3 + $0x124] ss:$12 sps:$4 sm:$0xff]   ;;  %12619 = vst [vmem:[#allocation7_spill] sm:$0xff] %v9470_v63  ;;  %s8887_s23 = smov 40   ;;  %vm939_vm9 = vcmask 850944  }
  0xd0   :  { %3881 = vmatpush1.bf16.msra.mxu1 %v8108_v3  ;;  %v8147_v3 = vld [vmem:[%s12563_s3 + $0x68] ss:$12 sps:$4 sm:$0xff]   ;;  %v8162_v51 = vld [vmem:[%s12563_s3 + $0xb0] ss:$12 sps:$4 sm:$0xff]   ;;  %s8888_s22 = smov 64   ;;  %vm1036_vm10 = vcmask 326656  }
  0xd1   :  { %3882 = vmatprep.subr.bf16.mxu1 %v8113_v4  ;;  %vm1485_vm11 = vcmask 523264   ;;  %s8889_s27 = smov 96   ;;  %s8890_s14 = smov 32   ;;  %vm4768_vm12 = vcmask 785408   ;;  %vm4817_vm13 = vcmask 261120   ;;  %vm4951_vm14 = vcmask 1041409  }
  0xd2   :  { %7368 = vmatpush3.bf16.msra.mxu0 %v8142_v58  ;;  %vm6726_vm15 = vcmask 1041408   ;;  %s8891_s18 = smov [#allocation2]  }
  0xd3   :  { %7369 = vmatprep.subr.bf16.mxu0 %v8146_v62  ;;  %s6746_s19 = sshll.u32 %s8891_s18, 4  ;;  %s6747_s19 = int_to_ptr.vmem [resolvable:$true] %s6746_s19 }
  0xd4   :  { %3883 = vmatpush1.bf16.msra.mxu1 %v8111_v5  ;;  %p8862_p1 = scmp.lt.s32.totalorder %s6747_s19, %s6747_s19 }
  0xd5   :  { %3884 = vmatprep.subr.bf16.mxu1 %v8116_v6 }
  0xd6   :  { %7370 = vmatpush3.bf16.msra.mxu0 %v8147_v3  ;;  %v8166_v3 = vld [vmem:[%s12563_s3 + $0x248] ss:$12 sps:$4 sm:$0xff]  }
  0xd8   :  { %3885 = vmatpush1.bf16.msra.mxu1 %v8114_v7 }
  0xd9   :  { %3886 = vmatprep.subr.bf16.mxu1 %v8119_v8  ;;  %v8150_v8 = vld [vmem:[%s12563_s3 + $0x13c] ss:$12 sps:$4 sm:$0xff]  }
  0xdc   :  { %3887 = vmatpush1.bf16.msra.mxu1 %v8117_v9  ;;  %v8151_v9 = vld [vmem:[%s12563_s3 + $0x140] ss:$12 sps:$4 sm:$0xff]  }
  0xdd   :  { %3888 = vmatprep.subr.bf16.mxu1 %v8122_v10  ;;  %v9494_v10 = vrot.slane %v9446_v56, %v9470_v63  ;;  %7371 = vmatprep.subr.bf16.mxu0 %v8151_v9 }
  0xe0   :  { %3889 = vmatpush1.bf16.msra.mxu1 %v8120_v11 }
  0xe1   :  { %3890 = vmatprep.subr.bf16.mxu1 %v8125_v12  ;;  %v8148_v12 = vld [vmem:[%s12563_s3 + $0x138] ss:$12 sps:$4 sm:$0xff]  }
  0xe4   :  { %3891 = vmatpush1.bf16.msra.mxu1 %v8123_v13  ;;  %v8152_v13 = vld [vmem:[%s12563_s3 + $0x80] ss:$12 sps:$4 sm:$0xff]  }
  0xe5   :  { %3892 = vmatprep.subr.bf16.mxu1 %v8130_v14  ;;  %7372 = vmatpush3.bf16.msra.mxu0 %v8152_v13  ;;  %v340_v13 = vsub.s32 3, %v9420_v46 }
  0xe8   :  { %3893 = vmatpush1.bf16.msra.mxu1 %v8128_v15 }
  0xe9   :  { %3894 = vmatprep.subr.bf16.mxu1 %v8135_v16 }
  0xec   :  { %3895 = vmatpush1.bf16.msra.mxu1 %v8133_v19 }
  0xed   :  { %3896 = vmatprep.subr.bf16.mxu1 %v8140_v32  ;;  %v8158_v32 = vld [vmem:[%s12563_s3 + $0x168] ss:$12 sps:$4 sm:$0xff]  }
  0xf0   :  { %3897 = vmatpush1.bf16.msra.mxu1 %v8138_v57 }
  0xf1   :  { %3898 = vmatprep.subr.bf16.mxu1 %v8145_v61 }
  0xf4   :  { %3899 = vmatpush1.bf16.msra.mxu1 %v8143_v2 }
  0xf5   :  { %3900 = vmatprep.subr.bf16.mxu1 %v8150_v8 }
  0xf8   :  { %3901 = vmatpush1.bf16.msra.mxu1 %v8148_v12 }
 0x158   :  { %v9379_v17 = vpop.f32.mrb[0].mxu1  ;;  %v9381_v18 = vpop.f32.mrb[0].mxu0 }
 0x159   :  { %v644_v20 = vpop.f32.mrb[1].mxu1  ;;  %v790_v21 = vpop.f32.mrb[1].mxu0 }
 0x15a   :  { %v9386_v23 = vpop.f32.mrb[2].mxu1  ;;  %v9388_v24 = vpop.f32.mrb[2].mxu0  ;;  %v9479_v5 = vadd.f32 %v644_v20, %v9456_v59 }
 0x15b   :  { %v9390_v1 = vpop.f32.mrb[3].mxu1  ;;  %v793_v0 = vpop.f32.mrb[3].mxu0  ;;  %v9515_v20 = vadd.f32 %v9386_v23, %v9494_v10  ;;  %v8157_v23 = vld [vmem:[%s12563_s3 + $0x98] ss:$12 sps:$4 sm:$0xff]  }
 0x15c   :  { %v9504_v14 = vadd.f32 %v9390_v1, %v9456_v59  ;;  %v8155_v1 = vld [vmem:[%s12563_s3 + $0x154] ss:$12 sps:$4 sm:$0xff]   ;;  %v8156_v0 = vld [vmem:[%s12563_s3 + $0x158] ss:$12 sps:$4 sm:$0xff]  }
 0x15d   :  { %3902 = vmatprep.subr.bf16.mxu1 %v8155_v1  ;;  %7373 = vmatprep.subr.bf16.mxu0 %v8156_v0 }
 0x15e   :  { %7374 = vmatpush3.bf16.msra.mxu0 %v8157_v23 }
 0x160   :  { %v9392_v25 = vpop.f32.mrb[4].mxu1  ;;  %v9394_v26 = vpop.f32.mrb[4].mxu0 }
 0x161   :  { %v9396_v27 = vpop.f32.mrb[5].mxu1  ;;  %v798_v28 = vpop.f32.mrb[5].mxu0 }
 0x162   :  { %v9398_v29 = vpop.f32.mrb[6].mxu1  ;;  %v9400_v30 = vpop.f32.mrb[6].mxu0  ;;  %v8153_v28 = vld [vmem:[%s12563_s3 + $0x150] ss:$12 sps:$4 sm:$0xff]  }
 0x163   :  { %v9402_v31 = vpop.f32.mrb[7].mxu1  ;;  %v801_v34 = vpop.f32.mrb[7].mxu0  ;;  %3903 = vmatpush1.bf16.msra.mxu1 %v8153_v28  ;;  %v9612_v28 = vadd.f32 %v9398_v29, %v9494_v10 }
 0x164   :  { %v9534_v34 = vadd.f32 %v9379_v17, %v9494_v10  ;;  %v8160_v17 = vld [vmem:[%s12563_s3 + $0x16c] ss:$12 sps:$4 sm:$0xff]   ;;  %v9564_v57 = vadd.f32 %v9402_v31, %v9456_v59  ;;  %v8165_v31 = vld [vmem:[%s12563_s3 + $0x184] ss:$12 sps:$4 sm:$0xff]  }
 0x165   :  { %3904 = vmatprep.subr.bf16.mxu1 %v8160_v17  ;;  %v341_v17 = vrot.slane %v9446_v56, %v340_v13 }
 0x166   :  { %v9548_v52 = vpack.i.bf16 %v9515_v20, %v9534_v34 }
 0x167   :  { %3905 = vmatpush1.bf16.msra.mxu1 %v8158_v32 }
 0x168   :  { %v9404_v35 = vpop.f32.mrb[8].mxu1  ;;  %v9406_v36 = vpop.f32.mrb[8].mxu0  ;;  %3937 = vmatprep.subr.bf16.mxu1 %v8165_v31 }
 0x169   :  { %v9408_v37 = vpop.f32.mrb[9].mxu1  ;;  %v806_v38 = vpop.f32.mrb[9].mxu0 }
 0x16a   :  { %v9410_v39 = vpop.f32.mrb[10].mxu1  ;;  %v9412_v40 = vpop.f32.mrb[10].mxu0  ;;  %v9589_v9 = vadd.f32 %v9408_v37, %v9456_v59 }
 0x16b   :  { %v9414_v41 = vpop.f32.mrb[11].mxu1  ;;  %v809_v42 = vpop.f32.mrb[11].mxu0 }
 0x16c   :  { %v9539_v42 = vadd.f32 %v9396_v27, %v9456_v59 }
 0x170   :  { %v9416_v44 = vpop.f32.mrb[12].mxu1  ;;  %v9418_v45 = vpop.f32.mrb[12].mxu0 }
 0x171   :  { %v9422_v47 = vpop.f32.mrb[13].mxu1  ;;  %v814_v48 = vpop.f32.mrb[13].mxu0 }
 0x172   :  { %v9424_v49 = vpop.f32.mrb[14].mxu1  ;;  %v9426_v50 = vpop.f32.mrb[14].mxu0  ;;  %v9616_v23 = vadd.f32 %v9422_v47, %v9456_v59 }
 0x173   :  { %v9431_v53 = vpop.f32.mrb[15].mxu1  ;;  %v817_v54 = vpop.f32.mrb[15].mxu0 }
 0x174   :  { %v8161_v54 = vld [vmem:[%s12563_s3 + $0x170] ss:$12 sps:$4 sm:$0xff]  }
 0x175   :  { %7375 = vmatprep.subr.bf16.mxu0 %v8161_v54 }
 0x176   :  { %7376 = vmatpush3.bf16.msra.mxu0 %v8162_v51 }
 0x177   :  { %7395 = vmatprep.subr.bf16.mxu0 %v8166_v3 }
 0x17c   :  { %v715_v4 = vpop.f32.mrb[16].mxu1 }
 0x17d   :  { %v9482_v6 = vadd.f32 %v715_v4, %v9461_v60  ;;  %v9484_v7 = vpop.f32.mrb[17].mxu1  ;;  %v9584_v4 = vadd.f32 %v9392_v25, %v9494_v10 }
 0x17e   :  { %v719_v11 = vpop.f32.mrb[18].mxu1  ;;  %v9649_v31 = vadd.f32 %v9484_v7, %v341_v17 }
 0x17f   :  { %v7786_v15 = vpack.i.bf16 %v9482_v6, %v9479_v5  ;;  %v9509_v16 = vadd.f32 %v719_v11, %v9461_v60  ;;  %v9511_v19 = vpop.f32.mrb[19].mxu1 }
 0x181   :  { %v7791_v21 = vpack.i.bf16 %v9509_v16, %v9504_v14  ;;  %7787 = vrot.lane.b32.xlu0 %v7786_v15, %s8886_s25  ;;  %v9599_v15 = vadd.f32 %v9404_v35, %v9494_v10 }
 0x183   :  { %7792 = vrot.lane.b32.xlu1 %v7791_v21, %s8886_s25  ;;  %v9603_v21 = vadd.f32 %v9414_v41, %v9456_v59  ;;  %v344_v41 = vsub.s32 4, %v9420_v46  ;;  %v9630_v29 = vpack.i.bf16 %v9599_v15, %v9612_v28 }
 0x184   :  { %v725_v38 = vpop.f32.mrb[20].mxu1 }
 0x185   :  { %v9542_v43 = vadd.f32 %v725_v38, %v9461_v60  ;;  %v9544_v48 = vpop.f32.mrb[21].mxu1  ;;  %v9624_v38 = vadd.f32 %v9410_v39, %v9494_v10  ;;  %v345_v51 = vrot.slane %v9446_v56, %v344_v41  ;;  %v9659_v56 = vadd.f32 %v9424_v49, %v9494_v10 }
 0x186   :  { %v729_v27 = vpop.f32.mrb[22].mxu1  ;;  %v9673_v13 = vadd.f32 %v9544_v48, %v341_v17 }
 0x187   :  { %v7801_v58 = vpack.i.bf16 %v9542_v43, %v9539_v42  ;;  %v9569_v61 = vadd.f32 %v729_v27, %v9461_v60  ;;  %v731_v62 = vpop.f32.mrb[23].mxu1  ;;  %7797 = vrot.lane.b32.xlu1 %v9548_v52, %s8886_s25  ;;  %v7826_v54 = vpack.i.bf16 %v9616_v23, %v9624_v38  ;;  %v9636_v27 = vadd.f32 %v9431_v53, %v9456_v59 }
 0x188   :  { %v9668_v7 = vadd.f32 %v9381_v18, %v345_v51  ;;  %v9677_v49 = vadd.f32 %v9388_v24, %v345_v51  ;;  %v9688_v48 = vadd.f32 %v9394_v26, %v345_v51  ;;  %v9706_v26 = vadd.f32 %v9412_v40, %v345_v51 }
 0x189   :  { %v7806_v2 = vpack.i.bf16 %v9569_v61, %v9564_v57  ;;  %7802 = vrot.lane.b32.xlu0 %v7801_v58, %s8886_s25  ;;  %v9722_v40 = vadd.f32 %v9426_v50, %v345_v51 }
 0x18a   :  { %12620 = vst [vmem:[#allocation8_spill] sm:$0xff] %v9668_v7  ;;  %12621 = vst [vmem:[#allocation9_spill] sm:$0xff] %v9677_v49  ;;  %v7851_v18 = vpack.i.bf16 %v9673_v13, %v9677_v49 }
 0x18b   :  { %7807 = vrot.lane.b32.xlu1 %v7806_v2, %s8886_s25  ;;  %v9646_v2 = vadd.f32 %v9416_v44, %v9494_v10  ;;  %12622 = vst [vmem:[#allocation10_spill] sm:$0xff] %v9688_v48  ;;  %12625 = vst [vmem:[#allocation13_spill] sm:$0xff] %v9706_v26 }
 0x18c   :  { %v735_v8 = vpop.f32.mrb[24].mxu1  ;;  %12627 = vst [vmem:[#allocation15_spill] sm:$0xff] %v9722_v40 }
 0x18d   :  { %v9592_v11 = vadd.f32 %v735_v8, %v9461_v60  ;;  %v737_v12 = vpop.f32.mrb[25].mxu1  ;;  %879 = vrot.lane.b32.xlu0 %v9584_v4, %s8886_s25  ;;  %v9662_v8 = vadd.f32 %v9511_v19, %v341_v17  ;;  %v9684_v19 = vadd.f32 %v731_v62, %v341_v17 }
 0x18e   :  { %v739_v25 = vpop.f32.mrb[26].mxu1  ;;  %v9693_v24 = vadd.f32 %v737_v12, %v341_v17 }
 0x18f   :  { %v7811_v37 = vpack.i.bf16 %v9592_v11, %v9589_v9  ;;  %v9608_v1 = vadd.f32 %v739_v25, %v9461_v60  ;;  %v741_v0 = vpop.f32.mrb[27].mxu1  ;;  %v7846_v10 = vpack.i.bf16 %v9662_v8, %v9668_v7  ;;  %v9691_v25 = vadd.f32 %v9400_v30, %v345_v51 }
 0x190   :  { %v9701_v62 = vadd.f32 %v741_v0, %v341_v17 }
 0x191   :  { %v7821_v35 = vpack.i.bf16 %v9608_v1, %v9603_v21  ;;  %7812 = vrot.lane.b32.xlu0 %v7811_v37, %s8886_s25  ;;  %12623 = vst [vmem:[#allocation11_spill] sm:$0xff] %v9691_v25  ;;  %v9697_v37 = vadd.f32 %v9406_v36, %v345_v51  ;;  %v9714_v36 = vadd.f32 %v9418_v45, %v345_v51 }
 0x192   :  { %v7866_v0 = vpack.i.bf16 %v9706_v26, %v9701_v62 }
 0x193   :  { %7822 = vrot.lane.b32.xlu1 %v7821_v35, %s8886_s25  ;;  %12624 = vst [vmem:[#allocation12_spill] sm:$0xff] %v9697_v37  ;;  %v7856_v35 = vpack.i.bf16 %v9691_v25, %v9684_v19  ;;  %v7861_v30 = vpack.i.bf16 %v9697_v37, %v9693_v24  ;;  %12626 = vst [vmem:[#allocation14_spill] sm:$0xff] %v9714_v36 }
 0x194   :  { %v745_v47 = vpop.f32.mrb[28].mxu1 }
 0x195   :  { %v9639_v32 = vadd.f32 %v745_v47, %v9461_v60  ;;  %v747_v39 = vpop.f32.mrb[29].mxu1  ;;  %7817 = vrot.lane.b32.xlu0 %v9630_v29, %s8886_s25 }
 0x196   :  { %v749_v58 = vpop.f32.mrb[30].mxu1  ;;  %v9710_v12 = vadd.f32 %v747_v39, %v341_v17 }
 0x197   :  { %v7831_v53 = vpack.i.bf16 %v9636_v27, %v9639_v32  ;;  %v9654_v59 = vadd.f32 %v749_v58, %v9461_v60  ;;  %v751_v3 = vpop.f32.mrb[31].mxu1  ;;  %7827 = vrot.lane.b32.xlu1 %v7826_v54, %s8886_s25  ;;  %v7836_v60 = vpack.i.bf16 %v9649_v31, %v9659_v56 }
 0x198   :  { %v9718_v41 = vadd.f32 %v751_v3, %v341_v17  ;;  %v7871_v47 = vpack.i.bf16 %v9714_v36, %v9710_v12 }
 0x199   :  { %v7841_v44 = vpack.i.bf16 %v9646_v2, %v9654_v59  ;;  %7832 = vrot.lane.b32.xlu0 %v7831_v53, %s8886_s25 }
 0x19a   :  { %v7876_v54 = vpack.i.bf16 %v9722_v40, %v9718_v41 }
 0x19b   :  { %7842 = vrot.lane.b32.xlu1 %v7841_v44, %s8886_s25 }
 0x19d   :  { %7837 = vrot.lane.b32.xlu0 %v7836_v60, %s8886_s25 }
 0x19f   :  { %7847 = vrot.lane.b32.xlu1 %v7846_v10, %s8886_s25 }
 0x1a1   :  { %7852 = vrot.lane.b32.xlu0 %v7851_v18, %s8886_s25 }
 0x1a3   :  { %887 = vrot.lane.b32.xlu1 %v9688_v48, %s8886_s25 }
 0x1a5   :  { %7857 = vrot.lane.b32.xlu0 %v7856_v35, %s8886_s25 }
 0x1a7   :  { %7862 = vrot.lane.b32.xlu1 %v7861_v30, %s8886_s25 }
 0x1a9   :  { %7867 = vrot.lane.b32.xlu0 %v7866_v0, %s8886_s25 }
 0x1ab   :  { %7872 = vrot.lane.b32.xlu1 %v7871_v47, %s8886_s25 }
 0x1ad   :  { %7877 = vrot.lane.b32.xlu0 %v7876_v54, %s8886_s25 }
 0x1af   :  { %7882 = vrot.lane.b32.xlu1 %v9548_v52, %s8887_s23 }
 0x1b1   :  { %1016 = vrot.lane.b32.xlu0 %v9584_v4, %s8887_s23 }
 0x1f3   :  { %v9735_v45 = vpop.permute.xlu0 %7787 }
 0x1f4   :  { %v12575_v50 = vunpack.i.h.bf16 %v9735_v45  ;;  %v7789_v17 = vunpack.i.l.bf16 %v9735_v45 }
 0x1f5   :  { %v9739_v39 = vpop.permute.xlu1 %7792 }
 0x1f6   :  { %v941_v51 = vsel %vm939_vm9, %v7789_v17, %v12575_v50  ;;  %v12573_v58 = vunpack.i.h.bf16 %v9739_v39  ;;  %v7794_v52 = vunpack.i.l.bf16 %v9739_v39 }
 0x1f7   :  { %v1046_v53 = vmax.f32 %v9479_v5, %v941_v51 }
 0x1f8   :  { %v945_v3 = vsel %vm939_vm9, %v7794_v52, %v12573_v58 }
 0x1f9   :  { %v1051_v44 = vmax.f32 %v9504_v14, %v945_v3  ;;  %v7798_v60 = vpop.permute.xlu1 %7797  ;;  %v1128_v35 = vrot.slane %v1046_v53, 1 }
 0x1fa   :  { %v7800_v10 = vunpack.i.h.bf16 %v7798_v60  ;;  %v7799_v18 = vunpack.i.l.bf16 %v7798_v60 }
 0x1fb   :  { %v1129_v30 = vrot.slane %v1051_v44, 1  ;;  %v9751_v0 = vpop.permute.xlu0 %7802 }
 0x1fc   :  { %v944_v47 = vsel %vm939_vm9, %v7800_v10, %v7794_v52  ;;  %v940_v54 = vsel %vm939_vm9, %v7799_v18, %v7789_v17  ;;  %v12574_v33 = vunpack.i.h.bf16 %v9751_v0  ;;  %v7804_v5 = vunpack.i.l.bf16 %v9751_v0 }
 0x1fd   :  { %v1050_v51 = vmax.f32 %v9515_v20, %v944_v47  ;;  %v1045_v22 = vmax.f32 %v9534_v34, %v940_v54  ;;  %v9759_v14 = vpop.permute.xlu1 %7807  ;;  %v1130_v3 = vsel %vm54_vm0, %v1128_v35, %v1129_v30 }
 0x1fe   :  { %v949_v60 = vsel %vm939_vm9, %v7804_v5, %v12574_v33  ;;  %v12580_v52 = vunpack.i.h.bf16 %v9759_v14  ;;  %v7809_v17 = vunpack.i.l.bf16 %v9759_v14  ;;  %v1236_v47 = vmax.f32 %v1046_v53, %v1130_v3 }
 0x1ff   :  { %v1126_v10 = vrot.slane %v1050_v51, 1  ;;  %v1125_v18 = vrot.slane %v1045_v22, 1  ;;  %v9768_v58 = vmax.f32 %v9539_v42, %v949_v60  ;;  %v880_v20 = vpop.permute.xlu0 %879 }
 0x200   :  { %v953_v34 = vsel %vm939_vm9, %v7809_v17, %v12580_v52  ;;  %v948_v35 = vsel %vm939_vm9, %v880_v20, %v7804_v5  ;;  %v9784_v52 = vmax.f32 %v1236_v47, 0.0 }
 0x201   :  { %v1127_v54 = vsel %vm54_vm0, %v1125_v18, %v1126_v10  ;;  %v1142_v33 = vrot.slane %v9768_v58, 1  ;;  %v1061_v50 = vmax.f32 %v9564_v57, %v953_v34  ;;  %v9778_v55 = vmax.f32 %v9584_v4, %v948_v35 }
 0x202   :  { %v1235_v63 = vmax.f32 %v1045_v22, %v1127_v54  ;;  %12628 = vst [vmem:[#allocation16_spill] sm:$0xff] %v9784_v52 }
 0x203   :  { %v1152_v42 = vrot.slane %v1061_v50, 1  ;;  %v12583_v60 = vrot.slane %v9778_v55, 1  ;;  %v9781_v53 = vpop.permute.xlu0 %7812  ;;  %v1143_v3 = vsel %vm54_vm0, %v1129_v30, %v1142_v33 }
 0x204   :  { %v12582_v5 = vunpack.i.h.bf16 %v9781_v53  ;;  %v7814_v18 = vunpack.i.l.bf16 %v9781_v53  ;;  %v1241_v20 = vmax.f32 %v1051_v44, %v1143_v3  ;;  %v9788_v46 = vmax.f32 %v1235_v63, 0.0 }
 0x205   :  { %v9790_v57 = vmax.f32 %v1061_v50, %v1152_v42  ;;  %v1141_v22 = vsel %vm54_vm0, %v1126_v10, %v12583_v60  ;;  %v9795_v4 = vpop.permute.xlu1 %7822  ;;  %v1358_v3 = vrot.slane %v9784_v52, 2  ;;  %v8167_v60 = vld [vmem:[%s12563_s3 + $0x188] ss:$12 sps:$4 sm:$0xff]  }
 0x206   :  { %12629 = vst [vmem:[#allocation17_spill] sm:$0xff] %v9788_v46  ;;  %v1240_v47 = vmax.f32 %v1050_v51, %v1141_v22  ;;  %v957_v34 = vsel %vm939_vm9, %v7814_v18, %v12582_v5  ;;  %v12585_v44 = vunpack.i.h.bf16 %v9795_v4  ;;  %v7824_v63 = vunpack.i.l.bf16 %v9795_v4 }
 0x207   :  { %v9805_v50 = vmax.f32 %v9589_v9, %v957_v34  ;;  %v7818_v35 = vpop.permute.xlu0 %7817  ;;  %v9807_v54 = vmax.f32 %v1241_v20, 0.0  ;;  %v1355_v20 = vrot.slane %v9788_v46, 2  ;;  %v9821_v34 = vsel %vm54_vm0, %v1142_v33, %v1152_v42 }
 0x208   :  { %v9811_v30 = vmax.f32 %v1240_v47, 0.0  ;;  %v961_v51 = vsel %vm939_vm9, %v7824_v63, %v12585_v44  ;;  %v7820_v22 = vunpack.i.h.bf16 %v7818_v35  ;;  %v7819_v5 = vunpack.i.l.bf16 %v7818_v35  ;;  %v8163_v35 = vld [vmem:[%s12563_s3 + $0x180] ss:$12 sps:$4 sm:$0xff]  }
 0x209   :  { %12630 = vst [vmem:[#allocation18_spill] sm:$0xff] %v9807_v54  ;;  %v7828_v26 = vpop.permute.xlu1 %7827  ;;  %v1647_v9 = vpack.c.bf16 %v9807_v54, %v9784_v52  ;;  %v9824_v47 = vmax.f32 %v9603_v21, %v961_v51  ;;  %v12634_v48 = vrot.slane %v9807_v54, 2 }
 0x20a   :  { %12631 = vst [vmem:[#allocation19_spill] sm:$0xff] %v9811_v30  ;;  %v952_v10 = vsel %vm939_vm9, %v7819_v5, %v7809_v17  ;;  %v956_v44 = vsel %vm939_vm9, %v7820_v22, %v7814_v18  ;;  %v7829_v36 = vunpack.i.l.bf16 %v7828_v26  ;;  %v1646_v42 = vpack.c.bf16 %v9811_v30, %v9788_v46  ;;  %v8170_v5 = vld [vmem:[%s12563_s3 + $0x19c] ss:$12 sps:$4 sm:$0xff]   ;;  %v8171_v18 = vld [vmem:[%s12563_s3 + $0x260] ss:$12 sps:$4 sm:$0xff]  }
 0x20b   :  { %v9836_v33 = vmax.f32 %v9612_v28, %v952_v10  ;;  %v9839_v21 = vmax.f32 %v9599_v15, %v956_v44  ;;  %3906 = vmatprep.mubr.bf16.mxu1 %v1647_v9  ;;  %4347 = vmatprep.mubr.bf16.mxu0 %v1647_v9  ;;  %v9841_v17 = vpop.permute.xlu0 %7832  ;;  %v7830_v22 = vunpack.i.h.bf16 %v7828_v26  ;;  %v8168_v26 = vld [vmem:[%s12563_s3 + $0x198] ss:$12 sps:$4 sm:$0xff]   ;;  %v12632_v46 = vrot.slane %v9811_v30, 2 }
 0x20c   :  { %v960_v28 = vsel %vm939_vm9, %v7829_v36, %v7824_v63  ;;  %v12592_v44 = vunpack.i.l.bf16 %v9841_v17  ;;  %3907 = vmatmul.mubr.bf16.vlgmr.msra.gmra.mrb[32].mxu1 %v1646_v42  ;;  %4348 = vmatmul.mubr.bf16.vlgmr.msra.gmra.mrb[16].mxu0 %v1646_v42  ;;  %v7835_v63 = vunpack.i.h.bf16 %v9841_v17  ;;  %v8172_v42 = vld [vmem:[%s12563_s3 + $0x1a0] ss:$12 sps:$4 sm:$0xff]   ;;  %v1360_v7 = vsel %vm97_vm2, %v1358_v3, %v12634_v48 }
 0x20d   :  { %v12589_v51 = vrot.slane %v9836_v33, 1  ;;  %v9857_v9 = vmax.f32 %v9624_v38, %v960_v28  ;;  %v9859_v37 = vpop.permute.xlu1 %7842  ;;  %3938 = vmatpush1.bf16.msra.mxu1 %v8163_v35  ;;  %7396 = vmatpush3.bf16.msra.mxu0 %v8167_v60  ;;  %v1357_v10 = vsel %vm97_vm2, %v1355_v20, %v12632_v46  ;;  %v8175_v28 = vld [vmem:[%s12563_s3 + $0x1b4] ss:$12 sps:$4 sm:$0xff]  }
 0x20e   :  { %v7845_v15 = vunpack.i.h.bf16 %v9859_v37  ;;  %v965_v60 = vsel %vm939_vm9, %v7830_v22, %v12592_v44  ;;  %3939 = vmatprep.subr.bf16.mxu1 %v8170_v5  ;;  %7397 = vmatprep.subr.bf16.mxu0 %v8171_v18  ;;  %v12633_v25 = vunpack.i.l.bf16 %v9859_v37 }
 0x20f   :  { %v9876_v36 = vmax.f32 %v9836_v33, %v12589_v51  ;;  %v7838_v35 = vpop.permute.xlu0 %7837  ;;  %v8176_v51 = vld [vmem:[%s12563_s3 + $0x278] ss:$12 sps:$4 sm:$0xff]   ;;  %v12598_v52 = vrot.slane %v9857_v9, 1 }
 0x210   :  { %v964_v40 = vsel %vm939_vm9, %v7845_v15, %v7830_v22  ;;  %v969_v44 = vsel %vm939_vm9, %v7835_v63, %v12633_v25  ;;  %v7840_v5 = vunpack.i.h.bf16 %v7838_v35  ;;  %v7839_v18 = vunpack.i.l.bf16 %v7838_v35 }
 0x211   :  { %v9896_v46 = vmax.f32 %v9646_v2, %v964_v40  ;;  %v9899_v20 = vmax.f32 %v9636_v27, %v969_v44  ;;  %v9904_v49 = vpop.permute.xlu1 %7847  ;;  %v12635_v15 = vunpack.i.h.bf16 %v9735_v45  ;;  %v7886_v35 = vpack.i.bf16 %v1360_v7, %v1357_v10  ;;  %3940 = vmatpush1.bf16.msra.mxu1 %v8168_v26  ;;  %7398 = vmatpush3.bf16.msra.mxu0 %v8172_v42  ;;  %v8173_v27 = vld [vmem:[%s12563_s3 + $0x1b0] ss:$12 sps:$4 sm:$0xff]   ;;  %v8177_v7 = vld [vmem:[%s12563_s3 + $0x1b8] ss:$12 sps:$4 sm:$0xff]  }
 0x212   :  { %v968_v22 = vsel %vm939_vm9, %v7839_v18, %v7835_v63  ;;  %v7850_v40 = vunpack.i.h.bf16 %v9904_v49  ;;  %v9915_v44 = vmax.f32 %v9616_v23, %v965_v60  ;;  %3941 = vmatprep.subr.bf16.mxu1 %v8175_v28  ;;  %7399 = vmatprep.subr.bf16.mxu0 %v8176_v51  ;;  %v8180_v23 = vld [vmem:[%s12563_s3 + $0x1cc] ss:$12 sps:$4 sm:$0xff]   ;;  %v12636_v10 = vunpack.i.h.bf16 %v9739_v39  ;;  %v8181_v60 = vld [vmem:[%s12563_s3 + $0x290] ss:$12 sps:$4 sm:$0xff]  }
 0x213   :  { %v942_v25 = vsel %vm939_vm9, %v12635_v15, %v7840_v5  ;;  %v12597_v48 = vrot.slane %v9896_v46, 1  ;;  %v12599_v45 = vrot.slane %v9899_v20, 1  ;;  %v9920_v3 = vmax.f32 %v9659_v56, %v968_v22  ;;  %v9922_v63 = vpop.permute.xlu0 %7852  ;;  %7887 = vrot.lane.b32.xlu1 %v7886_v35, %s8888_s22 }
 0x214   :  { %v946_v26 = vsel %vm939_vm9, %v12636_v10, %v7850_v40  ;;  %v12600_v42 = vunpack.i.l.bf16 %v9904_v49  ;;  %v7855_v28 = vunpack.i.h.bf16 %v9922_v63  ;;  %v12601_v51 = vunpack.i.l.bf16 %v9922_v63 }
 0x215   :  { %v9945_v18 = vsel %vm54_vm0, %v12598_v52, %v12597_v48  ;;  %v9950_v39 = vmax.f32 %v9899_v20, %v12599_v45  ;;  %v9953_v15 = vmax.f32 %v9482_v6, %v942_v25  ;;  %v12602_v22 = vrot.slane %v9920_v3, 1  ;;  %3942 = vmatpush1.bf16.msra.mxu1 %v8173_v27  ;;  %v9968_v6 = vpop.permute.xlu1 %887  ;;  %7400 = vmatpush3.bf16.msra.mxu0 %v8177_v7  ;;  %v8185_v27 = vld [vmem:[%s12563_s3 + $0x1e4] ss:$12 sps:$4 sm:$0xff]  }
 0x216   :  { %v9957_v35 = vmax.f32 %v9509_v16, %v946_v26  ;;  %v943_v10 = vsel %vm939_vm9, %v7840_v5, %v12600_v42  ;;  %v947_v48 = vsel %vm939_vm9, %v7850_v40, %v12601_v51  ;;  %v12637_v52 = vunpack.i.h.bf16 %v9751_v0  ;;  %v8178_v16 = vld [vmem:[%s12563_s3 + $0x1c8] ss:$12 sps:$4 sm:$0xff]   ;;  %3943 = vmatprep.subr.bf16.mxu1 %v8180_v23  ;;  %7401 = vmatprep.subr.bf16.mxu0 %v8181_v60  ;;  %v8183_v60 = vld [vmem:[%s12563_s3 + $0x1e0] ss:$12 sps:$4 sm:$0xff]  }
 0x217   :  { %v9977_v5 = vmax.f32 %v9920_v3, %v12602_v22  ;;  %v9980_v40 = vmax.f32 %v9649_v31, %v943_v10  ;;  %v9983_v0 = vmax.f32 %v9662_v8, %v947_v48  ;;  %7897 = vrot.lane.b32.xlu1 %v9630_v29, %s8887_s23  ;;  %v12638_v31 = vrot.slane %v9824_v47, 1  ;;  %v10004_v23 = vpop.permute.xlu0 %7857 }
 0x218   :  { %v950_v45 = vsel %vm939_vm9, %v12637_v52, %v7855_v28  ;;  %v8182_v52 = vld [vmem:[%s12563_s3 + $0x1d0] ss:$12 sps:$4 sm:$0xff]   ;;  %v12639_v8 = vrot.slane %v9805_v50, 1  ;;  %v1246_v7 = vmax.f32 %v9768_v58, %v9821_v34  ;;  %12640 = vst [vmem:[#allocation20_spill] sm:$0xff] %v10004_v23  ;;  %v1131_v29 = vrot.slane %v9953_v15, 1 }
 0x219   :  { %v9993_v42 = vmax.f32 %v9542_v43, %v950_v45  ;;  %v8186_v43 = vld [vmem:[%s12563_s3 + $0x2a8] ss:$12 sps:$4 sm:$0xff]   ;;  %v1132_v10 = vrot.slane %v9957_v35, 1  ;;  %v951_v34 = vsel %vm939_vm9, %v7855_v28, %v9968_v6  ;;  %3944 = vmatpush1.bf16.msra.mxu1 %v8178_v16  ;;  %7402 = vmatpush3.bf16.msra.mxu0 %v8182_v52  ;;  %v12642_v16 = vrot.slane %v9836_v33, 1 }
 0x21a   :  { %v1165_v48 = vsel %vm54_vm0, %v12639_v8, %v12638_v31  ;;  %v10015_v58 = vmax.f32 %v1246_v7, 0.0  ;;  %v10025_v25 = vmax.f32 %v9673_v13, %v951_v34  ;;  %3945 = vmatprep.subr.bf16.mxu1 %v8185_v27  ;;  %v12644_v34 = vrot.slane %v9857_v9, 1  ;;  %v10043_v27 = vpop.permute.xlu1 %7862  ;;  %7403 = vmatprep.subr.bf16.mxu0 %v8186_v43  ;;  %v8187_v8 = vld [vmem:[%s12563_s3 + $0x1e8] ss:$12 sps:$4 sm:$0xff]  }
 0x21b   :  { %v1256_v51 = vmax.f32 %v9805_v50, %v1165_v48  ;;  %v12604_v50 = vunpack.i.h.bf16 %v10004_v23  ;;  %v7859_v48 = vunpack.i.l.bf16 %v10004_v23  ;;  %v1144_v28 = vrot.slane %v9993_v42, 1  ;;  %1026 = vrot.lane.b32.xlu1 %v9659_v56, %s8887_s23  ;;  %12646 = vst [vmem:[#allocation22_spill] sm:$0xff] %v10043_v27  ;;  %v8190_v56 = vld [vmem:[%s12563_s3 + $0x1fc] ss:$12 sps:$4 sm:$0xff]  }
 0x21c   :  { %12641 = vst [vmem:[#allocation21_spill] sm:$0xff] %v10025_v25  ;;  %v12645_v31 = vrot.slane %v9839_v21, 1 }
 0x21d   :  { %v10022_v45 = vmax.f32 %v1256_v51, 0.0  ;;  %v12643_v51 = vrot.slane %v9778_v55, 1  ;;  %v955_v43 = vsel %vm939_vm9, %v7859_v48, %v12604_v50  ;;  %3946 = vmatpush1.bf16.msra.mxu1 %v8183_v60  ;;  %7404 = vmatpush3.bf16.msra.mxu0 %v8187_v8  ;;  %v12648_v50 = vrot.slane %v9983_v0, 1 }
 0x21e   :  { %v1162_v52 = vsel %vm54_vm0, %v12645_v31, %v12644_v34  ;;  %v8191_v34 = vld [vmem:[%s12563_s3 + $0x2c0] ss:$12 sps:$4 sm:$0xff]   ;;  %v1063_v26 = vmax.f32 %v9684_v19, %v955_v43  ;;  %3947 = vmatprep.subr.bf16.mxu1 %v8190_v56  ;;  %v12651_v43 = vrot.slane %v9807_v54, 2 }
 0x21f   :  { %v1151_v13 = vsel %vm54_vm0, %v12643_v51, %v12642_v16  ;;  %v1661_v33 = vpack.c.bf16 %v10022_v45, %v10015_v58  ;;  %v1146_v16 = vrot.slane %v10025_v25, 1  ;;  %v12647_v51 = vunpack.i.h.bf16 %v9759_v14  ;;  %v8188_v14 = vld [vmem:[%s12563_s3 + $0x1f8] ss:$12 sps:$4 sm:$0xff]   ;;  %7405 = vmatprep.subr.bf16.mxu0 %v8191_v34 }
 0x220   :  { %v1245_v7 = vmax.f32 %v9778_v55, %v1151_v13  ;;  %v1255_v25 = vmax.f32 %v9839_v21, %v1162_v52  ;;  %v8195_v55 = vld [vmem:[%s12563_s3 + $0x214] ss:$12 sps:$4 sm:$0xff]   ;;  %v1156_v60 = vrot.slane %v1063_v26, 1 }
 0x221   :  { %v954_v31 = vsel %vm939_vm9, %v12647_v51, %v7859_v48  ;;  %v10071_v51 = vsel %vm54_vm0, %v1131_v29, %v1132_v10  ;;  %3916 = vmatprep.mubr.bf16.mxu1 %v1661_v33  ;;  %4355 = vmatprep.mubr.bf16.mxu0 %v1661_v33  ;;  %v12606_v48 = vunpack.i.h.bf16 %v10043_v27  ;;  %v8192_v52 = vld [vmem:[%s12563_s3 + $0x200] ss:$12 sps:$4 sm:$0xff]   ;;  %v10089_v33 = vsel %vm54_vm0, %v1132_v10, %v1144_v28 }
 0x222   :  { %v1062_v22 = vmax.f32 %v9569_v61, %v954_v31  ;;  %v7864_v61 = vunpack.i.l.bf16 %v10043_v27  ;;  %v10076_v31 = vpop.permute.xlu0 %7867  ;;  %v10081_v13 = vmax.f32 %v1245_v7, 0.0  ;;  %v10083_v29 = vmax.f32 %v1255_v25, 0.0  ;;  %3948 = vmatpush1.bf16.msra.mxu1 %v8188_v14  ;;  %7406 = vmatpush3.bf16.msra.mxu0 %v8192_v52 }
 0x223   :  { %v10095_v19 = vsel %vm54_vm0, %v12648_v50, %v1146_v16  ;;  %v12649_v7 = vunpack.i.h.bf16 %v9781_v53  ;;  %v12650_v10 = vrot.slane %v10015_v58, 2  ;;  %v8196_v53 = vld [vmem:[%s12563_s3 + $0x2d8] ss:$12 sps:$4 sm:$0xff]   ;;  %v10117_v34 = vmax.f32 %v1063_v26, %v1156_v60  ;;  %3949 = vmatprep.subr.bf16.mxu1 %v8195_v55  ;;  %v10137_v50 = vpop.permute.xlu1 %7872 }
 0x224   :  { %v1154_v21 = vrot.slane %v1062_v22, 1  ;;  %v959_v56 = vsel %vm939_vm9, %v7864_v61, %v12606_v48  ;;  %v10126_v14 = vsel %vm54_vm0, %v1146_v16, %v1156_v60  ;;  %v12652_v26 = vrot.slane %v9915_v44, 1  ;;  %v8197_v55 = vld [vmem:[%s12563_s3 + $0x218] ss:$12 sps:$4 sm:$0xff]   ;;  %7407 = vmatprep.subr.bf16.mxu0 %v8196_v53 }
 0x225   :  { %v958_v25 = vsel %vm939_vm9, %v12649_v7, %v7864_v61  ;;  %v1373_v23 = vsel %vm97_vm2, %v12651_v43, %v12650_v10  ;;  %v1660_v61 = vpack.c.bf16 %v10083_v29, %v10081_v13  ;;  %v12608_v7 = vrot.slane %v10081_v13, 2  ;;  %v8193_v43 = vld [vmem:[%s12563_s3 + $0x210] ss:$12 sps:$4 sm:$0xff]  }
 0x226   :  { %v10100_v8 = vmax.f32 %v1062_v22, %v1154_v21  ;;  %v10115_v22 = vsel %vm54_vm0, %v1144_v28, %v1154_v21  ;;  %v10129_v10 = vmax.f32 %v9592_v11, %v958_v25  ;;  %v7869_v28 = vunpack.i.l.bf16 %v10076_v31  ;;  %v10156_v27 = vpop.permute.xlu0 %7877  ;;  %3950 = vmatpush1.bf16.msra.mxu1 %v8193_v43  ;;  %7408 = vmatpush3.bf16.msra.mxu0 %v8197_v55 }
 0x227   :  { %v12653_v21 = vrot.slane %v9824_v47, 1  ;;  %3917 = vmatmul.mubr.bf16.gmra.mrb[36].mxu1 %v1660_v61  ;;  %4356 = vmatmul.mubr.bf16.gmra.mrb[20].mxu0 %v1660_v61  ;;  %v10144_v11 = vmax.f32 %v9693_v24, %v959_v56  ;;  %v12654_v60 = vrot.slane %v9811_v30, 2  ;;  %v12656_v52 = vrot.slane %v9915_v44, 1  ;;  %v8200_v61 = vld [vmem:[%s12563_s3 + $0x22c] ss:$12 sps:$4 sm:$0xff]  }
 0x228   :  { %v8201_v24 = vld [vmem:[%s12563_s3 + $0x2f0] ss:$12 sps:$4 sm:$0xff]   ;;  %v12657_v16 = vunpack.i.h.bf16 %v9795_v4  ;;  %v8198_v4 = vld [vmem:[%s12563_s3 + $0x228] ss:$12 sps:$4 sm:$0xff]   ;;  %v1166_v53 = vrot.slane %v10129_v10, 1  ;;  %3951 = vmatprep.subr.bf16.mxu1 %v8200_v61 }
 0x229   :  { %v1178_v48 = vsel %vm54_vm0, %v12653_v21, %v12652_v26  ;;  %v1371_v25 = vsel %vm97_vm2, %v12654_v60, %v12608_v7  ;;  %v12655_v26 = vrot.slane %v9899_v20, 1  ;;  %v12658_v20 = vunpack.i.h.bf16 %v10076_v31  ;;  %7409 = vmatprep.subr.bf16.mxu0 %v8201_v24 }
 0x22a   :  { %v7891_v56 = vpack.i.bf16 %v1373_v23, %v1371_v25  ;;  %v962_v60 = vsel %vm939_vm9, %v12657_v16, %v7869_v28  ;;  %v12612_v23 = vunpack.i.h.bf16 %v10137_v50  ;;  %3952 = vmatpush1.bf16.msra.mxu1 %v8198_v4 }
 0x22b   :  { %v1188_v21 = vsel %vm54_vm0, %v12656_v52, %v12655_v26  ;;  %v963_v7 = vsel %vm939_vm9, %v7869_v28, %v12658_v20  ;;  %v1261_v26 = vmax.f32 %v9824_v47, %v1178_v48  ;;  %v10173_v30 = vmax.f32 %v9608_v1, %v962_v60  ;;  %v8203_v60 = vld [vmem:[%s12563_s3 + $0x240] ss:$12 sps:$4 sm:$0xff]  }
 0x22c   :  { %v1266_v54 = vmax.f32 %v9915_v44, %v1188_v21  ;;  %7892 = vrot.lane.b32.xlu0 %v7891_v56, %s8888_s22  ;;  %v10182_v28 = vmax.f32 %v9701_v62, %v963_v7  ;;  %v7874_v47 = vunpack.i.l.bf16 %v10137_v50  ;;  %v12613_v48 = vunpack.i.h.bf16 %v10156_v27  ;;  %v8202_v44 = vld [vmem:[%s12563_s3 + $0x230] ss:$12 sps:$4 sm:$0xff]  }
 0x22d   :  { %v7879_v1 = vunpack.i.l.bf16 %v10156_v27  ;;  %v10191_v43 = vmax.f32 %v1261_v26, 0.0  ;;  %v1260_v62 = vmax.f32 %v9857_v9, %v9945_v18  ;;  %v12659_v7 = vunpack.i.l.bf16 %v9841_v17  ;;  %v8205_v9 = vld [vmem:[%s12563_s3 + $0x244] ss:$12 sps:$4 sm:$0xff]   ;;  %v8254_v17 = vld [vmem:[%s12563_s3 + $0x3c8] ss:$12 sps:$4 sm:$0xff]   ;;  %7410 = vmatpush3.bf16.msra.mxu0 %v8202_v44 }
 0x22e   :  { %v10193_v16 = vmax.f32 %v1266_v54, 0.0  ;;  %v967_v55 = vsel %vm939_vm9, %v7874_v47, %v12612_v23  ;;  %v12660_v21 = vunpack.i.l.bf16 %v9859_v37  ;;  %v1167_v18 = vrot.slane %v10173_v30, 1  ;;  %3953 = vmatprep.subr.bf16.mxu1 %v8205_v9  ;;  %7429 = vmatprep.subr.bf16.mxu0 %v8254_v17 }
 0x22f   :  { %v966_v25 = vsel %vm939_vm9, %v12659_v7, %v7874_v47  ;;  %v971_v54 = vsel %vm939_vm9, %v7879_v1, %v12613_v48  ;;  %v10222_v24 = vmax.f32 %v9710_v12, %v967_v55  ;;  %v12614_v20 = vrot.slane %v10182_v28, 1  ;;  %v8208_v12 = vld [vmem:[%s12563_s3 + $0x25c] ss:$12 sps:$4 sm:$0xff]   ;;  %3954 = vmatpush1.bf16.msra.mxu1 %v8203_v60 }
 0x230   :  { %v970_v56 = vsel %vm939_vm9, %v12660_v21, %v7879_v1  ;;  %v1675_v61 = vpack.c.bf16 %v10193_v16, %v10191_v43  ;;  %v10219_v37 = vmax.f32 %v9639_v32, %v966_v25  ;;  %v12661_v26 = vpack.i.bf16 %v9646_v2, %v9624_v38  ;;  %v7883_v21 = vpop.permute.xlu1 %7882  ;;  %3955 = vmatprep.subr.bf16.mxu1 %v8208_v12  ;;  %v8211_v12 = vld [vmem:[%s12563_s3 + $0x274] ss:$12 sps:$4 sm:$0xff]  }
 0x231   :  { %v1082_v47 = vmax.f32 %v9654_v59, %v970_v56  ;;  %v10234_v32 = vmax.f32 %v9718_v41, %v971_v54  ;;  %v10236_v1 = vmax.f32 %v1260_v62, 0.0  ;;  %v1181_v7 = vrot.slane %v10222_v24, 1  ;;  %v12668_v56 = vld [vmem:[#allocation9_spill] sm:$0xff] }
 0x232   :  { %7902 = vrot.lane.b32.xlu0 %v12661_v26, %s8887_s23  ;;  %3926 = vmatprep.mubr.bf16.mxu1 %v1675_v61  ;;  %v1179_v4 = vrot.slane %v10219_v37, 1  ;;  %v1393_v38 = vrot.slane %v10022_v45, 2  ;;  %v12615_v2 = vrot.slane %v10191_v43, 2  ;;  %v12662_v44 = vrot.slane %v9920_v3, 1  ;;  %v8206_v3 = vld [vmem:[%s12563_s3 + $0x258] ss:$12 sps:$4 sm:$0xff]  }
 0x233   :  { %4363 = vmatprep.mubr.bf16.mxu0 %v1675_v61  ;;  %v1189_v59 = vrot.slane %v1082_v47, 1  ;;  %v1191_v41 = vrot.slane %v10234_v32, 1  ;;  %v1391_v62 = vrot.slane %v10236_v1, 2  ;;  %v12663_v25 = vrot.slane %v9896_v46, 1  ;;  %3956 = vmatpush1.bf16.msra.mxu1 %v8206_v3 }
 0x234   :  { %v10254_v54 = vsel %vm54_vm0, %v1166_v53, %v1167_v18  ;;  %v1390_v61 = vrot.slane %v10083_v29, 2  ;;  %v10262_v23 = vsel %vm54_vm0, %v1167_v18, %v1179_v4  ;;  %v10269_v9 = vsel %vm54_vm0, %v12614_v20, %v1181_v7  ;;  %3957 = vmatprep.subr.bf16.mxu1 %v8211_v12 }
 0x235   :  { %v1186_v55 = vsel %vm54_vm0, %v12663_v25, %v12662_v44  ;;  %v10272_v53 = vsel %vm54_vm0, %v1179_v4, %v1189_v59  ;;  %v7885_v18 = vunpack.i.h.bf16 %v7883_v21  ;;  %v7884_v44 = vunpack.i.l.bf16 %v7883_v21 }
 0x236   :  { %v1265_v26 = vmax.f32 %v9896_v46, %v1186_v55  ;;  %v1395_v46 = vsel %vm97_vm2, %v1393_v38, %v12615_v2  ;;  %v1392_v17 = vsel %vm97_vm2, %v1390_v61, %v1391_v62  ;;  %v10280_v25 = vmax.f32 %v1082_v47, %v1189_v59 }
 0x237   :  { %v10285_v55 = vmax.f32 %v10234_v32, %v1191_v41  ;;  %v7911_v4 = vpack.i.bf16 %v1395_v46, %v1392_v17  ;;  %v12664_v48 = vmax.f32 %v9876_v36, 0.0  ;;  %v12665_v21 = vunpack.i.l.bf16 %v9922_v63  ;;  %v1017_v17 = vpop.permute.xlu0 %1016  ;;  %v12669_v63 = vld [vmem:[#allocation8_spill] sm:$0xff] }
 0x238   :  { %v10278_v60 = vmax.f32 %v1265_v26, 0.0  ;;  %v12666_v59 = vunpack.i.l.bf16 %v9904_v49  ;;  %v12667_v26 = vmax.f32 %v9790_v57, 0.0  ;;  %v12670_v49 = vrot.slane %v10081_v13, 2 }
 0x239   :  { %v1380_v52 = vrot.slane %v12664_v48, 2  ;;  %v1038_v47 = vsel %vm1036_vm10, %v12665_v21, %v7885_v18  ;;  %v8209_v48 = vld [vmem:[%s12563_s3 + $0x270] ss:$12 sps:$4 sm:$0xff]   ;;  %7912 = vrot.lane.b32.xlu1 %v7911_v4, %s8888_s22  ;;  %v12671_v21 = vrot.slane %v9983_v0, 1  ;;  %v12672_v3 = vrot.slane %v9980_v40, 1 }
 0x23a   :  { %v1674_v38 = vpack.c.bf16 %v10278_v60, %v10236_v1  ;;  %v1037_v61 = vsel %vm1036_vm10, %v12666_v59, %v7884_v44  ;;  %v1382_v46 = vrot.slane %v12667_v26, 2  ;;  %v10307_v20 = vmax.f32 %v12668_v56, %v1038_v47  ;;  %v8214_v4 = vld [vmem:[%s12563_s3 + $0x28c] ss:$12 sps:$4 sm:$0xff]   ;;  %3958 = vmatpush1.bf16.msra.mxu1 %v8209_v48 }
 0x23b   :  { %v10310_v18 = vmax.f32 %v12669_v63, %v1037_v61  ;;  %v1381_v44 = vsel %vm97_vm2, %v12670_v49, %v1380_v52  ;;  %v1136_v59 = vsel %vm54_vm0, %v12672_v3, %v12671_v21  ;;  %v12673_v56 = vrot.slane %v10015_v58, 2  ;;  %3959 = vmatprep.subr.bf16.mxu1 %v8214_v4 }
 0x23c   :  { %3927 = vmatmul.mubr.bf16.gmra.mrb[40].mxu1 %v1674_v38  ;;  %4364 = vmatmul.mubr.bf16.gmra.mrb[24].mxu0 %v1674_v38  ;;  %v1238_v61 = vmax.f32 %v9980_v40, %v1136_v59  ;;  %v1243_v52 = vmax.f32 %v9983_v0, %v10095_v19  ;;  %v1405_v26 = vrot.slane %v10278_v60, 2  ;;  %v1138_v63 = vrot.slane %v10307_v20, 1 }
 0x23d   :  { %v1383_v47 = vsel %vm97_vm2, %v12673_v56, %v1382_v46  ;;  %v1137_v49 = vrot.slane %v10310_v18, 1  ;;  %v1039_v3 = vsel %vm1036_vm10, %v9968_v6, %v1017_v17  ;;  %v12674_v46 = vld [vmem:[#allocation10_spill] sm:$0xff]  ;;  %v1407_v0 = vrot.slane %v10193_v16, 2 }
 0x23e   :  { %v7906_v21 = vpack.i.bf16 %v1383_v47, %v1381_v44  ;;  %v10334_v38 = vmax.f32 %v1238_v61, 0.0  ;;  %v10336_v2 = vmax.f32 %v1243_v52, 0.0  ;;  %v10339_v40 = vmax.f32 %v12674_v46, %v1039_v3  ;;  %v8212_v56 = vld [vmem:[%s12563_s3 + $0x288] ss:$12 sps:$4 sm:$0xff]  }
 0x23f   :  { %v10343_v19 = vsel %vm54_vm0, %v1137_v49, %v1138_v63  ;;  %v12675_v44 = vmax.f32 %v9977_v5, 0.0  ;;  %v12676_v6 = vmax.f32 %v9950_v39, 0.0  ;;  %v1406_v17 = vsel %vm97_vm2, %v1391_v62, %v1405_v26  ;;  %3960 = vmatpush1.bf16.msra.mxu1 %v8212_v56 }
 0x240   :  { %7907 = vrot.lane.b32.xlu0 %v7906_v21, %s8888_s22  ;;  %v10359_v48 = vsel %vm54_vm0, %v1181_v7, %v1191_v41  ;;  %v1312_v47 = vmax.f32 %v10280_v25, 0.0  ;;  %v1239_v61 = vmax.f32 %v10310_v18, %v10343_v19  ;;  %v1649_v62 = vpack.c.bf16 %v10336_v2, %v10334_v38  ;;  %v8217_v7 = vld [vmem:[%s12563_s3 + $0x2a4] ss:$12 sps:$4 sm:$0xff]  }
 0x241   :  { %v1415_v59 = vrot.slane %v12675_v44, 2  ;;  %v1417_v12 = vrot.slane %v12676_v6, 2  ;;  %v12616_v52 = vrot.slane %v10339_v40, 1  ;;  %v12677_v32 = vrot.slane %v10191_v43, 2  ;;  %3961 = vmatprep.subr.bf16.mxu1 %v8217_v7 }
 0x242   :  { %v1313_v41 = vmax.f32 %v10285_v55, 0.0  ;;  %3969 = vmatprep.mubr.bf16.mxu1 %v1649_v62  ;;  %4404 = vmatprep.mubr.bf16.mxu0 %v1649_v62  ;;  %v1237_v44 = vmax.f32 %v9953_v15, %v10071_v51  ;;  %v1365_v6 = vrot.slane %v10336_v2, 2  ;;  %v12682_v7 = vmax.f32 %v10117_v34, 0.0  ;;  %v8239_v55 = vld [vmem:[%s12563_s3 + $0x360] ss:$12 sps:$4 sm:$0xff]  }
 0x243   :  { %v1416_v49 = vsel %vm97_vm2, %v1405_v26, %v1415_v59  ;;  %v1418_v4 = vsel %vm97_vm2, %v1407_v0, %v1417_v12  ;;  %v1408_v21 = vsel %vm97_vm2, %v12677_v32, %v1407_v0  ;;  %v10381_v26 = vsel %vm54_vm0, %v1138_v63, %v12616_v52  ;;  %v8215_v12 = vld [vmem:[%s12563_s3 + $0x2a0] ss:$12 sps:$4 sm:$0xff]  }
 0x244   :  { %v7921_v3 = vpack.i.bf16 %v1418_v4, %v1416_v49  ;;  %v7916_v46 = vpack.i.bf16 %v1408_v21, %v1406_v17  ;;  %v1242_v0 = vmax.f32 %v9957_v35, %v10089_v33  ;;  %v1364_v59 = vrot.slane %v10334_v38, 2  ;;  %v12678_v33 = vld [vmem:[#allocation21_spill] sm:$0xff]  ;;  %3962 = vmatpush1.bf16.msra.mxu1 %v8215_v12 }
 0x245   :  { %v10394_v51 = vmax.f32 %v1237_v44, 0.0  ;;  %v1247_v35 = vmax.f32 %v9993_v42, %v10115_v22  ;;  %v1248_v63 = vmax.f32 %v12678_v33, %v10126_v14  ;;  %v8220_v17 = vld [vmem:[%s12563_s3 + $0x2bc] ss:$12 sps:$4 sm:$0xff]   ;;  %v12679_v49 = vrot.slane %v10182_v28, 1 }
 0x246   :  { %7922 = vrot.lane.b32.xlu1 %v7921_v3, %s8888_s22  ;;  %7917 = vrot.lane.b32.xlu0 %v7916_v46, %s8888_s22  ;;  %v10403_v56 = vmax.f32 %v1242_v0, 0.0  ;;  %v1366_v62 = vsel %vm97_vm2, %v1364_v59, %v1365_v6  ;;  %v12680_v4 = vrot.slane %v10144_v11, 1  ;;  %v12681_v21 = vmax.f32 %v10100_v8, 0.0  ;;  %v8255_v44 = vld [vmem:[%s12563_s3 + $0x308] ss:$12 sps:$4 sm:$0xff]  }
 0x247   :  { %v1361_v22 = vrot.slane %v10394_v51, 2  ;;  %v10414_v14 = vmax.f32 %v1247_v35, 0.0  ;;  %v10416_v3 = vmax.f32 %v1248_v63, 0.0  ;;  %v1386_v33 = vrot.slane %v12682_v7, 2  ;;  %v8259_v63 = vld [vmem:[%s12563_s3 + $0x3e0] ss:$12 sps:$4 sm:$0xff]   ;;  %3963 = vmatprep.subr.bf16.mxu1 %v8220_v17 }
 0x248   :  { %v1171_v32 = vsel %vm54_vm0, %v12680_v4, %v12679_v49  ;;  %v1384_v42 = vrot.slane %v12681_v21, 2  ;;  %v1362_v0 = vrot.slane %v10403_v56, 2  ;;  %v10425_v59 = vpack.c.bf16 %v10403_v56, %v10394_v51 }
 0x249   :  { %v1258_v46 = vmax.f32 %v10144_v11, %v1171_v32  ;;  %v1257_v35 = vmax.f32 %v10129_v10, %v10254_v54  ;;  %v8218_v11 = vld [vmem:[%s12563_s3 + $0x2b8] ss:$12 sps:$4 sm:$0xff]   ;;  %v1374_v49 = vrot.slane %v10414_v14, 2  ;;  %v1376_v4 = vrot.slane %v10416_v3, 2 }
 0x24a   :  { %v1262_v21 = vmax.f32 %v10173_v30, %v10262_v23  ;;  %v1363_v10 = vsel %vm97_vm2, %v1361_v22, %v1362_v0  ;;  %4405 = vmatmul.mubr.bf16.vlgmr.msra.gmra.mrb[28].mxu0 %v10425_v59  ;;  %v1263_v54 = vmax.f32 %v10182_v28, %v10269_v9  ;;  %v1267_v7 = vmax.f32 %v10219_v37, %v10272_v53  ;;  %v8260_v28 = vld [vmem:[%s12563_s3 + $0x320] ss:$12 sps:$4 sm:$0xff]  }
 0x24b   :  { %v10439_v32 = vmax.f32 %v1258_v46, 0.0  ;;  %v10447_v12 = vmax.f32 %v1257_v35, 0.0  ;;  %v8223_v46 = vld [vmem:[%s12563_s3 + $0x2d4] ss:$12 sps:$4 sm:$0xff]   ;;  %v7926_v52 = vpack.i.bf16 %v1366_v62, %v1363_v10  ;;  %v1375_v30 = vsel %vm97_vm2, %v1362_v0, %v1374_v49  ;;  %7430 = vmatpush3.bf16.msra.mxu0 %v8255_v44  ;;  %3964 = vmatpush1.bf16.msra.mxu1 %v8218_v11  ;;  %v8264_v62 = vld [vmem:[%s12563_s3 + $0x3f8] ss:$12 sps:$4 sm:$0xff]  }
 0x24c   :  { %v1377_v23 = vsel %vm97_vm2, %v1365_v6, %v1376_v4  ;;  %v1385_v37 = vsel %vm97_vm2, %v1374_v49, %v1384_v42  ;;  %v1387_v53 = vsel %vm97_vm2, %v1376_v4, %v1386_v33  ;;  %v10465_v22 = vmax.f32 %v1262_v21, 0.0  ;;  %v8221_v6 = vld [vmem:[%s12563_s3 + $0x2d0] ss:$12 sps:$4 sm:$0xff]   ;;  %7431 = vmatprep.subr.bf16.mxu0 %v8259_v63  ;;  %v8226_v35 = vld [vmem:[%s12563_s3 + $0x2ec] ss:$12 sps:$4 sm:$0xff]   ;;  %3965 = vmatprep.subr.bf16.mxu1 %v8223_v46 }
 0x24d   :  { %v10458_v17 = vpack.c.bf16 %v10439_v32, %v10416_v3  ;;  %v7931_v9 = vpack.i.bf16 %v1377_v23, %v1375_v30  ;;  %v1549_v44 = vrot.slane %v10334_v38, 4  ;;  %v1550_v0 = vrot.slane %v10336_v2, 4  ;;  %7927 = vrot.lane.b32.xlu0 %v7926_v52, %s8888_s22  ;;  %v8224_v30 = vld [vmem:[%s12563_s3 + $0x2e8] ss:$12 sps:$4 sm:$0xff]   ;;  %v8290_v2 = vld [vmem:[%s12563_s3 + $0x3b0] ss:$12 sps:$4 sm:$0xff]  }
 0x24e   :  { %v7936_v42 = vpack.i.bf16 %v1387_v53, %v1385_v37  ;;  %v10477_v33 = vmax.f32 %v1263_v54, 0.0  ;;  %v1396_v11 = vrot.slane %v10447_v12, 2  ;;  %v1397_v63 = vrot.slane %v10465_v22, 2  ;;  %v8265_v54 = vld [vmem:[%s12563_s3 + $0x338] ss:$12 sps:$4 sm:$0xff]  }
 0x24f   :  { %4412 = vmatprep.mubr.bf16.mxu0 %v10458_v17  ;;  %7932 = vrot.lane.b32.xlu1 %v7931_v9, %s8888_s22  ;;  %v1268_v38 = vmax.f32 %v10222_v24, %v10359_v48  ;;  %v10487_v49 = vmax.f32 %v1267_v7, 0.0  ;;  %v1399_v52 = vrot.slane %v10439_v32, 2  ;;  %v10493_v21 = vpack.c.bf16 %v10447_v12, %v10414_v14  ;;  %v12683_v9 = vld [vmem:[#allocation18_spill] sm:$0xff]  ;;  %v12685_v53 = vld [vmem:[#allocation16_spill] sm:$0xff] }
 0x250   :  { %v1400_v4 = vrot.slane %v10477_v33, 2  ;;  %v1419_v10 = vrot.slane %v1312_v47, 2  ;;  %7432 = vmatpush3.bf16.msra.mxu0 %v8260_v28  ;;  %v1398_v24 = vsel %vm97_vm2, %v1396_v11, %v1397_v63  ;;  %v1421_v46 = vrot.slane %v1313_v41, 2  ;;  %3966 = vmatpush1.bf16.msra.mxu1 %v8221_v6  ;;  %v8229_v28 = vld [vmem:[%s12563_s3 + $0x304] ss:$12 sps:$4 sm:$0xff]  }
 0x251   :  { %v10501_v48 = vmax.f32 %v1268_v38, 0.0  ;;  %v1409_v7 = vrot.slane %v10487_v49, 2  ;;  %7433 = vmatprep.subr.bf16.mxu0 %v8264_v62  ;;  %7937 = vrot.lane.b32.xlu0 %v7936_v42, %s8888_s22  ;;  %v12684_v37 = vrot.slane %v12683_v9, 4  ;;  %v12686_v11 = vrot.slane %v12685_v53, 4  ;;  %v8269_v42 = vld [vmem:[%s12563_s3 + $0x410] ss:$12 sps:$4 sm:$0xff]  }
 0x252   :  { %v1401_v23 = vsel %vm97_vm2, %v1399_v52, %v1400_v4  ;;  %3967 = vmatprep.subr.bf16.mxu1 %v8226_v35  ;;  %4413 = vmatmul.mubr.bf16.gmra.mrb[32].mxu0 %v10493_v21 }
 0x253   :  { %v1545_v6 = vsel %vm183_vm3, %v12686_v11, %v12684_v37  ;;  %v7941_v38 = vpack.i.bf16 %v1401_v23, %v1398_v24  ;;  %v1410_v15 = vsel %vm97_vm2, %v1397_v63, %v1409_v7  ;;  %v1411_v62 = vrot.slane %v10501_v48, 2 }
 0x254   :  { %v1420_v35 = vsel %vm97_vm2, %v1409_v7, %v1419_v10  ;;  %v10528_v52 = vpack.c.bf16 %v10501_v48, %v10477_v33  ;;  %7434 = vmatpush3.bf16.msra.mxu0 %v8265_v54  ;;  %v12687_v37 = vrot.slane %v10015_v58, 4  ;;  %v12688_v24 = vrot.slane %v12683_v9, 4  ;;  %3968 = vmatpush1.bf16.msra.mxu1 %v8224_v30  ;;  %v8227_v54 = vld [vmem:[%s12563_s3 + $0x300] ss:$12 sps:$4 sm:$0xff]  }
 0x255   :  { %v10538_v23 = vsel %vm183_vm3, %v1549_v44, %v1550_v0  ;;  %7942 = vrot.lane.b32.xlu1 %v7941_v38, %s8888_s22  ;;  %v1412_v10 = vsel %vm97_vm2, %v1400_v4, %v1411_v62  ;;  %v1422_v7 = vsel %vm97_vm2, %v1411_v62, %v1421_v46  ;;  %4000 = vmatprep.subr.bf16.mxu1 %v8229_v28  ;;  %v8270_v44 = vld [vmem:[%s12563_s3 + $0x350] ss:$12 sps:$4 sm:$0xff]   ;;  %v1555_v9 = vrot.slane %v10081_v13, 4 }
 0x256   :  { %v1558_v63 = vsel %vm183_vm3, %v12688_v24, %v12687_v37  ;;  %v7946_v53 = vpack.i.bf16 %v1412_v10, %v1410_v15  ;;  %4420 = vmatprep.mubr.bf16.mxu0 %v10528_v52  ;;  %v12689_v11 = vmax.f32 %v9876_v36, 0.0  ;;  %v7951_v38 = vpack.i.bf16 %v1422_v7, %v1420_v35  ;;  %v8232_v15 = vld [vmem:[%s12563_s3 + $0x31c] ss:$12 sps:$4 sm:$0xff]   ;;  %7435 = vmatprep.subr.bf16.mxu0 %v8269_v42  ;;  %v8230_v24 = vld [vmem:[%s12563_s3 + $0x318] ss:$12 sps:$4 sm:$0xff]  }
 0x257   :  { %v1575_v46 = vrot.slane %v10083_v29, 4  ;;  %v1576_v30 = vrot.slane %v10236_v1, 4  ;;  %v1590_v28 = vrot.slane %v10278_v60, 4  ;;  %v10562_v62 = vpack.c.bf16 %v10487_v49, %v10465_v22  ;;  %3970 = vmatmul.mubr.bf16.vlgmr.msra.gmra.mrb[32].mxu1 %v10425_v59  ;;  %v8274_v36 = vld [vmem:[%s12563_s3 + $0x428] ss:$12 sps:$4 sm:$0xff]  }
 0x258   :  { %v1565_v4 = vrot.slane %v12689_v11, 4  ;;  %7947 = vrot.lane.b32.xlu0 %v7946_v53, %s8888_s22  ;;  %v12690_v1 = vmax.f32 %v9977_v5, 0.0  ;;  %3979 = vmatprep.mubr.bf16.mxu1 %v10458_v17  ;;  %v1546_v59 = vrot.slane %v10394_v51, 4  ;;  %v1547_v37 = vrot.slane %v10403_v56, 4  ;;  %v8275_v5 = vld [vmem:[%s12563_s3 + $0x368] ss:$12 sps:$4 sm:$0xff]  }
 0x259   :  { %7952 = vrot.lane.b32.xlu1 %v7951_v38, %s8888_s22  ;;  %v1577_v60 = vsel %vm183_vm3, %v1575_v46, %v1576_v30  ;;  %v1591_v35 = vsel %vm183_vm3, %v1576_v30, %v1590_v28  ;;  %4001 = vmatpush1.bf16.msra.mxu1 %v8227_v54  ;;  %v1559_v7 = vrot.slane %v10414_v14, 4  ;;  %v10589_v53 = vpack.c.bf16 %v1558_v63, %v1545_v6  ;;  %v8235_v51 = vld [vmem:[%s12563_s3 + $0x334] ss:$12 sps:$4 sm:$0xff]   ;;  %v8348_v13 = vld [vmem:[%s12563_s3 + $0x5bc] ss:$12 sps:$4 sm:$0xff]  }
 0x25a   :  { %v1566_v29 = vsel %vm183_vm3, %v1555_v9, %v1565_v4  ;;  %v1600_v42 = vrot.slane %v12690_v1, 4  ;;  %7436 = vmatpush3.bf16.msra.mxu0 %v8270_v44  ;;  %4002 = vmatprep.subr.bf16.mxu1 %v8232_v15  ;;  %v8279_v56 = vld [vmem:[%s12563_s3 + $0x440] ss:$12 sps:$4 sm:$0xff]   ;;  %v1548_v44 = vsel %vm183_vm3, %v1546_v59, %v1547_v37  ;;  %v12691_v11 = vmax.f32 %v10100_v8, 0.0  ;;  %v8233_v8 = vld [vmem:[%s12563_s3 + $0x330] ss:$12 sps:$4 sm:$0xff]  }
 0x25b   :  { %v10585_v10 = vpack.c.bf16 %v1577_v60, %v1566_v29  ;;  %4421 = vmatmul.mubr.bf16.gmra.mrb[36].mxu0 %v10562_v62  ;;  %7437 = vmatprep.subr.bf16.mxu0 %v8274_v36  ;;  %v1560_v6 = vsel %vm183_vm3, %v1547_v37, %v1559_v7  ;;  %v1581_v63 = vrot.slane %v10447_v12, 4  ;;  %v1582_v4 = vrot.slane %v10465_v22, 4  ;;  %v8280_v12 = vld [vmem:[%s12563_s3 + $0x380] ss:$12 sps:$4 sm:$0xff]  }
 0x25c   :  { %v1601_v17 = vsel %vm183_vm3, %v1590_v28, %v1600_v42  ;;  %v1569_v14 = vrot.slane %v12691_v11, 4  ;;  %v12692_v38 = vmax.f32 %v9790_v57, 0.0  ;;  %v10608_v46 = vpack.c.bf16 %v1560_v6, %v1548_v44  ;;  %v8238_v1 = vld [vmem:[%s12563_s3 + $0x34c] ss:$12 sps:$4 sm:$0xff]   ;;  %v8289_v44 = vld [vmem:[%s12563_s3 + $0x470] ss:$12 sps:$4 sm:$0xff]  }
 0x25d   :  { %v10598_v54 = vpack.c.bf16 %v1601_v17, %v1591_v35  ;;  %v1578_v28 = vrot.slane %v10022_v45, 4  ;;  %v1579_v29 = vrot.slane %v10191_v43, 4  ;;  %4003 = vmatpush1.bf16.msra.mxu1 %v8230_v24  ;;  %v1583_v57 = vsel %vm183_vm3, %v1581_v63, %v1582_v4  ;;  %v8284_v42 = vld [vmem:[%s12563_s3 + $0x458] ss:$12 sps:$4 sm:$0xff]   ;;  %v8236_v24 = vld [vmem:[%s12563_s3 + $0x348] ss:$12 sps:$4 sm:$0xff]  }
 0x25e   :  { %v1567_v15 = vrot.slane %v12692_v38, 4  ;;  %v1570_v30 = vsel %vm183_vm3, %v1559_v7, %v1569_v14  ;;  %7438 = vmatpush3.bf16.msra.mxu0 %v8275_v5  ;;  %v12693_v22 = vrot.slane %v10015_v58, 4  ;;  %v1594_v45 = vrot.slane %v10487_v49, 4  ;;  %4004 = vmatprep.subr.bf16.mxu1 %v8235_v51 }
 0x25f   :  { %v1604_v43 = vrot.slane %v1312_v47, 4  ;;  %7439 = vmatprep.subr.bf16.mxu0 %v8279_v56  ;;  %v10632_v60 = vpack.c.bf16 %v1583_v57, %v1570_v30  ;;  %v1580_v58 = vsel %vm183_vm3, %v1578_v28, %v1579_v29  ;;  %v1592_v35 = vrot.slane %v10193_v16, 4  ;;  %3980 = vmatmul.mubr.bf16.gmra.mrb[36].mxu1 %v10493_v21  ;;  %v8241_v21 = vld [vmem:[%s12563_s3 + $0x364] ss:$12 sps:$4 sm:$0xff]   ;;  %v8247_v30 = vld [vmem:[%s12563_s3 + $0x394] ss:$12 sps:$4 sm:$0xff]  }
 0x260   :  { %v1568_v36 = vsel %vm183_vm3, %v12693_v22, %v1567_v15  ;;  %v12694_v49 = vmax.f32 %v9950_v39, 0.0  ;;  %v1595_v59 = vsel %vm183_vm3, %v1582_v4, %v1594_v45  ;;  %3989 = vmatprep.mubr.bf16.mxu1 %v10528_v52  ;;  %v8285_v52 = vld [vmem:[%s12563_s3 + $0x398] ss:$12 sps:$4 sm:$0xff]   ;;  %v1561_v7 = vrot.slane %v10416_v3, 4  ;;  %v8245_v28 = vld [vmem:[%s12563_s3 + $0x390] ss:$12 sps:$4 sm:$0xff]  }
 0x261   :  { %v10639_v47 = vpack.c.bf16 %v1580_v58, %v1568_v36  ;;  %v1605_v37 = vsel %vm183_vm3, %v1594_v45, %v1604_v43  ;;  %v1593_v16 = vsel %vm183_vm3, %v1579_v29, %v1592_v35  ;;  %4005 = vmatpush1.bf16.msra.mxu1 %v8233_v8  ;;  %v12695_v51 = vmax.f32 %v10117_v34, 0.0  ;;  %v8242_v15 = vld [vmem:[%s12563_s3 + $0x378] ss:$12 sps:$4 sm:$0xff]   ;;  %v8248_v29 = vld [vmem:[%s12563_s3 + $0x3a8] ss:$12 sps:$4 sm:$0xff]  }
 0x262   :  { %v1602_v25 = vrot.slane %v12694_v49, 4  ;;  %v10647_v5 = vpack.c.bf16 %v1605_v37, %v1595_v59  ;;  %7440 = vmatpush3.bf16.msra.mxu0 %v8280_v12  ;;  %4006 = vmatprep.subr.bf16.mxu1 %v8238_v1  ;;  %v1584_v11 = vrot.slane %v10439_v32, 4  ;;  %v1585_v14 = vrot.slane %v10477_v33, 4  ;;  %v8253_v8 = vld [vmem:[%s12563_s3 + $0x3c4] ss:$12 sps:$4 sm:$0xff]  }
 0x263   :  { %v1571_v56 = vrot.slane %v12695_v51, 4  ;;  %7441 = vmatprep.subr.bf16.mxu0 %v8284_v42  ;;  %v1596_v6 = vrot.slane %v10501_v48, 4  ;;  %v1606_v63 = vrot.slane %v1313_v41, 4  ;;  %v1562_v34 = vsel %vm183_vm3, %v1550_v0, %v1561_v7  ;;  %v8244_v48 = vld [vmem:[%s12563_s3 + $0x37c] ss:$12 sps:$4 sm:$0xff]  }
 0x264   :  { %v1603_v39 = vsel %vm183_vm3, %v1592_v35, %v1602_v25  ;;  %v10675_v4 = vpack.c.bf16 %v1562_v34, %v10538_v23  ;;  %v1586_v38 = vsel %vm183_vm3, %v1584_v11, %v1585_v14  ;;  %v8294_v23 = vld [vmem:[%s12563_s3 + $0x548] ss:$12 sps:$4 sm:$0xff]   ;;  %v8251_v12 = vld [vmem:[%s12563_s3 + $0x3c0] ss:$12 sps:$4 sm:$0xff]   ;;  %v8256_v22 = vld [vmem:[%s12563_s3 + $0x3d8] ss:$12 sps:$4 sm:$0xff]  }
 0x265   :  { %v10657_v17 = vpack.c.bf16 %v1603_v39, %v1593_v16  ;;  %v1572_v3 = vsel %vm183_vm3, %v1561_v7, %v1571_v56  ;;  %v1597_v32 = vsel %vm183_vm3, %v1585_v14, %v1596_v6  ;;  %v1607_v33 = vsel %vm183_vm3, %v1596_v6, %v1606_v63  ;;  %4007 = vmatpush1.bf16.msra.mxu1 %v8236_v24  ;;  %v8258_v57 = vld [vmem:[%s12563_s3 + $0x3dc] ss:$12 sps:$4 sm:$0xff]   ;;  %v8263_v36 = vld [vmem:[%s12563_s3 + $0x3f4] ss:$12 sps:$4 sm:$0xff]   ;;  %v8268_v43 = vld [vmem:[%s12563_s3 + $0x40c] ss:$12 sps:$4 sm:$0xff]  }
 0x266   :  { %7442 = vmatpush3.bf16.msra.mxu0 %v8285_v52  ;;  %v10686_v41 = vpack.c.bf16 %v1586_v38, %v1572_v3  ;;  %v10688_v0 = vpack.c.bf16 %v1607_v33, %v1597_v32  ;;  %4008 = vmatprep.subr.bf16.mxu1 %v8241_v21  ;;  %v8261_v45 = vld [vmem:[%s12563_s3 + $0x3f0] ss:$12 sps:$4 sm:$0xff]   ;;  %v8266_v1 = vld [vmem:[%s12563_s3 + $0x408] ss:$12 sps:$4 sm:$0xff]   ;;  %v8271_v58 = vld [vmem:[%s12563_s3 + $0x420] ss:$12 sps:$4 sm:$0xff]   ;;  %v12699_v63 = vmax.f32 %v10307_v20, %v10381_v26  ;;  %v12701_v26 = vunpack.i.h.bf16 %v10156_v27 }
 0x267   :  { %7443 = vmatprep.subr.bf16.mxu0 %v8289_v44  ;;  %3990 = vmatmul.mubr.bf16.gmra.mrb[40].mxu1 %v10562_v62  ;;  %v8250_v62 = vld [vmem:[%s12563_s3 + $0x3ac] ss:$12 sps:$4 sm:$0xff]   ;;  %v8273_v42 = vld [vmem:[%s12563_s3 + $0x424] ss:$12 sps:$4 sm:$0xff]   ;;  %v8278_v35 = vld [vmem:[%s12563_s3 + $0x43c] ss:$12 sps:$4 sm:$0xff]  }
 0x268   :  { %v8276_v49 = vld [vmem:[%s12563_s3 + $0x438] ss:$12 sps:$4 sm:$0xff]   ;;  %v8283_v25 = vld [vmem:[%s12563_s3 + $0x454] ss:$12 sps:$4 sm:$0xff]   ;;  %v8281_v59 = vld [vmem:[%s12563_s3 + $0x450] ss:$12 sps:$4 sm:$0xff]  }
 0x269   :  { %4009 = vmatpush1.bf16.msra.mxu1 %v8239_v55  ;;  %v8288_v24 = vld [vmem:[%s12563_s3 + $0x46c] ss:$12 sps:$4 sm:$0xff]   ;;  %v8286_v16 = vld [vmem:[%s12563_s3 + $0x468] ss:$12 sps:$4 sm:$0xff]   ;;  %v8293_v21 = vld [vmem:[%s12563_s3 + $0x484] ss:$12 sps:$4 sm:$0xff]  }
 0x26a   :  { %7444 = vmatpush3.bf16.msra.mxu0 %v8290_v2  ;;  %4010 = vmatprep.subr.bf16.mxu1 %v8244_v48  ;;  %v12696_v7 = vld [vmem:[#allocation20_spill] sm:$0xff]  ;;  %v12698_v44 = vld [vmem:[#allocation11_spill] sm:$0xff]  ;;  %v1279_v14 = vmax.f32 %v1239_v61, 0.0  ;;  %v1284_v34 = vmax.f32 %v12699_v63, 0.0  ;;  %v12700_v3 = vrot.slane %v10339_v40, 1 }
 0x26b   :  { %7463 = vmatprep.subr.bf16.mxu0 %v8294_v23  ;;  %v12697_v51 = vunpack.i.h.bf16 %v12696_v7  ;;  %v8298_v63 = vld [vmem:[%s12563_s3 + $0x49c] ss:$12 sps:$4 sm:$0xff]  }
 0x26c   :  { %v1367_v55 = vrot.slane %v1279_v14, 2  ;;  %v1368_v23 = vrot.slane %v1284_v34, 2  ;;  %v1552_v18 = vrot.slane %v1279_v14, 4  ;;  %v1553_v19 = vrot.slane %v1284_v34, 4 }
 0x26d   :  { %4011 = vmatpush1.bf16.msra.mxu1 %v8242_v15 }
 0x26e   :  { %4012 = vmatprep.subr.bf16.mxu1 %v8247_v30 }
 0x271   :  { %4013 = vmatpush1.bf16.msra.mxu1 %v8245_v28 }
 0x272   :  { %4014 = vmatprep.subr.bf16.mxu1 %v8250_v62 }
 0x275   :  { %4015 = vmatpush1.bf16.msra.mxu1 %v8248_v29  ;;  %v1369_v29 = vsel %vm97_vm2, %v1367_v55, %v1368_v23 }
 0x276   :  { %4016 = vmatprep.subr.bf16.mxu1 %v8253_v8  ;;  %v1554_v8 = vsel %vm183_vm3, %v1552_v18, %v1553_v19 }
 0x279   :  { %4017 = vmatpush1.bf16.msra.mxu1 %v8251_v12 }
 0x27a   :  { %4018 = vmatprep.subr.bf16.mxu1 %v8258_v57 }
 0x27d   :  { %4019 = vmatpush1.bf16.msra.mxu1 %v8256_v22 }
 0x27e   :  { %4020 = vmatprep.subr.bf16.mxu1 %v8263_v36  ;;  %v12702_v36 = vld [vmem:[#allocation15_spill] sm:$0xff] }
 0x281   :  { %4021 = vmatpush1.bf16.msra.mxu1 %v8261_v45 }
 0x282   :  { %4022 = vmatprep.subr.bf16.mxu1 %v8268_v43 }
 0x285   :  { %4023 = vmatpush1.bf16.msra.mxu1 %v8266_v1  ;;  %v10754_v37 = vpop.permute.xlu1 %7887 }
 0x286   :  { %4024 = vmatprep.subr.bf16.mxu1 %v8273_v42  ;;  %v7890_v28 = vunpack.i.h.bf16 %v10754_v37  ;;  %v7889_v62 = vunpack.i.l.bf16 %v10754_v37  ;;  %v8331_v37 = vld [vmem:[%s12563_s3 + $0x540] ss:$12 sps:$4 sm:$0xff]  }
 0x289   :  { %4025 = vmatpush1.bf16.msra.mxu1 %v8271_v58  ;;  %v7898_v39 = vpop.permute.xlu1 %7897 }
 0x28a   :  { %4026 = vmatprep.subr.bf16.mxu1 %v8278_v35  ;;  %v7899_v52 = vunpack.i.l.bf16 %v7898_v39  ;;  %v7900_v12 = vunpack.i.h.bf16 %v7898_v39  ;;  %v1486_v39 = vsel %vm1485_vm11, %v7889_v62, %v7890_v28 }
 0x28c   :  { %v1040_v56 = vsel %vm1036_vm10, %v12697_v51, %v7899_v52 }
 0x28d   :  { %4027 = vmatpush1.bf16.msra.mxu1 %v8276_v49  ;;  %v1064_v11 = vmax.f32 %v12698_v44, %v1040_v56  ;;  %v1027_v48 = vpop.permute.xlu1 %1026  ;;  %v1640_v49 = vsel %vm1485_vm11, %v1279_v14, %v7889_v62  ;;  %v8291_v56 = vld [vmem:[%s12563_s3 + $0x480] ss:$12 sps:$4 sm:$0xff]   ;;  %v8304_v62 = vld [vmem:[%s12563_s3 + $0x578] ss:$12 sps:$4 sm:$0xff]  }
 0x28e   :  { %4028 = vmatprep.subr.bf16.mxu1 %v8283_v25  ;;  %v1044_v15 = vsel %vm1036_vm10, %v12701_v26, %v1027_v48  ;;  %v12703_v25 = vld [vmem:[#allocation22_spill] sm:$0xff]  ;;  %v12707_v48 = vunpack.i.h.bf16 %v10076_v31  ;;  %v12709_v26 = vld [vmem:[#allocation13_spill] sm:$0xff] }
 0x28f   :  { %v1158_v6 = vrot.slane %v1064_v11, 1  ;;  %v1084_v45 = vmax.f32 %v12702_v36, %v1044_v15  ;;  %v8300_v31 = vld [vmem:[%s12563_s3 + $0x4a0] ss:$12 sps:$4 sm:$0xff]  }
 0x291   :  { %4029 = vmatpush1.bf16.msra.mxu1 %v8281_v59  ;;  %v1159_v38 = vsel %vm54_vm0, %v12700_v3, %v1158_v6  ;;  %v10778_v32 = vmax.f32 %v1064_v11, %v1158_v6  ;;  %v12704_v59 = vunpack.i.h.bf16 %v12703_v25  ;;  %v1193_v52 = vrot.slane %v1084_v45, 1  ;;  %v8295_v11 = vld [vmem:[%s12563_s3 + $0x488] ss:$12 sps:$4 sm:$0xff]   ;;  %v12705_v3 = vld [vmem:[#allocation12_spill] sm:$0xff] }
 0x292   :  { %4030 = vmatprep.subr.bf16.mxu1 %v8288_v24  ;;  %v1249_v33 = vmax.f32 %v10339_v40, %v1159_v38 }
 0x293   :  { %v1294_v2 = vmax.f32 %v10778_v32, 0.0  ;;  %v1041_v24 = vsel %vm1036_vm10, %v12704_v59, %v7900_v12  ;;  %v10840_v18 = vmax.f32 %v1084_v45, %v1193_v52  ;;  %v8310_v32 = vld [vmem:[%s12563_s3 + $0x4d0] ss:$12 sps:$4 sm:$0xff]  }
 0x294   :  { %v10782_v61 = vmax.f32 %v1249_v33, 0.0  ;;  %v1069_v38 = vmax.f32 %v12705_v3, %v1041_v24  ;;  %v12706_v33 = vunpack.i.h.bf16 %v10137_v50  ;;  %v8296_v50 = vld [vmem:[%s12563_s3 + $0x498] ss:$12 sps:$4 sm:$0xff]  }
 0x295   :  { %4031 = vmatpush1.bf16.msra.mxu1 %v8286_v16  ;;  %v1573_v20 = vrot.slane %v1294_v2, 4  ;;  %v8308_v24 = vld [vmem:[%s12563_s3 + $0x4cc] ss:$12 sps:$4 sm:$0xff]  }
 0x296   :  { %4063 = vmatprep.subr.bf16.mxu1 %v8293_v21  ;;  %v1378_v30 = vrot.slane %v10782_v61, 2  ;;  %v1563_v40 = vrot.slane %v10782_v61, 4 }
 0x298   :  { %v1379_v57 = vsel %vm97_vm2, %v1368_v23, %v1378_v30  ;;  %v1564_v27 = vsel %vm183_vm3, %v1553_v19, %v1563_v40  ;;  %v10800_v22 = vsel %vm183_vm3, %v1563_v40, %v1573_v20  ;;  %v12708_v19 = vld [vmem:[#allocation14_spill] sm:$0xff]  ;;  %v8303_v40 = vld [vmem:[%s12563_s3 + $0x4b4] ss:$12 sps:$4 sm:$0xff]  }
 0x299   :  { %v7956_v1 = vpack.i.bf16 %v1379_v57, %v1369_v29  ;;  %v10805_v42 = vpack.c.bf16 %v1564_v27, %v1554_v8  ;;  %v1172_v29 = vrot.slane %v1069_v38, 1  ;;  %v1314_v57 = vmax.f32 %v10840_v18, 0.0 }
 0x29b   :  { %7957 = vrot.lane.b32.xlu0 %v7956_v1, %s8888_s22  ;;  %v8301_v1 = vld [vmem:[%s12563_s3 + $0x4b0] ss:$12 sps:$4 sm:$0xff]  }
 0x29e   :  { %v10803_v43 = vpop.permute.xlu0 %7892 }
 0x29f   :  { %v7895_v58 = vunpack.i.h.bf16 %v10803_v43  ;;  %v7894_v35 = vunpack.i.l.bf16 %v10803_v43 }
 0x2a1   :  { %v1641_v16 = vsel %vm1485_vm11, %v1284_v34, %v7894_v35  ;;  %v1490_v21 = vsel %vm1485_vm11, %v7894_v35, %v7895_v58  ;;  %v8299_v34 = vld [vmem:[%s12563_s3 + $0x560] ss:$12 sps:$4 sm:$0xff]   ;;  %v8305_v35 = vld [vmem:[%s12563_s3 + $0x4b8] ss:$12 sps:$4 sm:$0xff]  }
 0x2a2   :  { %v1650_v7 = vpack.c.bf16 %v1641_v16, %v1640_v49  ;;  %v1651_v44 = vpack.c.bf16 %v1490_v21, %v1486_v39  ;;  %v8309_v16 = vld [vmem:[%s12563_s3 + $0x590] ss:$12 sps:$4 sm:$0xff]  }
 0x2a4   :  { %v7903_v51 = vpop.permute.xlu0 %7902  ;;  %4032 = vmatprep.mubr.bf16.mxu1 %v1651_v44  ;;  %4461 = vmatprep.mubr.bf16.mxu0 %v1651_v44  ;;  %v1423_v44 = vrot.slane %v1314_v57, 2 }
 0x2a5   :  { %v7905_v14 = vunpack.i.h.bf16 %v7903_v51  ;;  %v7904_v6 = vunpack.i.l.bf16 %v7903_v51  ;;  %4033 = vmatmul.mubr.bf16.vlgmr.msra.gmra.mrb[32].mxu1 %v1650_v7  ;;  %4462 = vmatmul.mubr.bf16.vlgmr.msra.gmra.mrb[40].mxu0 %v1650_v7  ;;  %v1388_v7 = vrot.slane %v1294_v2, 2 }
 0x2a6   :  { %4064 = vmatpush1.bf16.msra.mxu1 %v8291_v56  ;;  %7464 = vmatpush3.bf16.msra.mxu0 %v8295_v11 }
 0x2a7   :  { %v1043_v55 = vsel %vm1036_vm10, %v12706_v33, %v7905_v14  ;;  %v1042_v23 = vsel %vm1036_vm10, %v12707_v48, %v7904_v6  ;;  %4065 = vmatprep.subr.bf16.mxu1 %v8298_v63  ;;  %7465 = vmatprep.subr.bf16.mxu0 %v8299_v34  ;;  %v8306_v14 = vld [vmem:[%s12563_s3 + $0x4c8] ss:$12 sps:$4 sm:$0xff]  }
 0x2a8   :  { %v1079_v20 = vmax.f32 %v12708_v19, %v1043_v55  ;;  %v1074_v15 = vmax.f32 %v12709_v26, %v1042_v23  ;;  %v8314_v33 = vld [vmem:[%s12563_s3 + $0x5a8] ss:$12 sps:$4 sm:$0xff]   ;;  %v1389_v23 = vsel %vm97_vm2, %v1378_v30, %v1388_v7 }
 0x2aa   :  { %v1183_v8 = vrot.slane %v1079_v20, 1  ;;  %v1173_v12 = vrot.slane %v1074_v15, 1  ;;  %4066 = vmatpush1.bf16.msra.mxu1 %v8296_v50  ;;  %7466 = vmatpush3.bf16.msra.mxu0 %v8300_v31 }
 0x2ab   :  { %v10859_v45 = vpop.permute.xlu1 %7912  ;;  %4067 = vmatprep.subr.bf16.mxu1 %v8303_v40  ;;  %7467 = vmatprep.subr.bf16.mxu0 %v8304_v62 }
 0x2ac   :  { %v1184_v27 = vsel %vm54_vm0, %v1173_v12, %v1183_v8  ;;  %v1194_v36 = vsel %vm54_vm0, %v1183_v8, %v1193_v52  ;;  %v1174_v49 = vsel %vm54_vm0, %v1172_v29, %v1173_v12  ;;  %v7915_v39 = vunpack.i.h.bf16 %v10859_v45 }
 0x2ad   :  { %v1264_v25 = vmax.f32 %v1074_v15, %v1184_v27  ;;  %v1269_v59 = vmax.f32 %v1079_v20, %v1194_v36  ;;  %v7914_v21 = vunpack.i.l.bf16 %v10859_v45  ;;  %v1259_v52 = vmax.f32 %v1069_v38, %v1174_v49  ;;  %v8313_v38 = vld [vmem:[%s12563_s3 + $0x4e4] ss:$12 sps:$4 sm:$0xff]   ;;  %v8315_v27 = vld [vmem:[%s12563_s3 + $0x4e8] ss:$12 sps:$4 sm:$0xff]  }
 0x2ae   :  { %4068 = vmatpush1.bf16.msra.mxu1 %v8301_v1  ;;  %7468 = vmatpush3.bf16.msra.mxu0 %v8305_v35 }
 0x2af   :  { %v10878_v51 = vmax.f32 %v1264_v25, 0.0  ;;  %v10880_v56 = vmax.f32 %v1269_v59, 0.0  ;;  %v1299_v2 = vmax.f32 %v1259_v52, 0.0  ;;  %4069 = vmatprep.subr.bf16.mxu1 %v8308_v24  ;;  %7469 = vmatprep.subr.bf16.mxu0 %v8309_v16  ;;  %v1498_v55 = vsel %vm1485_vm11, %v7914_v21, %v7915_v39  ;;  %v8318_v59 = vld [vmem:[%s12563_s3 + $0x4fc] ss:$12 sps:$4 sm:$0xff]  }
 0x2b0   :  { %v8319_v24 = vld [vmem:[%s12563_s3 + $0x5c0] ss:$12 sps:$4 sm:$0xff]  }
 0x2b1   :  { %v1403_v34 = vrot.slane %v10878_v51, 2  ;;  %v1413_v3 = vrot.slane %v10880_v56, 2  ;;  %v1643_v48 = vsel %vm1485_vm11, %v1299_v2, %v7914_v21  ;;  %v1402_v19 = vrot.slane %v1299_v2, 2 }
 0x2b2   :  { %v10884_v11 = vpop.permute.xlu0 %7907  ;;  %4070 = vmatpush1.bf16.msra.mxu1 %v8306_v14  ;;  %7470 = vmatpush3.bf16.msra.mxu0 %v8310_v32  ;;  %v1587_v36 = vrot.slane %v1299_v2, 4  ;;  %v1588_v16 = vrot.slane %v10878_v51, 4  ;;  %v1598_v21 = vrot.slane %v10880_v56, 4  ;;  %v8316_v32 = vld [vmem:[%s12563_s3 + $0x4f8] ss:$12 sps:$4 sm:$0xff]  }
 0x2b3   :  { %v7910_v6 = vunpack.i.h.bf16 %v10884_v11  ;;  %v7909_v63 = vunpack.i.l.bf16 %v10884_v11  ;;  %v1414_v15 = vsel %vm97_vm2, %v1403_v34, %v1413_v3  ;;  %v1424_v50 = vsel %vm97_vm2, %v1413_v3, %v1423_v44  ;;  %4071 = vmatprep.subr.bf16.mxu1 %v8313_v38  ;;  %7471 = vmatprep.subr.bf16.mxu0 %v8314_v33  ;;  %v8320_v2 = vld [vmem:[%s12563_s3 + $0x500] ss:$12 sps:$4 sm:$0xff]   ;;  %v8324_v3 = vld [vmem:[%s12563_s3 + $0x5d8] ss:$12 sps:$4 sm:$0xff]  }
 0x2b4   :  { %v1404_v62 = vsel %vm97_vm2, %v1402_v19, %v1403_v34  ;;  %v7966_v12 = vpack.i.bf16 %v1424_v50, %v1414_v15  ;;  %v1608_v44 = vrot.slane %v1314_v57, 4  ;;  %v1589_v34 = vsel %vm183_vm3, %v1587_v36, %v1588_v16  ;;  %v8323_v57 = vld [vmem:[%s12563_s3 + $0x514] ss:$12 sps:$4 sm:$0xff]   ;;  %v8328_v15 = vld [vmem:[%s12563_s3 + $0x52c] ss:$12 sps:$4 sm:$0xff]  }
 0x2b5   :  { %v1494_v20 = vsel %vm1485_vm11, %v7909_v63, %v7910_v6  ;;  %v1642_v26 = vsel %vm1485_vm11, %v10782_v61, %v7909_v63  ;;  %v7961_v8 = vpack.i.bf16 %v1404_v62, %v1389_v23  ;;  %v8311_v61 = vld [vmem:[%s12563_s3 + $0x4e0] ss:$12 sps:$4 sm:$0xff]   ;;  %v10967_v38 = vpack.c.bf16 %v1589_v34, %v10800_v22  ;;  %v8321_v23 = vld [vmem:[%s12563_s3 + $0x510] ss:$12 sps:$4 sm:$0xff]   ;;  %v8325_v22 = vld [vmem:[%s12563_s3 + $0x518] ss:$12 sps:$4 sm:$0xff]  }
 0x2b6   :  { %v1665_v31 = vpack.c.bf16 %v1498_v55, %v1494_v20  ;;  %v1664_v40 = vpack.c.bf16 %v1643_v48, %v1642_v26  ;;  %7967 = vrot.lane.b32.xlu0 %v7966_v12, %s8888_s22  ;;  %4072 = vmatpush1.bf16.msra.mxu1 %v8311_v61  ;;  %v1609_v33 = vsel %vm183_vm3, %v1598_v21, %v1608_v44  ;;  %v8329_v50 = vld [vmem:[%s12563_s3 + $0x5f0] ss:$12 sps:$4 sm:$0xff]   ;;  %v8326_v61 = vld [vmem:[%s12563_s3 + $0x528] ss:$12 sps:$4 sm:$0xff]  }
 0x2b7   :  { %7962 = vrot.lane.b32.xlu1 %v7961_v8, %s8888_s22  ;;  %7472 = vmatpush3.bf16.msra.mxu0 %v8315_v27  ;;  %v8330_v27 = vld [vmem:[%s12563_s3 + $0x530] ss:$12 sps:$4 sm:$0xff]  }
 0x2b8   :  { %v10917_v29 = vpop.permute.xlu1 %7922  ;;  %v10919_v30 = vpop.permute.xlu0 %7917  ;;  %4042 = vmatprep.mubr.bf16.mxu1 %v1665_v31  ;;  %4469 = vmatprep.mubr.bf16.mxu0 %v1665_v31 }
 0x2b9   :  { %v7925_v1 = vunpack.i.h.bf16 %v10917_v29  ;;  %v7924_v35 = vunpack.i.l.bf16 %v10917_v29  ;;  %v7920_v49 = vunpack.i.h.bf16 %v10919_v30  ;;  %v7919_v25 = vunpack.i.l.bf16 %v10919_v30  ;;  %4043 = vmatmul.mubr.bf16.gmra.mrb[36].mxu1 %v1664_v40  ;;  %4470 = vmatmul.mubr.bf16.gmra.mrb[44].mxu0 %v1664_v40  ;;  %v8404_v30 = vld [vmem:[%s12563_s3 + $0x740] ss:$12 sps:$4 sm:$0xff]  }
 0x2ba   :  { %4073 = vmatprep.subr.bf16.mxu1 %v8318_v59  ;;  %7473 = vmatprep.subr.bf16.mxu0 %v8319_v24 }
 0x2bb   :  { %v1502_v52 = vsel %vm1485_vm11, %v7919_v25, %v7920_v49  ;;  %v1506_v7 = vsel %vm1485_vm11, %v7924_v35, %v7925_v1  ;;  %v1644_v63 = vsel %vm1485_vm11, %v10878_v51, %v7919_v25  ;;  %v1645_v18 = vsel %vm1485_vm11, %v10880_v56, %v7924_v35  ;;  %4074 = vmatpush1.bf16.msra.mxu1 %v8316_v32  ;;  %v8333_v35 = vld [vmem:[%s12563_s3 + $0x544] ss:$12 sps:$4 sm:$0xff]   ;;  %v8379_v25 = vld [vmem:[%s12563_s3 + $0x6c8] ss:$12 sps:$4 sm:$0xff]  }
 0x2bc   :  { %v1679_v14 = vpack.c.bf16 %v1506_v7, %v1502_v52  ;;  %v1599_v51 = vsel %vm183_vm3, %v1588_v16, %v1598_v21  ;;  %7474 = vmatpush3.bf16.msra.mxu0 %v8320_v2  ;;  %v1678_v48 = vpack.c.bf16 %v1645_v18, %v1644_v63  ;;  %4075 = vmatprep.subr.bf16.mxu1 %v8323_v57  ;;  %v8384_v63 = vld [vmem:[%s12563_s3 + $0x6e0] ss:$12 sps:$4 sm:$0xff]  }
 0x2bd   :  { %v10971_v55 = vpack.c.bf16 %v1609_v33, %v1599_v51  ;;  %7475 = vmatprep.subr.bf16.mxu0 %v8324_v3  ;;  %v8334_v51 = vld [vmem:[%s12563_s3 + $0x558] ss:$12 sps:$4 sm:$0xff]   ;;  %v8385_v33 = vld [vmem:[%s12563_s3 + $0x620] ss:$12 sps:$4 sm:$0xff]  }
 0x2be   :  { %4052 = vmatprep.mubr.bf16.mxu1 %v1679_v14  ;;  %4477 = vmatprep.mubr.bf16.mxu0 %v1679_v14 }
 0x2bf   :  { %v10973_v56 = vpop.permute.xlu0 %7927  ;;  %4076 = vmatpush1.bf16.msra.mxu1 %v8321_v23 }
 0x2c0   :  { %v7930_v19 = vunpack.i.h.bf16 %v10973_v56  ;;  %v7929_v20 = vunpack.i.l.bf16 %v10973_v56  ;;  %7476 = vmatpush3.bf16.msra.mxu0 %v8325_v22  ;;  %4077 = vmatprep.subr.bf16.mxu1 %v8328_v15  ;;  %v8339_v22 = vld [vmem:[%s12563_s3 + $0x574] ss:$12 sps:$4 sm:$0xff]  }
 0x2c1   :  { %v10983_v26 = vpop.permute.xlu1 %7932  ;;  %4053 = vmatmul.mubr.bf16.gmra.mrb[40].mxu1 %v1678_v48  ;;  %4478 = vmatmul.mubr.bf16.gmra.mrb[48].mxu0 %v1678_v48  ;;  %v8413_v56 = vld [vmem:[%s12563_s3 + $0x754] ss:$12 sps:$4 sm:$0xff]  }
 0x2c2   :  { %v7935_v31 = vunpack.i.h.bf16 %v10983_v26  ;;  %v7934_v40 = vunpack.i.l.bf16 %v10983_v26  ;;  %v1488_v62 = vsel %vm1485_vm11, %v7929_v20, %v7930_v19  ;;  %7477 = vmatprep.subr.bf16.mxu0 %v8329_v50  ;;  %v1487_v59 = vsel %vm1485_vm11, %v7890_v28, %v7929_v20  ;;  %v8380_v28 = vld [vmem:[%s12563_s3 + $0x608] ss:$12 sps:$4 sm:$0xff]   ;;  %v8389_v20 = vld [vmem:[%s12563_s3 + $0x6f8] ss:$12 sps:$4 sm:$0xff]  }
 0x2c3   :  { %v10996_v8 = vpop.permute.xlu0 %7937  ;;  %4078 = vmatpush1.bf16.msra.mxu1 %v8326_v61  ;;  %v8390_v61 = vld [vmem:[%s12563_s3 + $0x638] ss:$12 sps:$4 sm:$0xff]  }
 0x2c4   :  { %v1492_v12 = vsel %vm1485_vm11, %v7934_v40, %v7935_v31  ;;  %v1491_v24 = vsel %vm1485_vm11, %v7895_v58, %v7934_v40  ;;  %v7940_v16 = vunpack.i.h.bf16 %v10996_v8  ;;  %v7939_v21 = vunpack.i.l.bf16 %v10996_v8  ;;  %7478 = vmatpush3.bf16.msra.mxu0 %v8330_v27  ;;  %4079 = vmatprep.subr.bf16.mxu1 %v8333_v35  ;;  %v8336_v58 = vld [vmem:[%s12563_s3 + $0x55c] ss:$12 sps:$4 sm:$0xff]   ;;  %v12710_v35 = vld [vmem:[#allocation19_spill] sm:$0xff] }
 0x2c5   :  { %v1653_v36 = vpack.c.bf16 %v1492_v12, %v1488_v62  ;;  %v11031_v43 = vpack.c.bf16 %v1491_v24, %v1487_v59  ;;  %7497 = vmatprep.subr.bf16.mxu0 %v8379_v25  ;;  %v8337_v40 = vld [vmem:[%s12563_s3 + $0x570] ss:$12 sps:$4 sm:$0xff]   ;;  %v8340_v27 = vld [vmem:[%s12563_s3 + $0x588] ss:$12 sps:$4 sm:$0xff]   ;;  %v1541_v25 = vrot.slane %v12710_v35, 4 }
 0x2c6   :  { %v1496_v32 = vsel %vm1485_vm11, %v7939_v21, %v7940_v16  ;;  %v1495_v62 = vsel %vm1485_vm11, %v7910_v6, %v7939_v21  ;;  %v8394_v6 = vld [vmem:[%s12563_s3 + $0x710] ss:$12 sps:$4 sm:$0xff]   ;;  %v8399_v21 = vld [vmem:[%s12563_s3 + $0x728] ss:$12 sps:$4 sm:$0xff]   ;;  %v8358_v35 = vld [vmem:[%s12563_s3 + $0x618] ss:$12 sps:$4 sm:$0xff]  }
 0x2c7   :  { %v11021_v52 = vpop.permute.xlu1 %7942  ;;  %4095 = vmatprep.mubr.bf16.mxu1 %v1653_v36  ;;  %4518 = vmatprep.mubr.bf16.mxu0 %v1653_v36  ;;  %v8345_v36 = vld [vmem:[%s12563_s3 + $0x5a4] ss:$12 sps:$4 sm:$0xff]  }
 0x2c8   :  { %v7945_v7 = vunpack.i.h.bf16 %v11021_v52  ;;  %v7944_v44 = vunpack.i.l.bf16 %v11021_v52  ;;  %4080 = vmatpush1.bf16.msra.mxu1 %v8331_v37  ;;  %v8395_v59 = vld [vmem:[%s12563_s3 + $0x650] ss:$12 sps:$4 sm:$0xff]   ;;  %v8406_v26 = vld [vmem:[%s12563_s3 + $0x738] ss:$12 sps:$4 sm:$0xff]  }
 0x2c9   :  { %4519 = vmatmul.mubr.bf16.vlgmr.msra.gmra.mrb[52].mxu0 %v11031_v43  ;;  %4081 = vmatprep.subr.bf16.mxu1 %v8336_v58  ;;  %v8343_v58 = vld [vmem:[%s12563_s3 + $0x5a0] ss:$12 sps:$4 sm:$0xff]   ;;  %v8449_v52 = vld [vmem:[%s12563_s3 + $0x8d8] ss:$12 sps:$4 sm:$0xff]  }
 0x2ca   :  { %v11036_v14 = vpop.permute.xlu0 %7947  ;;  %v1500_v2 = vsel %vm1485_vm11, %v7944_v44, %v7945_v7  ;;  %7498 = vmatpush3.bf16.msra.mxu0 %v8380_v28  ;;  %v1499_v15 = vsel %vm1485_vm11, %v7915_v39, %v7944_v44  ;;  %v8342_v39 = vld [vmem:[%s12563_s3 + $0x58c] ss:$12 sps:$4 sm:$0xff]   ;;  %v12711_v44 = vld [vmem:[#allocation17_spill] sm:$0xff]  ;;  %v1556_v28 = vsel %vm183_vm3, %v1541_v25, %v1555_v9 }
 0x2cb   :  { %v11047_v34 = vpop.permute.xlu1 %7952  ;;  %v11050_v18 = vpack.c.bf16 %v1500_v2, %v1496_v32  ;;  %v7950_v48 = vunpack.i.h.bf16 %v11036_v14  ;;  %v7949_v23 = vunpack.i.l.bf16 %v11036_v14  ;;  %7499 = vmatprep.subr.bf16.mxu0 %v8384_v63  ;;  %v11081_v12 = vpack.c.bf16 %v1499_v15, %v1495_v62  ;;  %v8400_v9 = vld [vmem:[%s12563_s3 + $0x668] ss:$12 sps:$4 sm:$0xff]  }
 0x2cc   :  { %v7955_v57 = vunpack.i.h.bf16 %v11047_v34  ;;  %v7954_v3 = vunpack.i.l.bf16 %v11047_v34  ;;  %4082 = vmatpush1.bf16.msra.mxu1 %v8334_v51  ;;  %v1540_v37 = vrot.slane %v12711_v44, 4  ;;  %v8351_v63 = vld [vmem:[%s12563_s3 + $0x5d4] ss:$12 sps:$4 sm:$0xff]   ;;  %v8409_v51 = vld [vmem:[%s12563_s3 + $0x758] ss:$12 sps:$4 sm:$0xff]  }
 0x2cd   :  { %4526 = vmatprep.mubr.bf16.mxu0 %v11050_v18  ;;  %4083 = vmatprep.subr.bf16.mxu1 %v8339_v22  ;;  %v1504_v45 = vsel %vm1485_vm11, %v7949_v23, %v7950_v48  ;;  %v1503_v29 = vsel %vm1485_vm11, %v7920_v49, %v7949_v23  ;;  %v8346_v49 = vld [vmem:[%s12563_s3 + $0x5b8] ss:$12 sps:$4 sm:$0xff]   ;;  %v8352_v15 = vld [vmem:[%s12563_s3 + $0x5e8] ss:$12 sps:$4 sm:$0xff]   ;;  %v8455_v34 = vld [vmem:[%s12563_s3 + $0x830] ss:$12 sps:$4 sm:$0xff]  }
 0x2ce   :  { %v1508_v50 = vsel %vm1485_vm11, %v7954_v3, %v7955_v57  ;;  %7500 = vmatpush3.bf16.msra.mxu0 %v8385_v33  ;;  %v1507_v24 = vsel %vm1485_vm11, %v7925_v1, %v7954_v3  ;;  %v1542_v32 = vsel %vm183_vm3, %v1540_v37, %v1541_v25  ;;  %v8405_v3 = vld [vmem:[%s12563_s3 + $0x680] ss:$12 sps:$4 sm:$0xff]   ;;  %v8349_v33 = vld [vmem:[%s12563_s3 + $0x5d0] ss:$12 sps:$4 sm:$0xff]   ;;  %v8410_v22 = vld [vmem:[%s12563_s3 + $0x698] ss:$12 sps:$4 sm:$0xff]  }
 0x2cf   :  { %7501 = vmatprep.subr.bf16.mxu0 %v8389_v20  ;;  %v11092_v11 = vpack.c.bf16 %v1508_v50, %v1504_v45  ;;  %v11125_v1 = vpack.c.bf16 %v1507_v24, %v1503_v29  ;;  %v1655_v2 = vpack.c.bf16 %v1556_v28, %v1542_v32  ;;  %v8354_v23 = vld [vmem:[%s12563_s3 + $0x5ec] ss:$12 sps:$4 sm:$0xff]   ;;  %v8414_v20 = vld [vmem:[%s12563_s3 + $0x770] ss:$12 sps:$4 sm:$0xff]   ;;  %v8419_v62 = vld [vmem:[%s12563_s3 + $0x848] ss:$12 sps:$4 sm:$0xff]  }
 0x2d0   :  { %4084 = vmatpush1.bf16.msra.mxu1 %v8337_v40  ;;  %v8357_v50 = vld [vmem:[%s12563_s3 + $0x604] ss:$12 sps:$4 sm:$0xff]   ;;  %v8355_v45 = vld [vmem:[%s12563_s3 + $0x600] ss:$12 sps:$4 sm:$0xff]   ;;  %v8448_v14 = vld [vmem:[%s12563_s3 + $0x7fc] ss:$12 sps:$4 sm:$0xff]  }
 0x2d1   :  { %4527 = vmatmul.mubr.bf16.gmra.mrb[56].mxu0 %v11081_v12  ;;  %4085 = vmatprep.subr.bf16.mxu1 %v8342_v39  ;;  %v8415_v40 = vld [vmem:[%s12563_s3 + $0x6b0] ss:$12 sps:$4 sm:$0xff]   ;;  %v8367_v37 = vld [vmem:[%s12563_s3 + $0x660] ss:$12 sps:$4 sm:$0xff]  }
 0x2d2   :  { %4534 = vmatprep.mubr.bf16.mxu0 %v11092_v11  ;;  %7502 = vmatpush3.bf16.msra.mxu0 %v8390_v61  ;;  %v8360_v39 = vld [vmem:[%s12563_s3 + $0x61c] ss:$12 sps:$4 sm:$0xff]   ;;  %v8369_v44 = vld [vmem:[%s12563_s3 + $0x664] ss:$12 sps:$4 sm:$0xff]   ;;  %v8375_v28 = vld [vmem:[%s12563_s3 + $0x694] ss:$12 sps:$4 sm:$0xff]  }
 0x2d3   :  { %7503 = vmatprep.subr.bf16.mxu0 %v8394_v6  ;;  %v8373_v29 = vld [vmem:[%s12563_s3 + $0x690] ss:$12 sps:$4 sm:$0xff]   ;;  %v8378_v32 = vld [vmem:[%s12563_s3 + $0x6ac] ss:$12 sps:$4 sm:$0xff]  }
 0x2d4   :  { %4086 = vmatpush1.bf16.msra.mxu1 %v8340_v27 }
 0x2d5   :  { %4087 = vmatprep.subr.bf16.mxu1 %v8345_v36 }
 0x2d6   :  { %7504 = vmatpush3.bf16.msra.mxu0 %v8395_v59  ;;  %v8363_v59 = vld [vmem:[%s12563_s3 + $0x634] ss:$12 sps:$4 sm:$0xff]  }
 0x2d7   :  { %7505 = vmatprep.subr.bf16.mxu0 %v8399_v21  ;;  %v8364_v21 = vld [vmem:[%s12563_s3 + $0x648] ss:$12 sps:$4 sm:$0xff]  }
 0x2d8   :  { %4088 = vmatpush1.bf16.msra.mxu1 %v8343_v58  ;;  %v11222_v58 = vld [vmem:[%s12564_s4] sm:$0x7] }
 0x2d9   :  { %4535 = vmatmul.mubr.bf16.gmra.mrb[60].mxu0 %v11125_v1  ;;  %4089 = vmatprep.subr.bf16.mxu1 %v8348_v13 }
 0x2da   :  { %4575 = vmatprep.mubr.bf16.mxu0 %v1655_v2  ;;  %7506 = vmatpush3.bf16.msra.mxu0 %v8400_v9  ;;  %v12712_v9 = vld [vmem:[#allocation5_spill] sm:$0xff] }
 0x2db   :  { %7507 = vmatprep.subr.bf16.mxu0 %v8404_v30 }
 0x2dc   :  { %4090 = vmatpush1.bf16.msra.mxu1 %v8346_v49 }
 0x2dd   :  { %4091 = vmatprep.subr.bf16.mxu1 %v8351_v63 }
 0x2de   :  { %7508 = vmatpush3.bf16.msra.mxu0 %v8405_v3  ;;  %v8376_v3 = vld [vmem:[%s12563_s3 + $0x6a8] ss:$12 sps:$4 sm:$0xff]  }
 0x2df   :  { %7509 = vmatprep.subr.bf16.mxu0 %v8409_v51  ;;  %v7377_v61 = vpop.f32.mrb[16].mxu0 }
 0x2e0   :  { %4092 = vmatpush1.bf16.msra.mxu1 %v8349_v33  ;;  %v7378_v6 = vpop.f32.mrb[17].mxu0 }
 0x2e1   :  { %4093 = vmatprep.subr.bf16.mxu1 %v8354_v23  ;;  %v11181_v27 = vadd.f32 %v7378_v6, %v7377_v61  ;;  %v7380_v36 = vpop.f32.mrb[18].mxu0 }
 0x2e2   :  { %7510 = vmatpush3.bf16.msra.mxu0 %v8410_v22  ;;  %v7381_v25 = vpop.f32.mrb[19].mxu0  ;;  %v8383_v22 = vld [vmem:[%s12563_s3 + $0x6c4] ss:$12 sps:$4 sm:$0xff]  }
 0x2e3   :  { %7511 = vmatprep.subr.bf16.mxu0 %v8414_v20  ;;  %v11190_v24 = vadd.f32 %v7381_v25, %v7380_v36  ;;  %v8381_v20 = vld [vmem:[%s12563_s3 + $0x6c0] ss:$12 sps:$4 sm:$0xff]   ;;  %v8396_v25 = vld [vmem:[%s12563_s3 + $0x708] ss:$12 sps:$4 sm:$0xff]  }
 0x2e4   :  { %4094 = vmatpush1.bf16.msra.mxu1 %v8352_v15  ;;  %v8388_v15 = vld [vmem:[%s12563_s3 + $0x6dc] ss:$12 sps:$4 sm:$0xff]  }
 0x2e5   :  { %4126 = vmatprep.subr.bf16.mxu1 %v8357_v50  ;;  %v8386_v50 = vld [vmem:[%s12563_s3 + $0x6d8] ss:$12 sps:$4 sm:$0xff]  }
 0x2e6   :  { %7512 = vmatpush3.bf16.msra.mxu0 %v8415_v40  ;;  %v8393_v40 = vld [vmem:[%s12563_s3 + $0x6f4] ss:$12 sps:$4 sm:$0xff]  }
 0x2e7   :  { %7531 = vmatprep.subr.bf16.mxu0 %v8419_v62  ;;  %4096 = vmatmul.mubr.bf16.vlgmr.msra.gmra.mrb[32].mxu1 %v11031_v43  ;;  %v8361_v43 = vld [vmem:[%s12563_s3 + $0x630] ss:$12 sps:$4 sm:$0xff]  }
 0x2e8   :  { %4105 = vmatprep.mubr.bf16.mxu1 %v11050_v18  ;;  %4127 = vmatpush1.bf16.msra.mxu1 %v8355_v45  ;;  %v8366_v18 = vld [vmem:[%s12563_s3 + $0x64c] ss:$12 sps:$4 sm:$0xff]   ;;  %v8391_v62 = vld [vmem:[%s12563_s3 + $0x6f0] ss:$12 sps:$4 sm:$0xff]  }
 0x2e9   :  { %4128 = vmatprep.subr.bf16.mxu1 %v8360_v39  ;;  %v8398_v39 = vld [vmem:[%s12563_s3 + $0x70c] ss:$12 sps:$4 sm:$0xff]  }
 0x2ec   :  { %4129 = vmatpush1.bf16.msra.mxu1 %v8358_v35 }
 0x2ed   :  { %4130 = vmatprep.subr.bf16.mxu1 %v8363_v59 }
 0x2ef   :  { %4106 = vmatmul.mubr.bf16.gmra.mrb[36].mxu1 %v11081_v12  ;;  %v8372_v12 = vld [vmem:[%s12563_s3 + $0x67c] ss:$12 sps:$4 sm:$0xff]  }
 0x2f0   :  { %4115 = vmatprep.mubr.bf16.mxu1 %v11092_v11  ;;  %4131 = vmatpush1.bf16.msra.mxu1 %v8361_v43  ;;  %v8370_v11 = vld [vmem:[%s12563_s3 + $0x678] ss:$12 sps:$4 sm:$0xff]  }
 0x2f1   :  { %4132 = vmatprep.subr.bf16.mxu1 %v8366_v18  ;;  %v8403_v43 = vld [vmem:[%s12563_s3 + $0x724] ss:$12 sps:$4 sm:$0xff]  }
 0x2f4   :  { %4133 = vmatpush1.bf16.msra.mxu1 %v8364_v21 }
 0x2f5   :  { %4134 = vmatprep.subr.bf16.mxu1 %v8369_v44  ;;  %v8401_v44 = vld [vmem:[%s12563_s3 + $0x720] ss:$12 sps:$4 sm:$0xff]  }
 0x2f7   :  { %4116 = vmatmul.mubr.bf16.gmra.mrb[40].mxu1 %v11125_v1 }
 0x2f8   :  { %4135 = vmatpush1.bf16.msra.mxu1 %v8367_v37  ;;  %4158 = vmatprep.mubr.bf16.mxu1 %v1655_v2  ;;  %v12713_v2 = vsub.s32 2, %v12712_v9 }
 0x2f9   :  { %4136 = vmatprep.subr.bf16.mxu1 %v8372_v12 }
 0x2fa   :  { %v7383_v1 = vpop.f32.mrb[20].mxu0  ;;  %v11233_v30 = vrot.slane %v11222_v58, %v12713_v2  ;;  %v8429_v2 = vld [vmem:[%s12563_s3 + $0x878] ss:$12 sps:$4 sm:$0xff]  }
 0x2fb   :  { %v7384_v13 = vpop.f32.mrb[21].mxu0 }
 0x2fc   :  { %4137 = vmatpush1.bf16.msra.mxu1 %v8370_v11  ;;  %v7385_v49 = vadd.f32 %v7384_v13, %v7383_v1  ;;  %v7386_v63 = vpop.f32.mrb[22].mxu0  ;;  %v8408_v11 = vld [vmem:[%s12563_s3 + $0x73c] ss:$12 sps:$4 sm:$0xff]   ;;  %v8424_v13 = vld [vmem:[%s12563_s3 + $0x860] ss:$12 sps:$4 sm:$0xff]  }
 0x2fd   :  { %4138 = vmatprep.subr.bf16.mxu1 %v8375_v28  ;;  %v7387_v51 = vpop.f32.mrb[23].mxu0  ;;  %v8420_v1 = vld [vmem:[%s12563_s3 + $0x788] ss:$12 sps:$4 sm:$0xff]  }
 0x2fe   :  { %v11239_v33 = vadd.f32 %v7385_v49, %v11233_v30  ;;  %v11241_v23 = vadd.f32 %v7387_v51, %v7386_v63  ;;  %v4350_v49 = vadd.f32 %v11181_v27, %v11233_v30  ;;  %v8411_v51 = vld [vmem:[%s12563_s3 + $0x750] ss:$12 sps:$4 sm:$0xff]   ;;  %v8430_v27 = vld [vmem:[%s12563_s3 + $0x7b8] ss:$12 sps:$4 sm:$0xff]  }
 0x300   :  { %4139 = vmatpush1.bf16.msra.mxu1 %v8373_v29 }
 0x301   :  { %4140 = vmatprep.subr.bf16.mxu1 %v8378_v32 }
 0x304   :  { %4141 = vmatpush1.bf16.msra.mxu1 %v8376_v3 }
 0x305   :  { %4142 = vmatprep.subr.bf16.mxu1 %v8383_v22 }
 0x308   :  { %4143 = vmatpush1.bf16.msra.mxu1 %v8381_v20  ;;  %v8418_v20 = vld [vmem:[%s12563_s3 + $0x76c] ss:$12 sps:$4 sm:$0xff]  }
 0x309   :  { %4144 = vmatprep.subr.bf16.mxu1 %v8388_v15  ;;  %v4353_v15 = vadd.f32 %v11190_v24, %v11233_v30  ;;  %v8416_v24 = vld [vmem:[%s12563_s3 + $0x768] ss:$12 sps:$4 sm:$0xff]  }
 0x30c   :  { %4145 = vmatpush1.bf16.msra.mxu1 %v8386_v50 }
 0x30d   :  { %4146 = vmatprep.subr.bf16.mxu1 %v8393_v40  ;;  %v7958_v21 = vpop.permute.xlu0 %7957 }
 0x30e   :  { %v7960_v37 = vunpack.i.h.bf16 %v7958_v21  ;;  %v7959_v12 = vunpack.i.l.bf16 %v7958_v21  ;;  %v8421_v21 = vld [vmem:[%s12563_s3 + $0x780] ss:$12 sps:$4 sm:$0xff]  }
 0x30f   :  { %v7389_v45 = vpop.f32.mrb[24].mxu0 }
 0x310   :  { %v7390_v61 = vpop.f32.mrb[25].mxu0  ;;  %4147 = vmatpush1.bf16.msra.mxu1 %v8391_v62  ;;  %v1493_v28 = vsel %vm1485_vm11, %v7935_v31, %v7960_v37  ;;  %v1489_v29 = vsel %vm1485_vm11, %v7930_v19, %v7959_v12  ;;  %v8425_v31 = vld [vmem:[%s12563_s3 + $0x7a0] ss:$12 sps:$4 sm:$0xff]   ;;  %v8434_v62 = vld [vmem:[%s12563_s3 + $0x890] ss:$12 sps:$4 sm:$0xff]   ;;  %v4361_v12 = vadd.f32 %v11241_v23, %v11233_v30 }
 0x311   :  { %v11264_v6 = vadd.f32 %v7390_v61, %v7389_v45  ;;  %v7392_v36 = vpop.f32.mrb[26].mxu0  ;;  %4148 = vmatprep.subr.bf16.mxu1 %v8398_v39  ;;  %v1654_v32 = vpack.c.bf16 %v1493_v28, %v1489_v29  ;;  %v8423_v39 = vld [vmem:[%s12563_s3 + $0x784] ss:$12 sps:$4 sm:$0xff]   ;;  %v8428_v37 = vld [vmem:[%s12563_s3 + $0x79c] ss:$12 sps:$4 sm:$0xff]  }
 0x312   :  { %v7393_v35 = vpop.f32.mrb[27].mxu0  ;;  %v8440_v29 = vld [vmem:[%s12563_s3 + $0x7e8] ss:$12 sps:$4 sm:$0xff]  }
 0x313   :  { %v7394_v59 = vadd.f32 %v7393_v35, %v7392_v36  ;;  %4576 = vmatmul.mubr.bf16.vlgmr.msra.gmra.mrb[64].mxu0 %v1654_v32  ;;  %v8435_v36 = vld [vmem:[%s12563_s3 + $0x7d0] ss:$12 sps:$4 sm:$0xff]  }
 0x314   :  { %4149 = vmatpush1.bf16.msra.mxu1 %v8396_v25  ;;  %7532 = vmatpush3.bf16.msra.mxu0 %v8420_v1  ;;  %v8439_v25 = vld [vmem:[%s12563_s3 + $0x8a8] ss:$12 sps:$4 sm:$0xff]   ;;  %v8444_v1 = vld [vmem:[%s12563_s3 + $0x8c0] ss:$12 sps:$4 sm:$0xff]  }
 0x315   :  { %v11273_v18 = vadd.f32 %v7394_v59, %v11233_v30  ;;  %4150 = vmatprep.subr.bf16.mxu1 %v8403_v43  ;;  %4583 = vmatprep.mubr.bf16.mxu0 %v10585_v10 }
 0x316   :  { %7533 = vmatprep.subr.bf16.mxu0 %v8424_v13 }
 0x318   :  { %4151 = vmatpush1.bf16.msra.mxu1 %v8401_v44  ;;  %7534 = vmatpush3.bf16.msra.mxu0 %v8425_v31  ;;  %v8445_v31 = vld [vmem:[%s12563_s3 + $0x800] ss:$12 sps:$4 sm:$0xff]  }
 0x319   :  { %4152 = vmatprep.subr.bf16.mxu1 %v8408_v11  ;;  %7535 = vmatprep.subr.bf16.mxu0 %v8429_v2  ;;  %v4366_v2 = vadd.f32 %v11264_v6, %v11233_v30  ;;  %v8438_v30 = vld [vmem:[%s12563_s3 + $0x7cc] ss:$12 sps:$4 sm:$0xff]  }
 0x31c   :  { %4153 = vmatpush1.bf16.msra.mxu1 %v8406_v26  ;;  %7536 = vmatpush3.bf16.msra.mxu0 %v8430_v27 }
 0x31d   :  { %v7411_v19 = vpop.f32.mrb[28].mxu0  ;;  %4154 = vmatprep.subr.bf16.mxu1 %v8413_v56  ;;  %7537 = vmatprep.subr.bf16.mxu0 %v8434_v62  ;;  %v8436_v62 = vld [vmem:[%s12563_s3 + $0x7c8] ss:$12 sps:$4 sm:$0xff]  }
 0x31e   :  { %v7412_v9 = vpop.f32.mrb[29].mxu0 }
 0x31f   :  { %v7413_v63 = vadd.f32 %v7412_v9, %v7411_v19  ;;  %v7414_v3 = vpop.f32.mrb[30].mxu0 }
 0x320   :  { %v7415_v22 = vpop.f32.mrb[31].mxu0  ;;  %4155 = vmatpush1.bf16.msra.mxu1 %v8411_v51  ;;  %7538 = vmatpush3.bf16.msra.mxu0 %v8435_v36 }
 0x321   :  { %v11316_v50 = vadd.f32 %v7413_v63, %v4350_v49  ;;  %v7416_v40 = vadd.f32 %v7415_v22, %v7414_v3  ;;  %4156 = vmatprep.subr.bf16.mxu1 %v8418_v20  ;;  %7539 = vmatprep.subr.bf16.mxu0 %v8439_v25  ;;  %v8431_v22 = vld [vmem:[%s12563_s3 + $0x7b0] ss:$12 sps:$4 sm:$0xff]  }
 0x322   :  { %v8451_v25 = vld [vmem:[%s12563_s3 + $0x810] ss:$12 sps:$4 sm:$0xff]  }
 0x323   :  { %v11324_v45 = vadd.f32 %v7416_v40, %v4353_v15 }
 0x324   :  { %4157 = vmatpush1.bf16.msra.mxu1 %v8416_v24  ;;  %7540 = vmatpush3.bf16.msra.mxu0 %v8440_v29  ;;  %v8454_v24 = vld [vmem:[%s12563_s3 + $0x8f0] ss:$12 sps:$4 sm:$0xff]   ;;  %v8464_v29 = vld [vmem:[%s12563_s3 + $0x858] ss:$12 sps:$4 sm:$0xff]  }
 0x325   :  { %v7417_v61 = vpop.f32.mrb[32].mxu0  ;;  %4189 = vmatprep.subr.bf16.mxu1 %v8423_v39  ;;  %7541 = vmatprep.subr.bf16.mxu0 %v8444_v1  ;;  %v8443_v39 = vld [vmem:[%s12563_s3 + $0x7e4] ss:$12 sps:$4 sm:$0xff]   ;;  %v8470_v1 = vld [vmem:[%s12563_s3 + $0x874] ss:$12 sps:$4 sm:$0xff]  }
 0x326   :  { %v7418_v35 = vpop.f32.mrb[33].mxu0 }
 0x327   :  { %v7419_v59 = vadd.f32 %v7418_v35, %v7417_v61  ;;  %v7420_v43 = vpop.f32.mrb[34].mxu0  ;;  %4159 = vmatmul.mubr.bf16.vlgmr.msra.gmra.mrb[32].mxu1 %v1654_v32  ;;  %v8433_v32 = vld [vmem:[%s12563_s3 + $0x7b4] ss:$12 sps:$4 sm:$0xff]   ;;  %v12714_v35 = vmov 0  }
 0x328   :  { %v7421_v44 = vpop.f32.mrb[35].mxu0  ;;  %4168 = vmatprep.mubr.bf16.mxu1 %v10585_v10  ;;  %4190 = vmatpush1.bf16.msra.mxu1 %v8421_v21  ;;  %v7968_v9 = vpop.permute.xlu0 %7967  ;;  %v8462_v21 = vld [vmem:[%s12563_s3 + $0x844] ss:$12 sps:$4 sm:$0xff]  }
 0x329   :  { %v11347_v11 = vadd.f32 %v7419_v59, %v11239_v33  ;;  %v7422_v28 = vadd.f32 %v7421_v44, %v7420_v43  ;;  %v8426_v33 = vld [vmem:[%s12563_s3 + $0x798] ss:$12 sps:$4 sm:$0xff]   ;;  %v7963_v23 = vpop.permute.xlu1 %7962  ;;  %4191 = vmatprep.subr.bf16.mxu1 %v8428_v37  ;;  %v7970_v40 = vunpack.i.h.bf16 %v7968_v9  ;;  %7542 = vmatpush3.bf16.msra.mxu0 %v8445_v31  ;;  %v8456_v43 = vld [vmem:[%s12563_s3 + $0x828] ss:$12 sps:$4 sm:$0xff]   ;;  %v8463_v44 = vld [vmem:[%s12563_s3 + $0x920] ss:$12 sps:$4 sm:$0xff]  }
 0x32a   :  { %v7965_v56 = vunpack.i.h.bf16 %v7963_v23  ;;  %v7964_v19 = vunpack.i.l.bf16 %v7963_v23  ;;  %7543 = vmatprep.subr.bf16.mxu0 %v8449_v52  ;;  %v8458_v59 = vld [vmem:[%s12563_s3 + $0x82c] ss:$12 sps:$4 sm:$0xff]   ;;  %v8468_v23 = vld [vmem:[%s12563_s3 + $0x870] ss:$12 sps:$4 sm:$0xff]  }
 0x32b   :  { %v11355_v13 = vadd.f32 %v7422_v28, %v4361_v12  ;;  %v1509_v61 = vsel %vm1485_vm11, %v7955_v57, %v7970_v40  ;;  %v8446_v57 = vld [vmem:[%s12563_s3 + $0x7f8] ss:$12 sps:$4 sm:$0xff]   ;;  %v8460_v37 = vld [vmem:[%s12563_s3 + $0x840] ss:$12 sps:$4 sm:$0xff]   ;;  %v8466_v12 = vld [vmem:[%s12563_s3 + $0x85c] ss:$12 sps:$4 sm:$0xff]  }
 0x32c   :  { %4192 = vmatpush1.bf16.msra.mxu1 %v8426_v33  ;;  %v1497_v3 = vsel %vm1485_vm11, %v7940_v16, %v7964_v19  ;;  %v1501_v51 = vsel %vm1485_vm11, %v7945_v7, %v7965_v56  ;;  %v7969_v16 = vunpack.i.l.bf16 %v7968_v9  ;;  %v8450_v7 = vld [vmem:[%s12563_s3 + $0x818] ss:$12 sps:$4 sm:$0xff]   ;;  %v8471_v33 = vld [vmem:[%s12563_s3 + $0x950] ss:$12 sps:$4 sm:$0xff]   ;;  %v8472_v56 = vld [vmem:[%s12563_s3 + $0x888] ss:$12 sps:$4 sm:$0xff]  }
 0x32d   :  { %v1668_v15 = vpack.c.bf16 %v1501_v51, %v1497_v3  ;;  %4193 = vmatprep.subr.bf16.mxu1 %v8433_v32  ;;  %7544 = vmatpush3.bf16.msra.mxu0 %v8450_v7  ;;  %v8467_v28 = vld [vmem:[%s12563_s3 + $0x938] ss:$12 sps:$4 sm:$0xff]   ;;  %v8479_v31 = vld [vmem:[%s12563_s3 + $0x980] ss:$12 sps:$4 sm:$0xff]   ;;  %v8482_v9 = vld [vmem:[%s12563_s3 + $0x8bc] ss:$12 sps:$4 sm:$0xff]  }
 0x32e   :  { %v7423_v26 = vpop.f32.mrb[36].mxu0  ;;  %7545 = vmatprep.subr.bf16.mxu0 %v8454_v24  ;;  %v8474_v32 = vld [vmem:[%s12563_s3 + $0x88c] ss:$12 sps:$4 sm:$0xff]   ;;  %v8478_v19 = vld [vmem:[%s12563_s3 + $0x8a4] ss:$12 sps:$4 sm:$0xff]  }
 0x32f   :  { %v7424_v10 = vpop.f32.mrb[37].mxu0  ;;  %4169 = vmatmul.mubr.bf16.gmra.mrb[36].mxu1 %v1668_v15  ;;  %4584 = vmatmul.mubr.bf16.gmra.mrb[68].mxu0 %v1668_v15  ;;  %v8487_v3 = vld [vmem:[%s12563_s3 + $0x9b0] ss:$12 sps:$4 sm:$0xff]   ;;  %v8488_v15 = vld [vmem:[%s12563_s3 + $0x8e8] ss:$12 sps:$4 sm:$0xff]  }
 0x330   :  { %v7425_v49 = vadd.f32 %v7424_v10, %v7423_v26  ;;  %v7426_v63 = vpop.f32.mrb[38].mxu0  ;;  %4178 = vmatprep.mubr.bf16.mxu1 %v10598_v54  ;;  %4194 = vmatpush1.bf16.msra.mxu1 %v8431_v22  ;;  %v8475_v26 = vld [vmem:[%s12563_s3 + $0x968] ss:$12 sps:$4 sm:$0xff]   ;;  %v8476_v10 = vld [vmem:[%s12563_s3 + $0x8a0] ss:$12 sps:$4 sm:$0xff]  }
 0x331   :  { %v7427_v20 = vpop.f32.mrb[39].mxu0  ;;  %4591 = vmatprep.mubr.bf16.mxu0 %v10598_v54  ;;  %4195 = vmatprep.subr.bf16.mxu1 %v8438_v30  ;;  %v8441_v54 = vld [vmem:[%s12563_s3 + $0x7e0] ss:$12 sps:$4 sm:$0xff]   ;;  %v8484_v51 = vld [vmem:[%s12563_s3 + $0x8d0] ss:$12 sps:$4 sm:$0xff]  }
 0x332   :  { %v11381_v6 = vadd.f32 %v7425_v49, %v4366_v2  ;;  %v7428_v8 = vadd.f32 %v7427_v20, %v7426_v63  ;;  %7546 = vmatpush3.bf16.msra.mxu0 %v8455_v34  ;;  %v8483_v2 = vld [vmem:[%s12563_s3 + $0x998] ss:$12 sps:$4 sm:$0xff]   ;;  %v8486_v63 = vld [vmem:[%s12563_s3 + $0x8d4] ss:$12 sps:$4 sm:$0xff]   ;;  %v8503_v24 = vld [vmem:[%s12563_s3 + $0xa10] ss:$12 sps:$4 sm:$0xff]  }
 0x333   :  { %4657 = vmatprep.subr.bf16.mxu0 %v12714_v35  ;;  %v8480_v49 = vld [vmem:[%s12563_s3 + $0x8b8] ss:$12 sps:$4 sm:$0xff]   ;;  %v8491_v20 = vld [vmem:[%s12563_s3 + $0x9c8] ss:$12 sps:$4 sm:$0xff]   ;;  %v8492_v40 = vld [vmem:[%s12563_s3 + $0x900] ss:$12 sps:$4 sm:$0xff]  }
 0x334   :  { %v11390_v27 = vadd.f32 %v7428_v8, %v11273_v18  ;;  %v1505_v18 = vsel %vm1485_vm11, %v7950_v48, %v7969_v16  ;;  %4196 = vmatpush1.bf16.msra.mxu1 %v8436_v62  ;;  %v8453_v48 = vld [vmem:[%s12563_s3 + $0x814] ss:$12 sps:$4 sm:$0xff]   ;;  %v8490_v22 = vld [vmem:[%s12563_s3 + $0x8ec] ss:$12 sps:$4 sm:$0xff]   ;;  %v8494_v30 = vld [vmem:[%s12563_s3 + $0x904] ss:$12 sps:$4 sm:$0xff]  }
 0x335   :  { %v1682_v36 = vpack.c.bf16 %v1509_v61, %v1505_v18  ;;  %4197 = vmatprep.subr.bf16.mxu1 %v8443_v39  ;;  %v8495_v8 = vld [vmem:[%s12563_s3 + $0x9e0] ss:$12 sps:$4 sm:$0xff]   ;;  %v8498_v16 = vld [vmem:[%s12563_s3 + $0x91c] ss:$12 sps:$4 sm:$0xff]   ;;  %v8499_v52 = vld [vmem:[%s12563_s3 + $0x9f8] ss:$12 sps:$4 sm:$0xff]  }
 0x336   :  { %v8496_v7 = vld [vmem:[%s12563_s3 + $0x918] ss:$12 sps:$4 sm:$0xff]   ;;  %v8502_v62 = vld [vmem:[%s12563_s3 + $0x934] ss:$12 sps:$4 sm:$0xff]  }
 0x337   :  { %4179 = vmatmul.mubr.bf16.gmra.mrb[40].mxu1 %v1682_v36  ;;  %4592 = vmatmul.mubr.bf16.gmra.mrb[72].mxu0 %v1682_v36  ;;  %v8504_v39 = vld [vmem:[%s12563_s3 + $0x948] ss:$12 sps:$4 sm:$0xff]   ;;  %v8509_v18 = vld [vmem:[%s12563_s3 + $0x964] ss:$12 sps:$4 sm:$0xff]  }
 0x338   :  { %4198 = vmatpush1.bf16.msra.mxu1 %v8441_v54  ;;  %4221 = vmatprep.mubr.bf16.mxu1 %v10608_v46  ;;  %v8510_v61 = vld [vmem:[%s12563_s3 + $0x978] ss:$12 sps:$4 sm:$0xff]   ;;  %v8515_v36 = vld [vmem:[%s12563_s3 + $0x994] ss:$12 sps:$4 sm:$0xff]  }
 0x339   :  { %4632 = vmatprep.mubr.bf16.mxu0 %v10608_v46  ;;  %4199 = vmatprep.subr.bf16.mxu1 %v8448_v14  ;;  %v8459_v46 = vld [vmem:[%s12563_s3 + $0x908] ss:$12 sps:$4 sm:$0xff]  }
 0x33c   :  { %4200 = vmatpush1.bf16.msra.mxu1 %v8446_v57  ;;  %v8513_v57 = vld [vmem:[%s12563_s3 + $0x990] ss:$12 sps:$4 sm:$0xff]  }
 0x33d   :  { %4201 = vmatprep.subr.bf16.mxu1 %v8453_v48 }
 0x33f   :  { %4633 = vmatmul.mubr.bf16.vlgmr.msra.gmra.mrb[76].mxu0 %v10589_v53 }
 0x340   :  { %4202 = vmatpush1.bf16.msra.mxu1 %v8451_v25  ;;  %4640 = vmatprep.mubr.bf16.mxu0 %v10632_v60 }
 0x341   :  { %4203 = vmatprep.subr.bf16.mxu1 %v8458_v59  ;;  %4658 = vmatpush1.bf16.msra.mxu0 %v8459_v46  ;;  %v8518_v59 = vld [vmem:[%s12563_s3 + $0x9ac] ss:$12 sps:$4 sm:$0xff]  }
 0x342   :  { %4659 = vmatprep.subr.bf16.mxu0 %v12714_v35 }
 0x344   :  { %4204 = vmatpush1.bf16.msra.mxu1 %v8456_v43  ;;  %v8516_v43 = vld [vmem:[%s12563_s3 + $0x9a8] ss:$12 sps:$4 sm:$0xff]  }
 0x345   :  { %4205 = vmatprep.subr.bf16.mxu1 %v8462_v21  ;;  %4660 = vmatpush1.bf16.msra.mxu0 %v8463_v44  ;;  %v8519_v21 = vld [vmem:[%s12563_s3 + $0x9c0] ss:$12 sps:$4 sm:$0xff]   ;;  %v8522_v44 = vld [vmem:[%s12563_s3 + $0x9d8] ss:$12 sps:$4 sm:$0xff]  }
 0x346   :  { %4661 = vmatprep.subr.bf16.mxu0 %v12714_v35 }
 0x347   :  { %4641 = vmatmul.mubr.bf16.gmra.mrb[80].mxu0 %v10639_v47 }
 0x348   :  { %4206 = vmatpush1.bf16.msra.mxu1 %v8460_v37  ;;  %4648 = vmatprep.mubr.bf16.mxu0 %v10647_v5 }
 0x349   :  { %4207 = vmatprep.subr.bf16.mxu1 %v8466_v12  ;;  %4662 = vmatpush1.bf16.msra.mxu0 %v8467_v28  ;;  %v8527_v12 = vld [vmem:[%s12563_s3 + $0x9f4] ss:$12 sps:$4 sm:$0xff]  }
 0x34a   :  { %4663 = vmatprep.subr.bf16.mxu0 %v12714_v35 }
 0x34c   :  { %4208 = vmatpush1.bf16.msra.mxu1 %v8464_v29 }
 0x34d   :  { %4209 = vmatprep.subr.bf16.mxu1 %v8470_v1  ;;  %4664 = vmatpush1.bf16.msra.mxu0 %v8471_v33 }
 0x34e   :  { %4665 = vmatprep.subr.bf16.mxu0 %v12714_v35 }
 0x34f   :  { %4649 = vmatmul.mubr.bf16.gmra.mrb[84].mxu0 %v10657_v17 }
 0x350   :  { %4210 = vmatpush1.bf16.msra.mxu1 %v8468_v23  ;;  %7140 = vmatprep.mubr.msk.bf16.mxu0 %vm1485_vm11, %v10805_v42  ;;  %v8525_v23 = vld [vmem:[%s12563_s3 + $0x9f0] ss:$12 sps:$4 sm:$0xff]  }
 0x351   :  { %4211 = vmatprep.subr.bf16.mxu1 %v8474_v32  ;;  %4666 = vmatpush1.bf16.msra.mxu0 %v8475_v26 }
 0x352   :  { %4667 = vmatprep.subr.bf16.mxu0 %v12714_v35 }
 0x354   :  { %4212 = vmatpush1.bf16.msra.mxu1 %v8472_v56  ;;  %v8530_v56 = vld [vmem:[%s12563_s3 + $0xa0c] ss:$12 sps:$4 sm:$0xff]  }
 0x355   :  { %4213 = vmatprep.subr.bf16.mxu1 %v8478_v19  ;;  %4668 = vmatpush1.bf16.msra.mxu0 %v8479_v31  ;;  %v8528_v31 = vld [vmem:[%s12563_s3 + $0xa08] ss:$12 sps:$4 sm:$0xff]  }
 0x356   :  { %4669 = vmatprep.subr.bf16.mxu0 %v12714_v35 }
 0x358   :  { %4214 = vmatpush1.bf16.msra.mxu1 %v8476_v10 }
 0x359   :  { %4215 = vmatprep.subr.bf16.mxu1 %v8482_v9  ;;  %4670 = vmatpush1.bf16.msra.mxu0 %v8483_v2 }
 0x35a   :  { %4671 = vmatprep.subr.bf16.mxu0 %v12714_v35 }
 0x35c   :  { %4216 = vmatpush1.bf16.msra.mxu1 %v8480_v49 }
 0x35d   :  { %4217 = vmatprep.subr.bf16.mxu1 %v8486_v63  ;;  %4672 = vmatpush1.bf16.msra.mxu0 %v8487_v3 }
 0x35e   :  { %4673 = vmatprep.subr.bf16.mxu0 %v12714_v35 }
 0x360   :  { %4218 = vmatpush1.bf16.msra.mxu1 %v8484_v51 }
 0x361   :  { %4219 = vmatprep.subr.bf16.mxu1 %v8490_v22  ;;  %4674 = vmatpush1.bf16.msra.mxu0 %v8491_v20 }
 0x362   :  { %4675 = vmatprep.subr.bf16.mxu0 %v12714_v35 }
 0x364   :  { %4220 = vmatpush1.bf16.msra.mxu1 %v8488_v15 }
 0x365   :  { %4252 = vmatprep.subr.bf16.mxu1 %v8494_v30  ;;  %4676 = vmatpush1.bf16.msra.mxu0 %v8495_v8 }
 0x366   :  { %4677 = vmatprep.subr.bf16.mxu0 %v12714_v35 }
 0x367   :  { %4222 = vmatmul.mubr.bf16.vlgmr.msra.gmra.mrb[32].mxu1 %v10589_v53  ;;  %v8500_v53 = vld [vmem:[%s12563_s3 + $0x930] ss:$12 sps:$4 sm:$0xff]  }
 0x368   :  { %4231 = vmatprep.mubr.bf16.mxu1 %v10632_v60  ;;  %4253 = vmatpush1.bf16.msra.mxu1 %v8492_v40  ;;  %v8506_v60 = vld [vmem:[%s12563_s3 + $0x94c] ss:$12 sps:$4 sm:$0xff]  }
 0x369   :  { %4254 = vmatprep.subr.bf16.mxu1 %v8498_v16  ;;  %4678 = vmatpush1.bf16.msra.mxu0 %v8499_v52 }
 0x36a   :  { %4679 = vmatprep.subr.bf16.mxu0 %v12714_v35 }
 0x36c   :  { %4255 = vmatpush1.bf16.msra.mxu1 %v8496_v7 }
 0x36d   :  { %4256 = vmatprep.subr.bf16.mxu1 %v8502_v62  ;;  %4680 = vmatpush1.bf16.msra.mxu0 %v8503_v24 }
 0x36f   :  { %4232 = vmatmul.mubr.bf16.gmra.mrb[36].mxu1 %v10639_v47  ;;  %v8507_v47 = vld [vmem:[%s12563_s3 + $0x960] ss:$12 sps:$4 sm:$0xff]  }
 0x370   :  { %4241 = vmatprep.mubr.bf16.mxu1 %v10647_v5  ;;  %4257 = vmatpush1.bf16.msra.mxu1 %v8500_v53  ;;  %v8512_v5 = vld [vmem:[%s12563_s3 + $0x97c] ss:$12 sps:$4 sm:$0xff]  }
 0x371   :  { %4258 = vmatprep.subr.bf16.mxu1 %v8506_v60  ;;  %4690 = vmatmul.mubr.bf16.vlgmr.msra.gmra.mrb[88].mxu0 %v10675_v4 }
 0x372   :  { %7141 = vmatprep.mubr.msk.bf16.mxu0 %vm1485_vm11, %v10967_v38 }
 0x374   :  { %4259 = vmatpush1.bf16.msra.mxu1 %v8504_v39 }
 0x375   :  { %4260 = vmatprep.subr.bf16.mxu1 %v8509_v18 }
 0x377   :  { %4242 = vmatmul.mubr.bf16.gmra.mrb[40].mxu1 %v10657_v17 }
 0x378   :  { %4261 = vmatpush1.bf16.msra.mxu1 %v8507_v47  ;;  %7137 = vmatprep.mubr.msk.bf16.mxu1 %vm1485_vm11, %v10805_v42  ;;  %v7445_v54 = vpop.f32.mrb[40].mxu0 }
 0x379   :  { %4262 = vmatprep.subr.bf16.mxu1 %v8512_v5  ;;  %4698 = vmatmul.mubr.bf16.gmra.mrb[92].mxu0 %v10686_v41  ;;  %v7446_v14 = vpop.f32.mrb[41].mxu0 }
 0x37a   :  { %7142 = vmatprep.mubr.msk.bf16.mxu0 %vm1485_vm11, %v10971_v55  ;;  %v7447_v17 = vadd.f32 %v7446_v14, %v7445_v54  ;;  %v7448_v34 = vpop.f32.mrb[42].mxu0 }
 0x37b   :  { %v7449_v42 = vpop.f32.mrb[43].mxu0 }
 0x37c   :  { %4263 = vmatpush1.bf16.msra.mxu1 %v8510_v61  ;;  %v4464_v48 = vadd.f32 %v7447_v17, %v11316_v50  ;;  %v7450_v25 = vadd.f32 %v7449_v42, %v7448_v34  ;;  %v8521_v50 = vld [vmem:[%s12563_s3 + $0x9c4] ss:$12 sps:$4 sm:$0xff]  }
 0x37d   :  { %4264 = vmatprep.subr.bf16.mxu1 %v8515_v36 }
 0x37e   :  { %v4467_v46 = vadd.f32 %v7450_v25, %v11324_v45  ;;  %v8524_v45 = vld [vmem:[%s12563_s3 + $0x9dc] ss:$12 sps:$4 sm:$0xff]  }
 0x380   :  { %4265 = vmatpush1.bf16.msra.mxu1 %v8513_v57 }
 0x381   :  { %4266 = vmatprep.subr.bf16.mxu1 %v8518_v59  ;;  %4706 = vmatmul.mubr.bf16.gmra.mrb[96].mxu0 %v10688_v0 }
 0x384   :  { %4267 = vmatpush1.bf16.msra.mxu1 %v8516_v43 }
 0x385   :  { %4268 = vmatprep.subr.bf16.mxu1 %v8521_v50 }
 0x388   :  { %4269 = vmatpush1.bf16.msra.mxu1 %v8519_v21 }
 0x389   :  { %4270 = vmatprep.subr.bf16.mxu1 %v8524_v45  ;;  %v8531_v45 = vld [vmem:[%s12565_s5] ss:$8 sps:$4 sm:$0xff]  }
 0x38c   :  { %v7451_v37 = vpop.f32.mrb[44].mxu0  ;;  %4271 = vmatpush1.bf16.msra.mxu1 %v8522_v44  ;;  %v8533_v44 = vld [vmem:[%s12565_s5 + $0x4] ss:$8 sps:$4 sm:$0xff]  }
 0x38d   :  { %v7452_v28 = vpop.f32.mrb[45].mxu0  ;;  %4272 = vmatprep.subr.bf16.mxu1 %v8527_v12 }
 0x38e   :  { %v7453_v29 = vadd.f32 %v7452_v28, %v7451_v37  ;;  %v7454_v1 = vpop.f32.mrb[46].mxu0  ;;  %v8536_v37 = vld [vmem:[%s12565_s5 + $0x14] ss:$8 sps:$4 sm:$0xff]  }
 0x38f   :  { %v7455_v33 = vpop.f32.mrb[47].mxu0 }
 0x390   :  { %v4472_v32 = vadd.f32 %v7453_v29, %v11347_v11  ;;  %v7456_v26 = vadd.f32 %v7455_v33, %v7454_v1  ;;  %4273 = vmatpush1.bf16.msra.mxu1 %v8525_v23  ;;  %v8534_v29 = vld [vmem:[%s12565_s5 + $0x10] ss:$8 sps:$4 sm:$0xff]   ;;  %v8539_v23 = vld [vmem:[%s12565_s5 + $0x24] ss:$8 sps:$4 sm:$0xff]  }
 0x391   :  { %4274 = vmatprep.subr.bf16.mxu1 %v8530_v56 }
 0x392   :  { %v4475_v19 = vadd.f32 %v7456_v26, %v11355_v13 }
 0x394   :  { %v7457_v10 = vpop.f32.mrb[48].mxu0  ;;  %4275 = vmatpush1.bf16.msra.mxu1 %v8528_v31 }
 0x395   :  { %v7458_v9 = vpop.f32.mrb[49].mxu0  ;;  %6260 = vmatprep.subr.bf16.mxu1 %v8533_v44 }
 0x396   :  { %v7459_v2 = vadd.f32 %v7458_v9, %v7457_v10  ;;  %v7460_v49 = vpop.f32.mrb[50].mxu0  ;;  %v8542_v10 = vld [vmem:[%s12565_s5 + $0x34] ss:$8 sps:$4 sm:$0xff]  }
 0x397   :  { %v7461_v63 = vpop.f32.mrb[51].mxu0  ;;  %4285 = vmatmul.mubr.bf16.vlgmr.msra.gmra.mrb[32].mxu1 %v10675_v4 }
 0x398   :  { %v4480_v11 = vadd.f32 %v7459_v2, %v11381_v6  ;;  %v7462_v3 = vadd.f32 %v7461_v63, %v7460_v49  ;;  %7138 = vmatprep.mubr.msk.bf16.mxu1 %vm1485_vm11, %v10967_v38  ;;  %6261 = vmatpush1.bf16.msra.mxu1 %v8531_v45  ;;  %v8540_v49 = vld [vmem:[%s12565_s5 + $0x30] ss:$8 sps:$4 sm:$0xff]  }
 0x399   :  { %6262 = vmatprep.subr.bf16.mxu1 %v8536_v37 }
 0x39a   :  { %v4483_v51 = vadd.f32 %v7462_v3, %v11390_v27  ;;  %v8545_v3 = vld [vmem:[%s12565_s5 + $0x44] ss:$8 sps:$4 sm:$0xff]  }
 0x39c   :  { %v7479_v13 = vpop.f32.mrb[52].mxu0  ;;  %6263 = vmatpush1.bf16.msra.mxu1 %v8534_v29 }
 0x39d   :  { %v7480_v22 = vpop.f32.mrb[53].mxu0  ;;  %6264 = vmatprep.subr.bf16.mxu1 %v8539_v23  ;;  %v8555_v23 = vld [vmem:[%s12565_s5 + $0x80] ss:$8 sps:$4 sm:$0xff]  }
 0x39e   :  { %v7481_v20 = vadd.f32 %v7480_v22, %v7479_v13  ;;  %v7482_v15 = vpop.f32.mrb[54].mxu0 }
 0x39f   :  { %v7483_v30 = vpop.f32.mrb[55].mxu0  ;;  %4295 = vmatmul.mubr.bf16.gmra.mrb[36].mxu1 %v10686_v41 }
 0x3a0   :  { %v4521_v8 = vadd.f32 %v7481_v20, %v4464_v48  ;;  %v7484_v40 = vadd.f32 %v7483_v30, %v7482_v15  ;;  %7139 = vmatprep.mubr.msk.bf16.mxu1 %vm1485_vm11, %v10971_v55  ;;  %v8543_v20 = vld [vmem:[%s12565_s5 + $0x40] ss:$8 sps:$4 sm:$0xff]   ;;  %v8548_v30 = vld [vmem:[%s12565_s5 + $0x54] ss:$8 sps:$4 sm:$0xff]  }
 0x3a2   :  { %v4524_v16 = vadd.f32 %v7484_v40, %v4467_v46 }
 0x3a4   :  { %v7485_v6 = vpop.f32.mrb[56].mxu0 }
 0x3a5   :  { %v7486_v27 = vpop.f32.mrb[57].mxu0 }
 0x3a6   :  { %v7487_v52 = vadd.f32 %v7486_v27, %v7485_v6  ;;  %v7488_v4 = vpop.f32.mrb[58].mxu0 }
 0x3a7   :  { %v7489_v7 = vpop.f32.mrb[59].mxu0  ;;  %4305 = vmatmul.mubr.bf16.gmra.mrb[40].mxu1 %v10688_v0 }
 0x3a8   :  { %v4529_v62 = vadd.f32 %v7487_v52, %v4472_v32  ;;  %v7490_v38 = vadd.f32 %v7489_v7, %v7488_v4  ;;  %v8551_v52 = vld [vmem:[%s12565_s5 + $0x64] ss:$8 sps:$4 sm:$0xff]  }
 0x3aa   :  { %v4532_v24 = vadd.f32 %v7490_v38, %v4475_v19  ;;  %v8537_v19 = vld [vmem:[%s12565_s5 + $0x20] ss:$8 sps:$4 sm:$0xff]  }
 0x3ab   :  { %6265 = vmatpush1.bf16.msra.mxu1 %v8537_v19  ;;  %v8549_v38 = vld [vmem:[%s12565_s5 + $0x60] ss:$8 sps:$4 sm:$0xff]  }
 0x3ac   :  { %v7491_v53 = vpop.f32.mrb[60].mxu0  ;;  %6266 = vmatprep.subr.bf16.mxu1 %v8542_v10 }
 0x3ad   :  { %v7492_v60 = vpop.f32.mrb[61].mxu0 }
 0x3ae   :  { %v7493_v39 = vadd.f32 %v7492_v60, %v7491_v53  ;;  %v7494_v18 = vpop.f32.mrb[62].mxu0  ;;  %v8554_v53 = vld [vmem:[%s12565_s5 + $0x74] ss:$8 sps:$4 sm:$0xff]  }
 0x3af   :  { %v7495_v47 = vpop.f32.mrb[63].mxu0  ;;  %6267 = vmatpush1.bf16.msra.mxu1 %v8540_v49 }
 0x3b0   :  { %v4537_v41 = vadd.f32 %v7493_v39, %v4480_v11  ;;  %v7496_v5 = vadd.f32 %v7495_v47, %v7494_v18  ;;  %6268 = vmatprep.subr.bf16.mxu1 %v8545_v3  ;;  %v8552_v18 = vld [vmem:[%s12565_s5 + $0x70] ss:$8 sps:$4 sm:$0xff]  }
 0x3b2   :  { %v4540_v61 = vadd.f32 %v7496_v5, %v4483_v51 }
 0x3b3   :  { %6269 = vmatpush1.bf16.msra.mxu1 %v8543_v20  ;;  %v8563_v20 = vld [vmem:[%s12565_s5 + $0xa4] ss:$8 sps:$4 sm:$0xff]  }
 0x3b4   :  { %6270 = vmatprep.subr.bf16.mxu1 %v8548_v30 }
 0x3e6   :  { %v7513_v54 = vpop.f32.mrb[64].mxu0 }
 0x3e7   :  { %v7514_v55 = vpop.f32.mrb[65].mxu0 }
 0x3e8   :  { %v7515_v36 = vadd.f32 %v7514_v55, %v7513_v54  ;;  %v7516_v14 = vpop.f32.mrb[66].mxu0 }
 0x3e9   :  { %v7517_v17 = vpop.f32.mrb[67].mxu0 }
 0x3ea   :  { %v4578_v34 = vadd.f32 %v7515_v36, %v4521_v8  ;;  %v7518_v42 = vadd.f32 %v7517_v17, %v7516_v14 }
 0x3ec   :  { %v4581_v57 = vadd.f32 %v7518_v42, %v4524_v16  ;;  %v8546_v16 = vld [vmem:[%s12565_s5 + $0x50] ss:$8 sps:$4 sm:$0xff]  }
 0x3ed   :  { %6271 = vmatpush1.bf16.msra.mxu1 %v8546_v16 }
 0x3ee   :  { %6272 = vmatprep.subr.bf16.mxu1 %v8551_v52  ;;  %v8564_v52 = vld [vmem:[%s12565_s5 + $0xb0] ss:$8 sps:$4 sm:$0xff]  }
 0x3f1   :  { %6273 = vmatpush1.bf16.msra.mxu1 %v8549_v38  ;;  %v8567_v38 = vld [vmem:[%s12565_s5 + $0xc0] ss:$8 sps:$4 sm:$0xff]  }
 0x3f2   :  { %6274 = vmatprep.subr.bf16.mxu1 %v8554_v53 }
 0x3f5   :  { %6275 = vmatpush1.bf16.msra.mxu1 %v8552_v18 }
 0x402   :  { %v7519_v48 = vpop.f32.mrb[68].mxu0 }
 0x403   :  { %v7520_v25 = vpop.f32.mrb[69].mxu0 }
 0x404   :  { %v7521_v0 = vadd.f32 %v7520_v25, %v7519_v48  ;;  %v7522_v59 = vpop.f32.mrb[70].mxu0 }
 0x405   :  { %v7523_v46 = vpop.f32.mrb[71].mxu0 }
 0x406   :  { %v4586_v43 = vadd.f32 %v7521_v0, %v4529_v62  ;;  %v7524_v50 = vadd.f32 %v7523_v46, %v7522_v59 }
 0x408   :  { %v4589_v21 = vadd.f32 %v7524_v50, %v4532_v24 }
 0x40a   :  { %v7525_v12 = vpop.f32.mrb[72].mxu0 }
 0x40b   :  { %v7526_v28 = vpop.f32.mrb[73].mxu0 }
 0x40c   :  { %v7527_v1 = vadd.f32 %v7526_v28, %v7525_v12  ;;  %v7528_v33 = vpop.f32.mrb[74].mxu0  ;;  %v12715_v28 = vld [vmem:[#allocation7_spill] sm:$0xff] }
 0x40d   :  { %v7529_v32 = vpop.f32.mrb[75].mxu0  ;;  %v2125_v29 = vrot.slane %v11222_v58, %v12715_v28 }
 0x40e   :  { %v4594_v26 = vadd.f32 %v7527_v1, %v4537_v41  ;;  %v7530_v56 = vadd.f32 %v7529_v32, %v7528_v33  ;;  %v12716_v1 = vld [vmem:[#allocation6_spill] sm:$0xff] }
 0x40f   :  { %v2129_v33 = vrot.slane %v11222_v58, %v12716_v1  ;;  %v8557_v32 = vld [vmem:[%s12565_s5 + $0x84] ss:$8 sps:$4 sm:$0xff]   ;;  %v8558_v58 = vld [vmem:[%s12565_s5 + $0x90] ss:$8 sps:$4 sm:$0xff]  }
 0x410   :  { %v4597_v31 = vadd.f32 %v7530_v56, %v4540_v61  ;;  %6276 = vmatprep.subr.bf16.mxu1 %v8557_v32  ;;  %v8588_v32 = vld [vmem:[%s12565_s5 + $0x130] ss:$8 sps:$4 sm:$0xff]  }
 0x411   :  { %6277 = vmatpush1.bf16.msra.mxu1 %v8555_v23  ;;  %v8590_v23 = vld [vmem:[%s12565_s5 + $0x134] ss:$8 sps:$4 sm:$0xff]  }
 0x412   :  { %v7547_v9 = vpop.f32.mrb[76].mxu0 }
 0x413   :  { %v7548_v2 = vpop.f32.mrb[77].mxu0 }
 0x414   :  { %v7549_v63 = vadd.f32 %v7548_v2, %v7547_v9  ;;  %v7550_v11 = vpop.f32.mrb[78].mxu0  ;;  %v8560_v9 = vld [vmem:[%s12565_s5 + $0x94] ss:$8 sps:$4 sm:$0xff]  }
 0x415   :  { %v7551_v51 = vpop.f32.mrb[79].mxu0  ;;  %6278 = vmatprep.subr.bf16.mxu1 %v8560_v9  ;;  %v8599_v9 = vld [vmem:[%s12565_s5 + $0x164] ss:$8 sps:$4 sm:$0xff]  }
 0x416   :  { %v7552_v13 = vadd.f32 %v7551_v51, %v7550_v11  ;;  %v4635_v22 = vadd.f32 %v7549_v63, %v4578_v34  ;;  %6279 = vmatpush1.bf16.msra.mxu1 %v8558_v58  ;;  %v8594_v58 = vld [vmem:[%s12565_s5 + $0x150] ss:$8 sps:$4 sm:$0xff]  }
 0x417   :  { %6280 = vmatprep.subr.bf16.mxu1 %v8563_v20  ;;  %v8606_v20 = vld [vmem:[%s12565_s5 + $0x190] ss:$8 sps:$4 sm:$0xff]  }
 0x418   :  { %v4638_v15 = vadd.f32 %v7552_v13, %v4581_v57 }
 0x41a   :  { %v7553_v8 = vpop.f32.mrb[80].mxu0 }
 0x41b   :  { %v7554_v40 = vpop.f32.mrb[81].mxu0 }
 0x41c   :  { %v7555_v6 = vadd.f32 %v7554_v40, %v7553_v8  ;;  %v7556_v27 = vpop.f32.mrb[82].mxu0  ;;  %v8566_v8 = vld [vmem:[%s12565_s5 + $0xb4] ss:$8 sps:$4 sm:$0xff]  }
 0x41d   :  { %v7557_v4 = vpop.f32.mrb[83].mxu0 }
 0x41e   :  { %v7558_v7 = vadd.f32 %v7557_v4, %v7556_v27  ;;  %v4643_v62 = vadd.f32 %v7555_v6, %v4586_v43 }
 0x420   :  { %v4646_v24 = vadd.f32 %v7558_v7, %v4589_v21 }
 0x422   :  { %v7559_v60 = vpop.f32.mrb[84].mxu0 }
 0x423   :  { %v7560_v39 = vpop.f32.mrb[85].mxu0 }
 0x424   :  { %v7561_v47 = vadd.f32 %v7560_v39, %v7559_v60  ;;  %v7562_v41 = vpop.f32.mrb[86].mxu0 }
 0x425   :  { %v7563_v5 = vpop.f32.mrb[87].mxu0 }
 0x426   :  { %v7564_v61 = vadd.f32 %v7563_v5, %v7562_v41  ;;  %v4651_v54 = vadd.f32 %v7561_v47, %v4594_v26  ;;  %v8572_v47 = vld [vmem:[%s12565_s5 + $0xd4] ss:$8 sps:$4 sm:$0xff]  }
 0x428   :  { %v4654_v55 = vadd.f32 %v7564_v61, %v4597_v31  ;;  %v8570_v61 = vld [vmem:[%s12565_s5 + $0xd0] ss:$8 sps:$4 sm:$0xff]  }
 0x444   :  { %v4691_v36 = vpop.f32.mrb[88].mxu0 }
 0x445   :  { %v11685_v14 = vadd.f32 %v4691_v36, %v4635_v22  ;;  %v4693_v17 = vpop.f32.mrb[89].mxu0  ;;  %v8561_v22 = vld [vmem:[%s12565_s5 + $0xa0] ss:$8 sps:$4 sm:$0xff]  }
 0x446   :  { %v4694_v34 = vpop.f32.mrb[90].mxu0  ;;  %6281 = vmatpush1.bf16.msra.mxu1 %v8561_v22  ;;  %v8608_v22 = vld [vmem:[%s12565_s5 + $0x194] ss:$8 sps:$4 sm:$0xff]  }
 0x447   :  { %v11687_v42 = vadd.f32 %v4694_v34, %v4638_v15  ;;  %v4696_v57 = vpop.f32.mrb[91].mxu0  ;;  %6282 = vmatprep.subr.bf16.mxu1 %v8566_v8  ;;  %v8609_v8 = vld [vmem:[%s12565_s5 + $0x1a0] ss:$8 sps:$4 sm:$0xff]  }
 0x44a   :  { %6283 = vmatpush1.bf16.msra.mxu1 %v8564_v52  ;;  %v8617_v52 = vld [vmem:[%s12565_s5 + $0x1c4] ss:$8 sps:$4 sm:$0xff]  }
 0x44c   :  { %v4699_v48 = vpop.f32.mrb[92].mxu0 }
 0x44d   :  { %v11689_v25 = vadd.f32 %v4699_v48, %v4643_v62  ;;  %v4701_v0 = vpop.f32.mrb[93].mxu0  ;;  %v8569_v62 = vld [vmem:[%s12565_s5 + $0xc4] ss:$8 sps:$4 sm:$0xff]   ;;  %v8573_v48 = vld [vmem:[%s12565_s5 + $0xe0] ss:$8 sps:$4 sm:$0xff]  }
 0x44e   :  { %v4702_v59 = vpop.f32.mrb[94].mxu0  ;;  %6284 = vmatprep.subr.bf16.mxu1 %v8569_v62  ;;  %v8575_v0 = vld [vmem:[%s12565_s5 + $0xe4] ss:$8 sps:$4 sm:$0xff]   ;;  %v8620_v62 = vld [vmem:[%s12565_s5 + $0x1d4] ss:$8 sps:$4 sm:$0xff]  }
 0x44f   :  { %v11691_v46 = vadd.f32 %v4702_v59, %v4646_v24  ;;  %v4704_v43 = vpop.f32.mrb[95].mxu0  ;;  %6285 = vmatpush1.bf16.msra.mxu1 %v8567_v38  ;;  %v8578_v59 = vld [vmem:[%s12565_s5 + $0xf4] ss:$8 sps:$4 sm:$0xff]   ;;  %v8618_v38 = vld [vmem:[%s12565_s5 + $0x1d0] ss:$8 sps:$4 sm:$0xff]  }
 0x450   :  { %6286 = vmatprep.subr.bf16.mxu1 %v8572_v47  ;;  %v8576_v43 = vld [vmem:[%s12565_s5 + $0xf0] ss:$8 sps:$4 sm:$0xff]  }
 0x453   :  { %6287 = vmatpush1.bf16.msra.mxu1 %v8570_v61 }
 0x454   :  { %v4707_v50 = vpop.f32.mrb[96].mxu0  ;;  %6288 = vmatprep.subr.bf16.mxu1 %v8575_v0 }
 0x455   :  { %v11693_v21 = vadd.f32 %v4707_v50, %v4651_v54  ;;  %v4709_v45 = vpop.f32.mrb[97].mxu0  ;;  %v8579_v50 = vld [vmem:[%s12565_s5 + $0x100] ss:$8 sps:$4 sm:$0xff]  }
 0x456   :  { %v4710_v44 = vpop.f32.mrb[98].mxu0  ;;  %v8581_v45 = vld [vmem:[%s12565_s5 + $0x104] ss:$8 sps:$4 sm:$0xff]  }
 0x457   :  { %v11695_v37 = vadd.f32 %v4710_v44, %v4654_v55  ;;  %v4712_v12 = vpop.f32.mrb[99].mxu0  ;;  %6289 = vmatpush1.bf16.msra.mxu1 %v8573_v48  ;;  %v8584_v44 = vld [vmem:[%s12565_s5 + $0x114] ss:$8 sps:$4 sm:$0xff]   ;;  %6301 = vmatprep.subr.bf16.mxu0 %v8581_v45 }
 0x458   :  { %6290 = vmatprep.subr.bf16.mxu1 %v8578_v59  ;;  %6302 = vmatpush1.bf16.msra.mxu0 %v8579_v50  ;;  %v8582_v12 = vld [vmem:[%s12565_s5 + $0x110] ss:$8 sps:$4 sm:$0xff]  }
 0x459   :  { %6303 = vmatprep.subr.bf16.mxu0 %v8584_v44 }
 0x45b   :  { %6291 = vmatpush1.bf16.msra.mxu1 %v8576_v43 }
 0x45c   :  { %6304 = vmatpush1.bf16.msra.mxu0 %v8582_v12 }
 0x46a   :  { %v4286_v26 = vpop.f32.mrb[32].mxu1 }
 0x46b   :  { %v11707_v56 = vadd.f32 %v4286_v26, %v2125_v29  ;;  %v4288_v19 = vpop.f32.mrb[33].mxu1  ;;  %v8593_v26 = vld [vmem:[%s12565_s5 + $0x144] ss:$8 sps:$4 sm:$0xff]  }
 0x46c   :  { %v11709_v31 = vadd.f32 %v4288_v19, %v2129_v33  ;;  %v4290_v10 = vpop.f32.mrb[34].mxu1  ;;  %v8591_v19 = vld [vmem:[%s12565_s5 + $0x140] ss:$8 sps:$4 sm:$0xff]  }
 0x46d   :  { %v11717_v2 = vadd.f32 %v4290_v10, %v2125_v29  ;;  %v4292_v49 = vpop.f32.mrb[35].mxu1  ;;  %v8596_v10 = vld [vmem:[%s12565_s5 + $0x154] ss:$8 sps:$4 sm:$0xff]  }
 0x46e   :  { %v7971_v63 = vpack.i.bf16 %v11709_v31, %v11707_v56  ;;  %v11721_v11 = vadd.f32 %v4292_v49, %v2129_v33  ;;  %v8597_v49 = vld [vmem:[%s12565_s5 + $0x160] ss:$8 sps:$4 sm:$0xff]  }
 0x46f   :  { %v7976_v3 = vpack.i.bf16 %v11717_v2, %v11685_v14  ;;  %v8006_v34 = vpack.i.bf16 %v11717_v2, %v11707_v56 }
 0x470   :  { %7972 = vrot.lane.b32.xlu1 %v7971_v63, %s8889_s27  ;;  %v7981_v51 = vpack.i.bf16 %v11687_v42, %v11721_v11  ;;  %v8602_v63 = vld [vmem:[%s12565_s5 + $0x174] ss:$8 sps:$4 sm:$0xff]  }
 0x471   :  { %7977 = vrot.lane.b32.xlu0 %v7976_v3, %s8889_s27  ;;  %v8600_v3 = vld [vmem:[%s12565_s5 + $0x170] ss:$8 sps:$4 sm:$0xff]  }
 0x472   :  { %v4296_v13 = vpop.f32.mrb[36].mxu1 }
 0x473   :  { %v11735_v15 = vadd.f32 %v4296_v13, %v2125_v29  ;;  %v4298_v30 = vpop.f32.mrb[37].mxu1  ;;  %v8603_v13 = vld [vmem:[%s12565_s5 + $0x180] ss:$8 sps:$4 sm:$0xff]  }
 0x474   :  { %v11740_v40 = vadd.f32 %v4298_v30, %v2129_v33  ;;  %v4300_v16 = vpop.f32.mrb[38].mxu1  ;;  %7982 = vrot.lane.b32.xlu1 %v7981_v51, %s8889_s27  ;;  %v8605_v51 = vld [vmem:[%s12565_s5 + $0x184] ss:$8 sps:$4 sm:$0xff]  }
 0x475   :  { %v11743_v6 = vadd.f32 %v4300_v16, %v2125_v29  ;;  %v4302_v27 = vpop.f32.mrb[39].mxu1  ;;  %v8611_v30 = vld [vmem:[%s12565_s5 + $0x1a4] ss:$8 sps:$4 sm:$0xff]   ;;  %v8614_v16 = vld [vmem:[%s12565_s5 + $0x1b4] ss:$8 sps:$4 sm:$0xff]  }
 0x476   :  { %v11748_v4 = vadd.f32 %v4302_v27, %v2129_v33  ;;  %v8612_v27 = vld [vmem:[%s12565_s5 + $0x1b0] ss:$8 sps:$4 sm:$0xff]  }
 0x478   :  { %v7986_v7 = vpack.i.bf16 %v11748_v4, %v11743_v6 }
 0x47a   :  { %v4306_v24 = vpop.f32.mrb[40].mxu1  ;;  %7987 = vrot.lane.b32.xlu0 %v7986_v7, %s8889_s27  ;;  %v8615_v7 = vld [vmem:[%s12565_s5 + $0x1c0] ss:$8 sps:$4 sm:$0xff]  }
 0x47b   :  { %v11759_v53 = vadd.f32 %v4306_v24, %v2125_v29  ;;  %v4308_v60 = vpop.f32.mrb[41].mxu1  ;;  %v8623_v24 = vld [vmem:[%s12565_s5 + $0x1e4] ss:$8 sps:$4 sm:$0xff]  }
 0x47c   :  { %v11761_v39 = vadd.f32 %v4308_v60, %v2129_v33  ;;  %v4310_v18 = vpop.f32.mrb[42].mxu1  ;;  %v8621_v60 = vld [vmem:[%s12565_s5 + $0x1e0] ss:$8 sps:$4 sm:$0xff]  }
 0x47d   :  { %v4312_v41 = vpop.f32.mrb[43].mxu1  ;;  %v7991_v5 = vpack.i.bf16 %v11759_v53, %v11691_v46  ;;  %v8001_v55 = vpack.i.bf16 %v11759_v53, %v11743_v6  ;;  %v11777_v36 = vadd.f32 %v4310_v18, %v2125_v29  ;;  %v8587_v29 = vld [vmem:[%s12565_s5 + $0x124] ss:$8 sps:$4 sm:$0xff]  }
 0x47e   :  { %v7996_v54 = vpack.i.bf16 %v11693_v21, %v11761_v39  ;;  %v11779_v17 = vadd.f32 %v4312_v41, %v2129_v33  ;;  %v8585_v33 = vld [vmem:[%s12565_s5 + $0x120] ss:$8 sps:$4 sm:$0xff]   ;;  %6305 = vmatprep.subr.bf16.mxu0 %v8587_v29 }
 0x47f   :  { %7992 = vrot.lane.b32.xlu1 %v7991_v5, %s8889_s27  ;;  %6306 = vmatpush1.bf16.msra.mxu0 %v8585_v33 }
 0x480   :  { %7997 = vrot.lane.b32.xlu0 %v7996_v54, %s8889_s27  ;;  %v8016_v57 = vpack.i.bf16 %v11779_v17, %v11777_v36  ;;  %6307 = vmatprep.subr.bf16.mxu0 %v8590_v23 }
 0x483   :  { %8002 = vrot.lane.b32.xlu1 %v8001_v55, %s8890_s14  ;;  %6308 = vmatpush1.bf16.msra.mxu0 %v8588_v32 }
 0x484   :  { %8007 = vrot.lane.b32.xlu0 %v8006_v34, %s8890_s14  ;;  %6309 = vmatprep.subr.bf16.mxu0 %v8593_v26 }
 0x487   :  { %6310 = vmatpush1.bf16.msra.mxu0 %v8591_v19 }
 0x488   :  { %8017 = vrot.lane.b32.xlu0 %v8016_v57, %s8889_s27  ;;  %6311 = vmatprep.subr.bf16.mxu0 %v8596_v10 }
 0x48b   :  { %6312 = vmatpush1.bf16.msra.mxu0 %v8594_v58 }
 0x48c   :  { %6313 = vmatprep.subr.bf16.mxu0 %v8599_v9 }
 0x48f   :  { %6314 = vmatpush1.bf16.msra.mxu0 %v8597_v49 }
 0x490   :  { %6315 = vmatprep.subr.bf16.mxu0 %v8602_v63 }
 0x493   :  { %6316 = vmatpush1.bf16.msra.mxu0 %v8600_v3 }
 0x494   :  { %6317 = vmatprep.subr.bf16.mxu0 %v8605_v51 }
 0x497   :  { %6318 = vmatpush1.bf16.msra.mxu0 %v8603_v13 }
 0x498   :  { %6319 = vmatprep.subr.bf16.mxu0 %v8608_v22 }
 0x49b   :  { %6320 = vmatpush1.bf16.msra.mxu0 %v8606_v20 }
 0x49c   :  { %6321 = vmatprep.subr.bf16.mxu0 %v8611_v30 }
 0x49f   :  { %6322 = vmatpush1.bf16.msra.mxu0 %v8609_v8 }
 0x4a0   :  { %6323 = vmatprep.subr.bf16.mxu0 %v8614_v16 }
 0x4a3   :  { %6324 = vmatpush1.bf16.msra.mxu0 %v8612_v27 }
 0x4a4   :  { %6325 = vmatprep.subr.bf16.mxu0 %v8617_v52 }
 0x4a7   :  { %6326 = vmatpush1.bf16.msra.mxu0 %v8615_v7 }
 0x4a8   :  { %6327 = vmatprep.subr.bf16.mxu0 %v8620_v62 }
 0x4ab   :  { %6328 = vmatpush1.bf16.msra.mxu0 %v8618_v38 }
 0x4ac   :  { %6329 = vmatprep.subr.bf16.mxu0 %v8623_v24 }
 0x4af   :  { %6330 = vmatpush1.bf16.msra.mxu0 %v8621_v60 }
 0x4e2   :  { %v7973_v18 = vpop.permute.xlu1 %7972 }
 0x4e3   :  { %v7975_v47 = vunpack.i.h.bf16 %v7973_v18  ;;  %v7974_v41 = vunpack.i.l.bf16 %v7973_v18  ;;  %v7978_v5 = vpop.permute.xlu0 %7977 }
 0x4e4   :  { %v7979_v61 = vunpack.i.l.bf16 %v7978_v5  ;;  %v7980_v34 = vunpack.i.h.bf16 %v7978_v5 }
 0x4e5   :  { %v4769_v54 = vsel %vm4768_vm12, %v7974_v41, %v7975_v47 }
 0x4e6   :  { %v7983_v55 = vpop.permute.xlu1 %7982  ;;  %v4824_v0 = vmax.f32 %v11707_v56, %v4769_v54  ;;  %v4770_v59 = vsel %vm4768_vm12, %v7975_v47, %v7979_v61 }
 0x4e7   :  { %v7985_v57 = vunpack.i.h.bf16 %v7983_v55  ;;  %v7984_v48 = vunpack.i.l.bf16 %v7983_v55  ;;  %v4825_v12 = vmax.f32 %v11709_v31, %v4770_v59 }
 0x4e8   :  { %v4860_v29 = vrot.slane %v4824_v0, 2 }
 0x4e9   :  { %v4771_v43 = vsel %vm4768_vm12, %v7980_v34, %v7984_v48  ;;  %v4772_v50 = vsel %vm4768_vm12, %v7984_v48, %v7985_v57  ;;  %v4863_v10 = vrot.slane %v4825_v12, 2 }
 0x4ea   :  { %v11896_v45 = vmax.f32 %v11717_v2, %v4771_v43  ;;  %v11899_v44 = vmax.f32 %v11721_v11, %v4772_v50 }
 0x4ec   :  { %v4861_v33 = vrot.slane %v11896_v45, 2  ;;  %v7988_v23 = vpop.permute.xlu0 %7987  ;;  %v4864_v56 = vrot.slane %v11899_v44, 2 }
 0x4ed   :  { %v7990_v32 = vunpack.i.h.bf16 %v7988_v23  ;;  %v7989_v26 = vunpack.i.l.bf16 %v7988_v23 }
 0x4ee   :  { %v4862_v19 = vsel %vm97_vm2, %v4860_v29, %v4861_v33  ;;  %v4865_v31 = vsel %vm97_vm2, %v4863_v10, %v4864_v56 }
 0x4ef   :  { %v4775_v2 = vsel %vm4768_vm12, %v7989_v26, %v7990_v32  ;;  %v4908_v11 = vmax.f32 %v4824_v0, %v4862_v19  ;;  %v4909_v20 = vmax.f32 %v4825_v12, %v4865_v31  ;;  %v8626_v26 = vld [vmem:[%s12565_s5 + $0x1f4] ss:$8 sps:$4 sm:$0xff]  }
 0x4f0   :  { %v4833_v3 = vmax.f32 %v11743_v6, %v4775_v2  ;;  %6331 = vmatprep.subr.bf16.mxu0 %v8626_v26 }
 0x4f1   :  { %v7993_v58 = vpop.permute.xlu1 %7992  ;;  %v4926_v52 = vmax.f32 %v4908_v11, 0.0  ;;  %v4927_v10 = vmax.f32 %v4909_v20, 0.0 }
 0x4f2   :  { %v7995_v9 = vunpack.i.h.bf16 %v7993_v58  ;;  %v7994_v49 = vunpack.i.l.bf16 %v7993_v58  ;;  %v7998_v63 = vpop.permute.xlu0 %7997  ;;  %v4875_v60 = vrot.slane %v4833_v3, 2 }
 0x4f3   :  { %v8000_v51 = vunpack.i.h.bf16 %v7998_v63  ;;  %v7999_v13 = vunpack.i.l.bf16 %v7998_v63 }
 0x4f4   :  { %v4776_v22 = vsel %vm4768_vm12, %v7990_v32, %v7994_v49  ;;  %v8624_v32 = vld [vmem:[%s12565_s5 + $0x1f0] ss:$8 sps:$4 sm:$0xff]  }
 0x4f5   :  { %v4834_v30 = vmax.f32 %v11748_v4, %v4776_v22  ;;  %v4777_v8 = vsel %vm4768_vm12, %v7995_v9, %v7999_v13  ;;  %v4778_v16 = vsel %vm4768_vm12, %v7999_v13, %v8000_v51  ;;  %v8003_v27 = vpop.permute.xlu1 %8002  ;;  %6332 = vmatpush1.bf16.msra.mxu0 %v8624_v32 }
 0x4f6   :  { %v11917_v7 = vmax.f32 %v11759_v53, %v4777_v8  ;;  %v11920_v62 = vmax.f32 %v11761_v39, %v4778_v16  ;;  %v8005_v6 = vunpack.i.h.bf16 %v8003_v27  ;;  %v8004_v38 = vunpack.i.l.bf16 %v8003_v27  ;;  %v8008_v24 = vpop.permute.xlu0 %8007 }
 0x4f7   :  { %v4878_v18 = vrot.slane %v4834_v30, 2  ;;  %v8010_v47 = vunpack.i.h.bf16 %v8008_v24  ;;  %v8009_v41 = vunpack.i.l.bf16 %v8008_v24 }
 0x4f8   :  { %v4876_v4 = vrot.slane %v11917_v7, 2  ;;  %v4879_v5 = vrot.slane %v11920_v62, 2  ;;  %v4822_v54 = vsel %vm4817_vm13, %v8000_v51, %v8005_v6  ;;  %v4821_v55 = vsel %vm4817_vm13, %v7994_v49, %v8004_v38 }
 0x4f9   :  { %v11927_v53 = vmax.f32 %v11693_v21, %v4822_v54  ;;  %v4835_v39 = vmax.f32 %v11691_v46, %v4821_v55  ;;  %v4818_v34 = vsel %vm4817_vm13, %v7979_v61, %v8009_v41  ;;  %v4819_v48 = vsel %vm4817_vm13, %v7985_v57, %v8010_v47 }
 0x4fa   :  { %v4826_v0 = vmax.f32 %v11685_v14, %v4818_v34  ;;  %v11934_v59 = vmax.f32 %v11687_v42, %v4819_v48  ;;  %v11936_v43 = vpop.permute.xlu0 %8017  ;;  %v4880_v50 = vsel %vm97_vm2, %v4878_v18, %v4879_v5  ;;  %v4877_v21 = vsel %vm97_vm2, %v4875_v60, %v4876_v4 }
 0x4fb   :  { %v4882_v12 = vrot.slane %v11927_v53, 2  ;;  %v4881_v46 = vrot.slane %v4835_v39, 2  ;;  %v8020_v61 = vunpack.i.h.bf16 %v11936_v43  ;;  %v8019_v57 = vunpack.i.l.bf16 %v11936_v43 }
 0x4fc   :  { %v4866_v29 = vrot.slane %v4826_v0, 2  ;;  %v4867_v14 = vrot.slane %v11934_v59, 2  ;;  %v4918_v42 = vmax.f32 %v4834_v30, %v4880_v50  ;;  %v4917_v23 = vmax.f32 %v4833_v3, %v4877_v21 }
 0x4fd   :  { %v4779_v19 = vsel %vm4768_vm12, %v8019_v57, %v8020_v61  ;;  %v4883_v2 = vsel %vm97_vm2, %v4881_v46, %v4882_v12  ;;  %v4960_v49 = vrot.slane %v4926_v52, 4  ;;  %v4963_v30 = vrot.slane %v4927_v10, 4 }
 0x4fe   :  { %v4839_v58 = vmax.f32 %v11777_v36, %v4779_v19  ;;  %v4936_v31 = vmax.f32 %v4918_v42, 0.0  ;;  %v4935_v11 = vmax.f32 %v4917_v23, 0.0  ;;  %v4868_v9 = vsel %vm97_vm2, %v4866_v29, %v4867_v14  ;;  %v8627_v19 = vld [vmem:[%s12565_s5 + $0x200] ss:$8 sps:$4 sm:$0xff]  }
 0x4ff   :  { %v4910_v63 = vmax.f32 %v4826_v0, %v4868_v9  ;;  %v4919_v3 = vmax.f32 %v4835_v39, %v4883_v2  ;;  %v8021_v46 = vpack.i.bf16 %v11740_v40, %v11735_v15 }
 0x500   :  { %v4884_v51 = vrot.slane %v4839_v58, 2  ;;  %v4953_v13 = vrot.slane %v4936_v31, 7  ;;  %v4950_v22 = vrot.slane %v4935_v11, 7  ;;  %v4961_v20 = vrot.slane %v4935_v11, 3 }
 0x501   :  { %v4964_v8 = vrot.slane %v4936_v31, 3  ;;  %v4928_v16 = vmax.f32 %v4910_v63, 0.0  ;;  %v4937_v27 = vmax.f32 %v4919_v3, 0.0  ;;  %v8632_v31 = vld [vmem:[%s12565_s5 + $0x214] ss:$8 sps:$4 sm:$0xff]  }
 0x502   :  { %v11962_v6 = vmax.f32 %v4839_v58, %v4884_v51  ;;  %v4954_v38 = vsel %vm4951_vm14, %v4953_v13, %v4927_v10  ;;  %v4962_v24 = vsel %vm4951_vm14, %v4961_v20, %v4960_v49  ;;  %v4952_v60 = vsel %vm4951_vm14, %v4950_v22, %v4926_v52  ;;  %v8629_v52 = vld [vmem:[%s12565_s5 + $0x204] ss:$8 sps:$4 sm:$0xff]   ;;  %v8630_v63 = vld [vmem:[%s12565_s5 + $0x210] ss:$8 sps:$4 sm:$0xff]  }
 0x503   :  { %v5033_v18 = vpack.c.bf16 %v4954_v38, %v4954_v38  ;;  %v4965_v47 = vsel %vm4951_vm14, %v4964_v8, %v4963_v30  ;;  %v5032_v41 = vpack.c.bf16 %v4952_v60, %v4952_v60  ;;  %v4955_v54 = vrot.slane %v4937_v27, 7  ;;  %6342 = vmatprep.subr.bf16.mxu0 %v8629_v52  ;;  %v8635_v22 = vld [vmem:[%s12565_s5 + $0x224] ss:$8 sps:$4 sm:$0xff]  }
 0x504   :  { %v8011_v55 = vpack.i.bf16 %v4965_v47, %v4962_v24  ;;  %v4966_v39 = vrot.slane %v4928_v16, 4  ;;  %v4967_v34 = vrot.slane %v4937_v27, 3  ;;  %v4885_v0 = vsel %vm97_vm2, %v4876_v4, %v4884_v51  ;;  %v8633_v47 = vld [vmem:[%s12565_s5 + $0x220] ss:$8 sps:$4 sm:$0xff]  }
 0x505   :  { %6292 = vmatprep.mubr.bf16.mxu1 %v5033_v18  ;;  %v4956_v48 = vsel %vm4951_vm14, %v4955_v54, %v4928_v16  ;;  %v4920_v21 = vmax.f32 %v11917_v7, %v4885_v0  ;;  %v8026_v4 = vpack.i.bf16 %v11689_v25, %v11695_v37  ;;  %v4941_v3 = vmax.f32 %v11962_v6, 0.0 }
 0x506   :  { %8012 = vrot.lane.b32.xlu1 %v8011_v55, %s8888_s22  ;;  %6293 = vmatmul.mubr.bf16.vlgmr.msra.gmra.mrb[44].mxu1 %v5032_v41  ;;  %v4968_v50 = vsel %vm4951_vm14, %v4967_v34, %v4966_v39 }
 0x507   :  { %4973 = vrot.lane.b32.xlu0 %v4968_v50, %s8888_s22  ;;  %v4938_v8 = vmax.f32 %v4920_v21, 0.0  ;;  %v5021_v41 = vrot.slane %v4941_v3, 7  ;;  %v8636_v21 = vld [vmem:[%s12565_s5 + $0x230] ss:$8 sps:$4 sm:$0xff]  }
 0x509   :  { %v4996_v55 = vrot.slane %v4938_v8, 3  ;;  %v4986_v0 = vrot.slane %v4938_v8, 7 }
 0x50a   :  { %8022 = vrot.lane.b32.xlu1 %v8021_v46, %s8889_s27 }
 0x50b   :  { %4809 = vrot.lane.b32.xlu0 %v11777_v36, %s8890_s14 }
 0x50e   :  { %8027 = vrot.lane.b32.xlu1 %v8026_v4, %s8889_s27 }
 0x512   :  { %4803 = vrot.lane.b32.xlu1 %v11735_v15, %s8890_s14 }
 0x578   :  { %v11987_v7 = vpop.permute.xlu1 %8012 }
 0x579   :  { %v8015_v57 = vunpack.i.h.bf16 %v11987_v7  ;;  %v8014_v29 = vunpack.i.l.bf16 %v11987_v7  ;;  %v11995_v32 = vpop.permute.xlu0 %4973  ;;  %v8683_v7 = vld [vmem:[%s12565_s5 + $0x324] ss:$8 sps:$4 sm:$0xff]  }
 0x57b   :  { %v5030_v42 = vsel %vm1485_vm11, %v4956_v48, %v8014_v29  ;;  %v4975_v36 = vsel %vm1485_vm11, %v8014_v29, %v8015_v57 }
 0x57c   :  { %v5034_v23 = vpack.c.bf16 %v5030_v42, %v5030_v42  ;;  %v8023_v26 = vpop.permute.xlu1 %8022  ;;  %v5035_v10 = vpack.c.bf16 %v4975_v36, %v4975_v36 }
 0x57d   :  { %v8025_v2 = vunpack.i.h.bf16 %v8023_v26  ;;  %v8024_v58 = vunpack.i.l.bf16 %v8023_v26  ;;  %v4810_v30 = vpop.permute.xlu0 %4809 }
 0x57e   :  { %6333 = vmatprep.mubr.bf16.mxu0 %v5035_v10 }
 0x57f   :  { %v4773_v11 = vsel %vm4768_vm12, %v8024_v58, %v8025_v2  ;;  %6334 = vmatmul.mubr.bf16.vlgmr.msra.gmra.mrb[100].mxu0 %v5034_v23 }
 0x580   :  { %v4830_v9 = vmax.f32 %v11735_v15, %v4773_v11  ;;  %6343 = vmatpush1.bf16.msra.mxu0 %v8627_v19  ;;  %v8028_v49 = vpop.permute.xlu1 %8027 }
 0x581   :  { %v8030_v51 = vunpack.i.h.bf16 %v8028_v49  ;;  %v8029_v13 = vunpack.i.l.bf16 %v8028_v49  ;;  %6344 = vmatprep.subr.bf16.mxu0 %v8632_v31 }
 0x582   :  { %v4869_v20 = vrot.slane %v4830_v9, 2 }
 0x583   :  { %v4774_v15 = vsel %vm4768_vm12, %v8025_v2, %v8030_v51  ;;  %v4780_v16 = vsel %vm4768_vm12, %v8020_v61, %v8029_v13  ;;  %v4823_v27 = vsel %vm4817_vm13, %v8029_v13, %v4810_v30  ;;  %v8638_v61 = vld [vmem:[%s12565_s5 + $0x234] ss:$8 sps:$4 sm:$0xff]  }
 0x584   :  { %v4914_v38 = vmax.f32 %v4830_v9, %v4869_v20  ;;  %v4831_v6 = vmax.f32 %v11740_v40, %v4774_v15  ;;  %v4840_v24 = vmax.f32 %v11779_v17, %v4780_v16  ;;  %v4841_v60 = vmax.f32 %v11695_v37, %v4823_v27  ;;  %6345 = vmatpush1.bf16.msra.mxu0 %v8630_v63  ;;  %v4804_v18 = vpop.permute.xlu1 %4803  ;;  %v8647_v16 = vld [vmem:[%s12565_s5 + $0x264] ss:$8 sps:$4 sm:$0xff]  }
 0x585   :  { %v4820_v43 = vsel %vm4817_vm13, %v8030_v51, %v4804_v18  ;;  %6346 = vmatprep.subr.bf16.mxu0 %v8635_v22  ;;  %v4870_v40 = vsel %vm97_vm2, %v4861_v33, %v4869_v20  ;;  %v8642_v20 = vld [vmem:[%s12565_s5 + $0x250] ss:$8 sps:$4 sm:$0xff]  }
 0x586   :  { %v4871_v17 = vrot.slane %v4831_v6, 2  ;;  %v4886_v37 = vrot.slane %v4840_v24, 2  ;;  %v4888_v54 = vrot.slane %v4841_v60, 2  ;;  %v4932_v39 = vmax.f32 %v4914_v38, 0.0 }
 0x587   :  { %v4832_v34 = vmax.f32 %v11689_v25, %v4820_v43  ;;  %v4911_v48 = vmax.f32 %v11896_v45, %v4870_v40  ;;  %v8641_v45 = vld [vmem:[%s12565_s5 + $0x244] ss:$8 sps:$4 sm:$0xff]   ;;  %v8645_v43 = vld [vmem:[%s12565_s5 + $0x260] ss:$8 sps:$4 sm:$0xff]  }
 0x588   :  { %v4924_v50 = vmax.f32 %v4840_v24, %v4886_v37  ;;  %v4925_v52 = vmax.f32 %v4841_v60, %v4888_v54  ;;  %6347 = vmatpush1.bf16.msra.mxu0 %v8633_v47  ;;  %v4872_v33 = vsel %vm97_vm2, %v4864_v56, %v4871_v17  ;;  %v4887_v46 = vsel %vm97_vm2, %v4879_v5, %v4886_v37  ;;  %v8653_v37 = vld [vmem:[%s12565_s5 + $0x284] ss:$8 sps:$4 sm:$0xff]  }
 0x589   :  { %v4873_v4 = vrot.slane %v4832_v34, 2  ;;  %6348 = vmatprep.subr.bf16.mxu0 %v8638_v61  ;;  %v4929_v25 = vmax.f32 %v4911_v48, 0.0  ;;  %v4889_v29 = vsel %vm97_vm2, %v4882_v12, %v4888_v54  ;;  %v4912_v42 = vmax.f32 %v11899_v44, %v4872_v33  ;;  %v8639_v44 = vld [vmem:[%s12565_s5 + $0x240] ss:$8 sps:$4 sm:$0xff]   ;;  %v8650_v61 = vld [vmem:[%s12565_s5 + $0x274] ss:$8 sps:$4 sm:$0xff]  }
 0x58a   :  { %v4943_v36 = vmax.f32 %v4925_v52, 0.0  ;;  %v4921_v56 = vmax.f32 %v11920_v62, %v4887_v46  ;;  %v4922_v23 = vmax.f32 %v11927_v53, %v4889_v29  ;;  %v4915_v26 = vmax.f32 %v4831_v6, %v4871_v17  ;;  %v8648_v17 = vld [vmem:[%s12565_s5 + $0x270] ss:$8 sps:$4 sm:$0xff]   ;;  %v8651_v54 = vld [vmem:[%s12565_s5 + $0x280] ss:$8 sps:$4 sm:$0xff]  }
 0x58b   :  { %v4874_v5 = vsel %vm97_vm2, %v4867_v14, %v4873_v4  ;;  %v4916_v19 = vmax.f32 %v4832_v34, %v4873_v4  ;;  %v4995_v10 = vrot.slane %v4929_v25, 4  ;;  %v4987_v2 = vsel %vm4951_vm14, %v4986_v0, %v4929_v25  ;;  %v8644_v14 = vld [vmem:[%s12565_s5 + $0x254] ss:$8 sps:$4 sm:$0xff]   ;;  %v8659_v34 = vld [vmem:[%s12565_s5 + $0x2a4] ss:$8 sps:$4 sm:$0xff]  }
 0x58c   :  { %v5025_v58 = vrot.slane %v4943_v36, 7  ;;  %v4913_v31 = vmax.f32 %v11934_v59, %v4874_v5  ;;  %6349 = vmatpush1.bf16.msra.mxu0 %v8636_v21  ;;  %v5037_v12 = vpack.c.bf16 %v4987_v2, %v4987_v2  ;;  %v4930_v62 = vmax.f32 %v4912_v42, 0.0  ;;  %v8657_v48 = vld [vmem:[%s12565_s5 + $0x2a0] ss:$8 sps:$4 sm:$0xff]   ;;  %v8662_v0 = vld [vmem:[%s12565_s5 + $0x2b4] ss:$8 sps:$4 sm:$0xff]  }
 0x58d   :  { %v4934_v53 = vmax.f32 %v4916_v19, 0.0  ;;  %v4997_v11 = vsel %vm4951_vm14, %v4996_v55, %v4995_v10  ;;  %6350 = vmatprep.subr.bf16.mxu0 %v8641_v45  ;;  %v4939_v9 = vmax.f32 %v4921_v56, 0.0  ;;  %v4940_v49 = vmax.f32 %v4922_v23, 0.0  ;;  %v8656_v55 = vld [vmem:[%s12565_s5 + $0x294] ss:$8 sps:$4 sm:$0xff]  }
 0x58e   :  { %v4931_v63 = vmax.f32 %v4913_v31, 0.0  ;;  %5004 = vrot.lane.b32.xlu0 %v4997_v11, %s8888_s22  ;;  %6374 = vmatprep.mubr.bf16.mxu0 %v5037_v12  ;;  %v4998_v59 = vrot.slane %v4930_v62, 4  ;;  %v12064_v3 = vsel %vm4951_vm14, %v5021_v41, %v4932_v39  ;;  %v4942_v38 = vmax.f32 %v4924_v50, 0.0  ;;  %v8654_v39 = vld [vmem:[%s12565_s5 + $0x290] ss:$8 sps:$4 sm:$0xff]  }
 0x58f   :  { %v12067_v51 = vsel %vm4951_vm14, %v5025_v58, %v4934_v53  ;;  %v4999_v13 = vrot.slane %v4939_v9, 3  ;;  %v4990_v22 = vrot.slane %v4940_v49, 7  ;;  %v5002_v8 = vrot.slane %v4940_v49, 3  ;;  %v8660_v50 = vld [vmem:[%s12565_s5 + $0x2b0] ss:$8 sps:$4 sm:$0xff]  }
 0x590   :  { %6351 = vmatpush1.bf16.msra.mxu0 %v8639_v44  ;;  %v5001_v30 = vrot.slane %v4931_v63, 4  ;;  %v4988_v15 = vrot.slane %v4939_v9, 7  ;;  %v4933_v47 = vmax.f32 %v4915_v26, 0.0  ;;  %v5023_v41 = vrot.slane %v4942_v38, 7  ;;  %v8665_v52 = vld [vmem:[%s12565_s5 + $0x2c4] ss:$8 sps:$4 sm:$0xff]  }
 0x591   :  { %6352 = vmatprep.subr.bf16.mxu0 %v8644_v14  ;;  %v12076_v27 = vsel %vm4951_vm14, %v4990_v22, %v4931_v63  ;;  %v5000_v6 = vsel %vm4951_vm14, %v4999_v13, %v4998_v59  ;;  %v8663_v21 = vld [vmem:[%s12565_s5 + $0x2c0] ss:$8 sps:$4 sm:$0xff]   ;;  %v8668_v33 = vld [vmem:[%s12565_s5 + $0x2d4] ss:$8 sps:$4 sm:$0xff]   ;;  %v8666_v46 = vld [vmem:[%s12565_s5 + $0x2d0] ss:$8 sps:$4 sm:$0xff]   ;;  %v4976_v36 = vsel %vm1485_vm11, %v8015_v57, %v11995_v32 }
 0x592   :  { %v5003_v24 = vsel %vm4951_vm14, %v5002_v8, %v5001_v30  ;;  %v12081_v60 = vsel %vm4951_vm14, %v4988_v15, %v4930_v62  ;;  %v12091_v40 = vsel %vm4951_vm14, %v5023_v41, %v4933_v47  ;;  %v8671_v4 = vld [vmem:[%s12565_s5 + $0x2e4] ss:$8 sps:$4 sm:$0xff]   ;;  %v8669_v25 = vld [vmem:[%s12565_s5 + $0x2e0] ss:$8 sps:$4 sm:$0xff]   ;;  %v8674_v45 = vld [vmem:[%s12565_s5 + $0x2f4] ss:$8 sps:$4 sm:$0xff]   ;;  %v5036_v23 = vpack.c.bf16 %v4976_v36, %v4976_v36 }
 0x593   :  { %v8031_v18 = vpack.i.bf16 %v5003_v24, %v5000_v6  ;;  %v8672_v29 = vld [vmem:[%s12565_s5 + $0x2f0] ss:$8 sps:$4 sm:$0xff]   ;;  %v8677_v42 = vld [vmem:[%s12565_s5 + $0x304] ss:$8 sps:$4 sm:$0xff]   ;;  %v8675_v56 = vld [vmem:[%s12565_s5 + $0x300] ss:$8 sps:$4 sm:$0xff]  }
 0x594   :  { %6353 = vmatpush1.bf16.msra.mxu0 %v8642_v20  ;;  %v8680_v26 = vld [vmem:[%s12565_s5 + $0x314] ss:$8 sps:$4 sm:$0xff]   ;;  %v8678_v5 = vld [vmem:[%s12565_s5 + $0x310] ss:$8 sps:$4 sm:$0xff]   ;;  %v8681_v57 = vld [vmem:[%s12565_s5 + $0x320] ss:$8 sps:$4 sm:$0xff]  }
 0x595   :  { %8032 = vrot.lane.b32.xlu1 %v8031_v18, %s8888_s22  ;;  %6354 = vmatprep.subr.bf16.mxu0 %v8647_v16  ;;  %v8686_v32 = vld [vmem:[%s12565_s5 + $0x334] ss:$8 sps:$4 sm:$0xff]   ;;  %v8684_v19 = vld [vmem:[%s12565_s5 + $0x330] ss:$8 sps:$4 sm:$0xff]   ;;  %v8689_v10 = vld [vmem:[%s12565_s5 + $0x344] ss:$8 sps:$4 sm:$0xff]  }
 0x596   :  { %v8687_v2 = vld [vmem:[%s12565_s5 + $0x340] ss:$8 sps:$4 sm:$0xff]   ;;  %v8692_v58 = vld [vmem:[%s12565_s5 + $0x354] ss:$8 sps:$4 sm:$0xff]   ;;  %v8690_v31 = vld [vmem:[%s12565_s5 + $0x350] ss:$8 sps:$4 sm:$0xff]  }
 0x597   :  { %v8695_v12 = vld [vmem:[%s12565_s5 + $0x364] ss:$8 sps:$4 sm:$0xff]   ;;  %v8693_v44 = vld [vmem:[%s12565_s5 + $0x360] ss:$8 sps:$4 sm:$0xff]   ;;  %v8698_v62 = vld [vmem:[%s12565_s5 + $0x374] ss:$8 sps:$4 sm:$0xff]  }
 0x598   :  { %6355 = vmatpush1.bf16.msra.mxu0 %v8645_v43  ;;  %v8696_v53 = vld [vmem:[%s12565_s5 + $0x370] ss:$8 sps:$4 sm:$0xff]   ;;  %v8701_v14 = vld [vmem:[%s12565_s5 + $0x384] ss:$8 sps:$4 sm:$0xff]   ;;  %v8699_v59 = vld [vmem:[%s12565_s5 + $0x380] ss:$8 sps:$4 sm:$0xff]  }
 0x599   :  { %6356 = vmatprep.subr.bf16.mxu0 %v8650_v61  ;;  %v8704_v13 = vld [vmem:[%s12565_s5 + $0x394] ss:$8 sps:$4 sm:$0xff]   ;;  %v8702_v22 = vld [vmem:[%s12565_s5 + $0x390] ss:$8 sps:$4 sm:$0xff]   ;;  %v8707_v20 = vld [vmem:[%s12565_s5 + $0x3a4] ss:$8 sps:$4 sm:$0xff]  }
 0x59a   :  { %v8705_v30 = vld [vmem:[%s12565_s5 + $0x3a0] ss:$8 sps:$4 sm:$0xff]   ;;  %v8710_v8 = vld [vmem:[%s12565_s5 + $0x3b4] ss:$8 sps:$4 sm:$0xff]   ;;  %v8708_v15 = vld [vmem:[%s12565_s5 + $0x3b0] ss:$8 sps:$4 sm:$0xff]  }
 0x59b   :  { %v8713_v16 = vld [vmem:[%s12565_s5 + $0x3c4] ss:$8 sps:$4 sm:$0xff]   ;;  %v8711_v38 = vld [vmem:[%s12565_s5 + $0x3c0] ss:$8 sps:$4 sm:$0xff]   ;;  %v8716_v6 = vld [vmem:[%s12565_s5 + $0x3d4] ss:$8 sps:$4 sm:$0xff]  }
 0x59c   :  { %6357 = vmatpush1.bf16.msra.mxu0 %v8648_v17  ;;  %v8714_v24 = vld [vmem:[%s12565_s5 + $0x3d0] ss:$8 sps:$4 sm:$0xff]   ;;  %v8719_v18 = vld [vmem:[%s12565_s5 + $0x3e4] ss:$8 sps:$4 sm:$0xff]   ;;  %v8717_v47 = vld [vmem:[%s12565_s5 + $0x3e0] ss:$8 sps:$4 sm:$0xff]  }
 0x59d   :  { %6358 = vmatprep.subr.bf16.mxu0 %v8653_v37  ;;  %v8722_v41 = vld [vmem:[%s12565_s5 + $0x3f4] ss:$8 sps:$4 sm:$0xff]   ;;  %v8720_v43 = vld [vmem:[%s12565_s5 + $0x3f0] ss:$8 sps:$4 sm:$0xff]   ;;  %v8725_v61 = vld [vmem:[%s12565_s5 + $0x404] ss:$8 sps:$4 sm:$0xff]  }
 0x59e   :  { %v8832_v36 = vld [vmem:[%s12567_s7] sm:$0xff]  }
 0x5a0   :  { %6359 = vmatpush1.bf16.msra.mxu0 %v8651_v54 }
 0x5a1   :  { %6360 = vmatprep.subr.bf16.mxu0 %v8656_v55  ;;  %v8723_v55 = vld [vmem:[%s12565_s5 + $0x400] ss:$8 sps:$4 sm:$0xff]  }
 0x5a4   :  { %6361 = vmatpush1.bf16.msra.mxu0 %v8654_v39  ;;  %v5038_v39 = vpack.c.bf16 %v12081_v60, %v12081_v60 }
 0x5a5   :  { %6362 = vmatprep.subr.bf16.mxu0 %v8659_v34  ;;  %v8728_v34 = vld [vmem:[%s12565_s5 + $0x414] ss:$8 sps:$4 sm:$0xff]  }
 0x5a8   :  { %6363 = vmatpush1.bf16.msra.mxu0 %v8657_v48  ;;  %v8726_v48 = vld [vmem:[%s12565_s5 + $0x410] ss:$8 sps:$4 sm:$0xff]  }
 0x5a9   :  { %6364 = vmatprep.subr.bf16.mxu0 %v8662_v0  ;;  %v8731_v0 = vld [vmem:[%s12565_s5 + $0x424] ss:$8 sps:$4 sm:$0xff]  }
 0x5ac   :  { %6365 = vmatpush1.bf16.msra.mxu0 %v8660_v50 }
 0x5ad   :  { %6366 = vmatprep.subr.bf16.mxu0 %v8665_v52  ;;  %v8729_v52 = vld [vmem:[%s12565_s5 + $0x420] ss:$8 sps:$4 sm:$0xff]  }
 0x5b0   :  { %6367 = vmatpush1.bf16.msra.mxu0 %v8663_v21 }
 0x5b1   :  { %6368 = vmatprep.subr.bf16.mxu0 %v8668_v33 }
 0x5b4   :  { %6369 = vmatpush1.bf16.msra.mxu0 %v8666_v46  ;;  %v8734_v46 = vld [vmem:[%s12565_s5 + $0x434] ss:$8 sps:$4 sm:$0xff]  }
 0x5b5   :  { %6370 = vmatprep.subr.bf16.mxu0 %v8671_v4  ;;  %v8732_v4 = vld [vmem:[%s12565_s5 + $0x430] ss:$8 sps:$4 sm:$0xff]  }
 0x5b8   :  { %6371 = vmatpush1.bf16.msra.mxu0 %v8669_v25  ;;  %v8737_v25 = vld [vmem:[%s12565_s5 + $0x444] ss:$8 sps:$4 sm:$0xff]  }
 0x5b9   :  { %6372 = vmatprep.subr.bf16.mxu0 %v8674_v45  ;;  %v8735_v45 = vld [vmem:[%s12565_s5 + $0x440] ss:$8 sps:$4 sm:$0xff]  }
 0x5bc   :  { %6373 = vmatpush1.bf16.msra.mxu0 %v8672_v29  ;;  %v8740_v29 = vld [vmem:[%s12565_s5 + $0x454] ss:$8 sps:$4 sm:$0xff]  }
 0x5bd   :  { %6383 = vmatprep.subr.bf16.mxu0 %v8677_v42  ;;  %v8831_v42 = vld [vmem:[%s12567_s7 + $0x40] sm:$0xff]  }
 0x5be   :  { %7565 = vmatprep.subr.bf16.mxu1 %v8831_v42  ;;  %v8801_v42 = vld [vmem:[%s12565_s5 + $0x5a0] ss:$8 sps:$4 sm:$0xff]  }
 0x5bf   :  { %6375 = vmatmul.mubr.bf16.vlgmr.msra.gmra.mrb[100].mxu0 %v5036_v23  ;;  %v8738_v23 = vld [vmem:[%s12565_s5 + $0x450] ss:$8 sps:$4 sm:$0xff]   ;;  %7566 = vmatpush3.bf16.msra.mxu1 %v8832_v36  ;;  %v8806_v36 = vld [vmem:[%s12565_s5 + $0x5b4] ss:$8 sps:$4 sm:$0xff]  }
 0x5c0   :  { %6384 = vmatpush1.bf16.msra.mxu0 %v8675_v56  ;;  %v8833_v56 = vld [vmem:[%s12567_s7 + $0x48] sm:$0xff]  }
 0x5c1   :  { %6385 = vmatprep.subr.bf16.mxu0 %v8680_v26  ;;  %v8743_v26 = vld [vmem:[%s12565_s5 + $0x464] ss:$8 sps:$4 sm:$0xff]   ;;  %7567 = vmatprep.subr.bf16.mxu1 %v8833_v56  ;;  %v8804_v56 = vld [vmem:[%s12565_s5 + $0x5b0] ss:$8 sps:$4 sm:$0xff]  }
 0x5c4   :  { %6386 = vmatpush1.bf16.msra.mxu0 %v8678_v5  ;;  %v8834_v5 = vld [vmem:[%s12567_s7 + $0x8] sm:$0xff]  }
 0x5c5   :  { %6387 = vmatprep.subr.bf16.mxu0 %v8683_v7  ;;  %v8835_v7 = vld [vmem:[%s12567_s7 + $0x50] sm:$0xff]   ;;  %7568 = vmatpush3.bf16.msra.mxu1 %v8834_v5 }
 0x5c6   :  { %7569 = vmatprep.subr.bf16.mxu1 %v8835_v7  ;;  %v8812_v5 = vld [vmem:[%s12565_s5 + $0x5d4] ss:$8 sps:$4 sm:$0xff]   ;;  %v8810_v7 = vld [vmem:[%s12565_s5 + $0x5d0] ss:$8 sps:$4 sm:$0xff]  }
 0x5c8   :  { %6388 = vmatpush1.bf16.msra.mxu0 %v8681_v57  ;;  %v8741_v57 = vld [vmem:[%s12565_s5 + $0x460] ss:$8 sps:$4 sm:$0xff]  }
 0x5c9   :  { %6389 = vmatprep.subr.bf16.mxu0 %v8686_v32  ;;  %v8746_v32 = vld [vmem:[%s12565_s5 + $0x474] ss:$8 sps:$4 sm:$0xff]  }
 0x5cc   :  { %6390 = vmatpush1.bf16.msra.mxu0 %v8684_v19  ;;  %v8836_v19 = vld [vmem:[%s12567_s7 + $0x10] sm:$0xff]  }
 0x5cd   :  { %6391 = vmatprep.subr.bf16.mxu0 %v8689_v10  ;;  %v8837_v10 = vld [vmem:[%s12567_s7 + $0x58] sm:$0xff]   ;;  %7570 = vmatpush3.bf16.msra.mxu1 %v8836_v19 }
 0x5ce   :  { %7571 = vmatprep.subr.bf16.mxu1 %v8837_v10  ;;  %v8818_v19 = vld [vmem:[%s12565_s5 + $0x5f4] ss:$8 sps:$4 sm:$0xff]   ;;  %v8816_v10 = vld [vmem:[%s12565_s5 + $0x5f0] ss:$8 sps:$4 sm:$0xff]  }
 0x5d0   :  { %6392 = vmatpush1.bf16.msra.mxu0 %v8687_v2  ;;  %v8744_v2 = vld [vmem:[%s12565_s5 + $0x470] ss:$8 sps:$4 sm:$0xff]  }
 0x5d1   :  { %6393 = vmatprep.subr.bf16.mxu0 %v8692_v58  ;;  %v8749_v58 = vld [vmem:[%s12565_s5 + $0x484] ss:$8 sps:$4 sm:$0xff]  }
 0x5d4   :  { %6394 = vmatpush1.bf16.msra.mxu0 %v8690_v31  ;;  %v8838_v31 = vld [vmem:[%s12567_s7 + $0x18] sm:$0xff]  }
 0x5d5   :  { %6395 = vmatprep.subr.bf16.mxu0 %v8695_v12  ;;  %v8839_v12 = vld [vmem:[%s12567_s7 + $0x60] sm:$0xff]   ;;  %7572 = vmatpush3.bf16.msra.mxu1 %v8838_v31  ;;  %v5042_v31 = vpack.c.bf16 %v12064_v3, %v12064_v3 }
 0x5d6   :  { %7573 = vmatprep.subr.bf16.mxu1 %v8839_v12  ;;  %v8824_v12 = vld [vmem:[%s12565_s5 + $0x614] ss:$8 sps:$4 sm:$0xff]   ;;  %v8825_v3 = vld [vmem:[%s12565_s5 + $0x620] ss:$8 sps:$4 sm:$0xff]  }
 0x5d8   :  { %6396 = vmatpush1.bf16.msra.mxu0 %v8693_v44  ;;  %v8747_v44 = vld [vmem:[%s12565_s5 + $0x480] ss:$8 sps:$4 sm:$0xff]  }
 0x5d9   :  { %v12196_v11 = vpop.f32.mrb[44].mxu1  ;;  %6397 = vmatprep.subr.bf16.mxu0 %v8698_v62  ;;  %v8752_v62 = vld [vmem:[%s12565_s5 + $0x494] ss:$8 sps:$4 sm:$0xff]  }
 0x5da   :  { %v12201_v9 = vpop.f32.mrb[45].mxu1 }
 0x5db   :  { %v6298_v49 = vpop.f32.mrb[46].mxu1 }
 0x5dc   :  { %v6299_v63 = vpop.f32.mrb[47].mxu1  ;;  %6398 = vmatpush1.bf16.msra.mxu0 %v8696_v53  ;;  %v8840_v53 = vld [vmem:[%s12567_s7 + $0x20] sm:$0xff]   ;;  %v8750_v49 = vld [vmem:[%s12565_s5 + $0x490] ss:$8 sps:$4 sm:$0xff]  }
 0x5dd   :  { %6399 = vmatprep.subr.bf16.mxu0 %v8701_v14  ;;  %v8841_v14 = vld [vmem:[%s12567_s7 + $0x68] sm:$0xff]   ;;  %7574 = vmatpush3.bf16.msra.mxu1 %v8840_v53  ;;  %v8830_v53 = vld [vmem:[%s12565_s5 + $0x634] ss:$8 sps:$4 sm:$0xff]  }
 0x5de   :  { %v8755_v63 = vld [vmem:[%s12565_s5 + $0x4a4] ss:$8 sps:$4 sm:$0xff]   ;;  %7575 = vmatprep.subr.bf16.mxu1 %v8841_v14  ;;  %v5044_v14 = vpack.c.bf16 %v12067_v51, %v12067_v51  ;;  %v8846_v51 = vld [vmem:[%s12567_s7 + $0x38] sm:$0xff]  }
 0x5e0   :  { %6400 = vmatpush1.bf16.msra.mxu0 %v8699_v59  ;;  %v8842_v59 = vld [vmem:[%s12567_s7 + $0x28] sm:$0xff]  }
 0x5e1   :  { %6401 = vmatprep.subr.bf16.mxu0 %v8704_v13  ;;  %v8753_v13 = vld [vmem:[%s12565_s5 + $0x4a0] ss:$8 sps:$4 sm:$0xff]   ;;  %7576 = vmatpush3.bf16.msra.mxu1 %v8842_v59  ;;  %v8845_v59 = vld [vmem:[%s12567_s7 + $0x78] sm:$0xff]  }
 0x5e4   :  { %6402 = vmatpush1.bf16.msra.mxu0 %v8702_v22  ;;  %v8758_v22 = vld [vmem:[%s12565_s5 + $0x4b4] ss:$8 sps:$4 sm:$0xff]  }
 0x5e5   :  { %6403 = vmatprep.subr.bf16.mxu0 %v8707_v20  ;;  %v8756_v20 = vld [vmem:[%s12565_s5 + $0x4b0] ss:$8 sps:$4 sm:$0xff]  }
 0x5e8   :  { %6404 = vmatpush1.bf16.msra.mxu0 %v8705_v30  ;;  %v8761_v30 = vld [vmem:[%s12565_s5 + $0x4c4] ss:$8 sps:$4 sm:$0xff]  }
 0x5e9   :  { %6405 = vmatprep.subr.bf16.mxu0 %v8710_v8  ;;  %v8759_v8 = vld [vmem:[%s12565_s5 + $0x4c0] ss:$8 sps:$4 sm:$0xff]  }
 0x5ec   :  { %6406 = vmatpush1.bf16.msra.mxu0 %v8708_v15  ;;  %v8764_v15 = vld [vmem:[%s12565_s5 + $0x4d4] ss:$8 sps:$4 sm:$0xff]  }
 0x5ed   :  { %6407 = vmatprep.subr.bf16.mxu0 %v8713_v16  ;;  %v8762_v16 = vld [vmem:[%s12565_s5 + $0x4d0] ss:$8 sps:$4 sm:$0xff]  }
 0x5f0   :  { %6408 = vmatpush1.bf16.msra.mxu0 %v8711_v38  ;;  %v8767_v38 = vld [vmem:[%s12565_s5 + $0x4e4] ss:$8 sps:$4 sm:$0xff]  }
 0x5f1   :  { %6409 = vmatprep.subr.bf16.mxu0 %v8716_v6  ;;  %v8765_v6 = vld [vmem:[%s12565_s5 + $0x4e0] ss:$8 sps:$4 sm:$0xff]  }
 0x5f4   :  { %6410 = vmatpush1.bf16.msra.mxu0 %v8714_v24  ;;  %v8770_v24 = vld [vmem:[%s12565_s5 + $0x4f4] ss:$8 sps:$4 sm:$0xff]  }
 0x5f5   :  { %6411 = vmatprep.subr.bf16.mxu0 %v8719_v18  ;;  %v8768_v18 = vld [vmem:[%s12565_s5 + $0x4f0] ss:$8 sps:$4 sm:$0xff]  }
 0x5f8   :  { %6412 = vmatpush1.bf16.msra.mxu0 %v8717_v47  ;;  %v8773_v47 = vld [vmem:[%s12565_s5 + $0x504] ss:$8 sps:$4 sm:$0xff]  }
 0x5f9   :  { %6413 = vmatprep.subr.bf16.mxu0 %v8722_v41 }
 0x5fc   :  { %6414 = vmatpush1.bf16.msra.mxu0 %v8720_v43  ;;  %v8771_v43 = vld [vmem:[%s12565_s5 + $0x500] ss:$8 sps:$4 sm:$0xff]  }
 0x5fd   :  { %6424 = vmatprep.subr.bf16.mxu0 %v8725_v61 }
 0x600   :  { %v12251_v17 = vpop.permute.xlu0 %5004 }
 0x601   :  { %v5031_v37 = vsel %vm1485_vm11, %v12076_v27, %v12251_v17 }
 0x602   :  { %v5039_v54 = vpack.c.bf16 %v5031_v37, %v5031_v37  ;;  %v8776_v37 = vld [vmem:[%s12565_s5 + $0x514] ss:$8 sps:$4 sm:$0xff]  }
 0x604   :  { %6415 = vmatprep.mubr.bf16.mxu0 %v5039_v54  ;;  %v5043_v54 = vpack.c.bf16 %v12091_v40, %v12091_v40  ;;  %v8782_v40 = vld [vmem:[%s12565_s5 + $0x534] ss:$8 sps:$4 sm:$0xff]  }
 0x605   :  { %6416 = vmatmul.mubr.bf16.vlgmr.msra.gmra.mrb[100].mxu0 %v5038_v39  ;;  %v8777_v39 = vld [vmem:[%s12565_s5 + $0x520] ss:$8 sps:$4 sm:$0xff]  }
 0x606   :  { %6425 = vmatpush1.bf16.msra.mxu0 %v8723_v55  ;;  %v8779_v55 = vld [vmem:[%s12565_s5 + $0x524] ss:$8 sps:$4 sm:$0xff]  }
 0x607   :  { %v12267_v27 = vpop.permute.xlu1 %8032  ;;  %6426 = vmatprep.subr.bf16.mxu0 %v8728_v34  ;;  %v8780_v34 = vld [vmem:[%s12565_s5 + $0x530] ss:$8 sps:$4 sm:$0xff]  }
 0x608   :  { %v8035_v60 = vunpack.i.h.bf16 %v12267_v27  ;;  %v8034_v50 = vunpack.i.l.bf16 %v12267_v27  ;;  %v8783_v27 = vld [vmem:[%s12565_s5 + $0x540] ss:$8 sps:$4 sm:$0xff]  }
 0x60a   :  { %6427 = vmatpush1.bf16.msra.mxu0 %v8726_v48  ;;  %v5011_v21 = vsel %vm1485_vm11, %v8034_v50, %v8035_v60  ;;  %v5010_v41 = vsel %vm1485_vm11, %v12251_v17, %v8034_v50  ;;  %v8774_v17 = vld [vmem:[%s12565_s5 + $0x510] ss:$8 sps:$4 sm:$0xff]   ;;  %v8785_v48 = vld [vmem:[%s12565_s5 + $0x544] ss:$8 sps:$4 sm:$0xff]  }
 0x60b   :  { %6428 = vmatprep.subr.bf16.mxu0 %v8731_v0  ;;  %v5041_v33 = vpack.c.bf16 %v5011_v21, %v5011_v21  ;;  %v5040_v61 = vpack.c.bf16 %v5010_v41, %v5010_v41  ;;  %v8788_v0 = vld [vmem:[%s12565_s5 + $0x554] ss:$8 sps:$4 sm:$0xff]   ;;  %v8786_v60 = vld [vmem:[%s12565_s5 + $0x550] ss:$8 sps:$4 sm:$0xff]   ;;  %v8791_v50 = vld [vmem:[%s12565_s5 + $0x564] ss:$8 sps:$4 sm:$0xff]  }
 0x60c   :  { %v8794_v21 = vld [vmem:[%s12565_s5 + $0x574] ss:$8 sps:$4 sm:$0xff]  }
 0x60d   :  { %6456 = vmatprep.mubr.bf16.mxu0 %v5041_v33  ;;  %v8792_v33 = vld [vmem:[%s12565_s5 + $0x570] ss:$8 sps:$4 sm:$0xff]  }
 0x60e   :  { %6429 = vmatpush1.bf16.msra.mxu0 %v8729_v52  ;;  %v8789_v52 = vld [vmem:[%s12565_s5 + $0x560] ss:$8 sps:$4 sm:$0xff]  }
 0x60f   :  { %6430 = vmatprep.subr.bf16.mxu0 %v8734_v46  ;;  %v8797_v46 = vld [vmem:[%s12565_s5 + $0x584] ss:$8 sps:$4 sm:$0xff]  }
 0x612   :  { %6431 = vmatpush1.bf16.msra.mxu0 %v8732_v4  ;;  %v8795_v4 = vld [vmem:[%s12565_s5 + $0x580] ss:$8 sps:$4 sm:$0xff]  }
 0x613   :  { %6432 = vmatprep.subr.bf16.mxu0 %v8737_v25  ;;  %v8800_v25 = vld [vmem:[%s12565_s5 + $0x594] ss:$8 sps:$4 sm:$0xff]  }
 0x616   :  { %6433 = vmatpush1.bf16.msra.mxu0 %v8735_v45  ;;  %v8798_v45 = vld [vmem:[%s12565_s5 + $0x590] ss:$8 sps:$4 sm:$0xff]  }
 0x617   :  { %6434 = vmatprep.subr.bf16.mxu0 %v8740_v29  ;;  %v8803_v29 = vld [vmem:[%s12565_s5 + $0x5a4] ss:$8 sps:$4 sm:$0xff]  }
 0x61a   :  { %6435 = vmatpush1.bf16.msra.mxu0 %v8738_v23  ;;  %v8809_v23 = vld [vmem:[%s12565_s5 + $0x5c4] ss:$8 sps:$4 sm:$0xff]  }
 0x61b   :  { %6436 = vmatprep.subr.bf16.mxu0 %v8743_v26  ;;  %v8807_v26 = vld [vmem:[%s12565_s5 + $0x5c0] ss:$8 sps:$4 sm:$0xff]  }
 0x61e   :  { %6437 = vmatpush1.bf16.msra.mxu0 %v8741_v57  ;;  %v8815_v57 = vld [vmem:[%s12565_s5 + $0x5e4] ss:$8 sps:$4 sm:$0xff]  }
 0x61f   :  { %6438 = vmatprep.subr.bf16.mxu0 %v8746_v32  ;;  %v8813_v32 = vld [vmem:[%s12565_s5 + $0x5e0] ss:$8 sps:$4 sm:$0xff]  }
 0x622   :  { %6439 = vmatpush1.bf16.msra.mxu0 %v8744_v2  ;;  %v8821_v2 = vld [vmem:[%s12565_s5 + $0x604] ss:$8 sps:$4 sm:$0xff]  }
 0x623   :  { %6440 = vmatprep.subr.bf16.mxu0 %v8749_v58  ;;  %v8819_v58 = vld [vmem:[%s12565_s5 + $0x600] ss:$8 sps:$4 sm:$0xff]  }
 0x626   :  { %6441 = vmatpush1.bf16.msra.mxu0 %v8747_v44  ;;  %v8822_v44 = vld [vmem:[%s12565_s5 + $0x610] ss:$8 sps:$4 sm:$0xff]  }
 0x627   :  { %6442 = vmatprep.subr.bf16.mxu0 %v8752_v62  ;;  %v8827_v62 = vld [vmem:[%s12565_s5 + $0x624] ss:$8 sps:$4 sm:$0xff]  }
 0x62a   :  { %6443 = vmatpush1.bf16.msra.mxu0 %v8750_v49  ;;  %v8843_v49 = vld [vmem:[%s12567_s7 + $0x70] sm:$0xff]  }
 0x62b   :  { %6444 = vmatprep.subr.bf16.mxu0 %v8755_v63  ;;  %v8844_v63 = vld [vmem:[%s12567_s7 + $0x30] sm:$0xff]   ;;  %7577 = vmatprep.subr.bf16.mxu1 %v8843_v49 }
 0x62c   :  { %7578 = vmatpush3.bf16.msra.mxu1 %v8844_v63 }
 0x62d   :  { %7579 = vmatprep.subr.bf16.mxu1 %v8845_v59 }
 0x62e   :  { %6445 = vmatpush1.bf16.msra.mxu0 %v8753_v13  ;;  %v5245_v13 = vld [vmem:[%s12566_s6] sm:$0x3] }
 0x62f   :  { %6446 = vmatprep.subr.bf16.mxu0 %v8758_v22  ;;  %v5250_v22 = vrot.slane %v5245_v13, %v12715_v28 }
 0x630   :  { %7580 = vmatpush3.bf16.msra.mxu1 %v8846_v51 }
 0x632   :  { %6447 = vmatpush1.bf16.msra.mxu0 %v8756_v20  ;;  %v5254_v20 = vrot.slane %v5245_v13, %v12716_v1  ;;  %v7344_v1 = vld [vmem:[%s12568_s8] ss:$0 sm:$0xff]  ;;  %s8857_s8 = scalar_lea.vmem %s6747_s19, 32 }
 0x633   :  { %6448 = vmatprep.subr.bf16.mxu0 %v8761_v30  ;;  %v6295_v30 = vadd.f32 %v12196_v11, %v5250_v22  ;;  %p8858_p0 = scmp.ne.s32.totalorder %s6747_s19, %s8857_s8  ;;  %p8863_p2 = scmp.lt.s32.totalorder %s8857_s8, %s8857_s8 }
 0x635   :  { %p8864_p3 = por %p8863_p2, %p8862_p1 }
 0x636   :  { %6449 = vmatpush1.bf16.msra.mxu0 %v8759_v8  ;;  %v6297_v8 = vadd.f32 %v12201_v9, %v5254_v20 }
 0x637   :  { %6450 = vmatprep.subr.bf16.mxu0 %v8764_v15  ;;  %p8865_p4 = pnand %p8864_p3, %p8858_p0 }
 0x63a   :  { %6451 = vmatpush1.bf16.msra.mxu0 %v8762_v16 }
 0x63b   :  { %6452 = vmatprep.subr.bf16.mxu0 %v8767_v38 }
 0x63e   :  { %6453 = vmatpush1.bf16.msra.mxu0 %v8765_v6 }
 0x63f   :  { %6454 = vmatprep.subr.bf16.mxu0 %v8770_v24 }
 0x642   :  { %6455 = vmatpush1.bf16.msra.mxu0 %v8768_v18 }
 0x643   :  { %6465 = vmatprep.subr.bf16.mxu0 %v8773_v47 }
 0x645   :  { %6457 = vmatmul.mubr.bf16.vlgmr.msra.gmra.mrb[100].mxu0 %v5040_v61 }
 0x646   :  { %6466 = vmatpush1.bf16.msra.mxu0 %v8771_v43  ;;  %6497 = vmatprep.mubr.bf16.mxu0 %v5043_v54 }
 0x647   :  { %6467 = vmatprep.subr.bf16.mxu0 %v8776_v37 }
 0x64a   :  { %6468 = vmatpush1.bf16.msra.mxu0 %v8774_v17 }
 0x64b   :  { %6469 = vmatprep.subr.bf16.mxu0 %v8779_v55 }
 0x64e   :  { %6470 = vmatpush1.bf16.msra.mxu0 %v8777_v39 }
 0x64f   :  { %6471 = vmatprep.subr.bf16.mxu0 %v8782_v40 }
 0x652   :  { %6472 = vmatpush1.bf16.msra.mxu0 %v8780_v34 }
 0x653   :  { %6473 = vmatprep.subr.bf16.mxu0 %v8785_v48 }
 0x656   :  { %6474 = vmatpush1.bf16.msra.mxu0 %v8783_v27 }
 0x657   :  { %6475 = vmatprep.subr.bf16.mxu0 %v8788_v0 }
 0x65a   :  { %6476 = vmatpush1.bf16.msra.mxu0 %v8786_v60 }
 0x65b   :  { %6477 = vmatprep.subr.bf16.mxu0 %v8791_v50 }
 0x65e   :  { %6478 = vmatpush1.bf16.msra.mxu0 %v8789_v52 }
 0x65f   :  { %6479 = vmatprep.subr.bf16.mxu0 %v8794_v21 }
 0x662   :  { %6480 = vmatpush1.bf16.msra.mxu0 %v8792_v33 }
 0x663   :  { %6481 = vmatprep.subr.bf16.mxu0 %v8797_v46 }
 0x666   :  { %6482 = vmatpush1.bf16.msra.mxu0 %v8795_v4 }
 0x667   :  { %6483 = vmatprep.subr.bf16.mxu0 %v8800_v25 }
 0x66a   :  { %6484 = vmatpush1.bf16.msra.mxu0 %v8798_v45 }
 0x66b   :  { %6485 = vmatprep.subr.bf16.mxu0 %v8803_v29 }
 0x66e   :  { %6486 = vmatpush1.bf16.msra.mxu0 %v8801_v42 }
 0x66f   :  { %6487 = vmatprep.subr.bf16.mxu0 %v8806_v36 }
 0x672   :  { %6488 = vmatpush1.bf16.msra.mxu0 %v8804_v56 }
 0x673   :  { %6489 = vmatprep.subr.bf16.mxu0 %v8809_v23 }
 0x676   :  { %6490 = vmatpush1.bf16.msra.mxu0 %v8807_v26 }
 0x677   :  { %6491 = vmatprep.subr.bf16.mxu0 %v8812_v5 }
 0x67a   :  { %6492 = vmatpush1.bf16.msra.mxu0 %v8810_v7 }
 0x67b   :  { %6493 = vmatprep.subr.bf16.mxu0 %v8815_v57 }
 0x67e   :  { %6494 = vmatpush1.bf16.msra.mxu0 %v8813_v32 }
 0x67f   :  { %6495 = vmatprep.subr.bf16.mxu0 %v8818_v19 }
 0x682   :  { %6496 = vmatpush1.bf16.msra.mxu0 %v8816_v10 }
 0x683   :  { %6506 = vmatprep.subr.bf16.mxu0 %v8821_v2 }
 0x685   :  { %6498 = vmatmul.mubr.bf16.vlgmr.msra.gmra.mrb[100].mxu0 %v5042_v31 }
 0x686   :  { %6507 = vmatpush1.bf16.msra.mxu0 %v8819_v58  ;;  %6538 = vmatprep.mubr.bf16.mxu0 %v12714_v35  ;;  %v8828_v35 = vld [vmem:[%s12565_s5 + $0x630] ss:$8 sps:$4 sm:$0xff]  }
 0x687   :  { %6508 = vmatprep.subr.bf16.mxu0 %v8824_v12 }
 0x68a   :  { %6509 = vmatpush1.bf16.msra.mxu0 %v8822_v44 }
 0x68b   :  { %6510 = vmatprep.subr.bf16.mxu0 %v8827_v62 }
 0x68e   :  { %6511 = vmatpush1.bf16.msra.mxu0 %v8825_v3 }
 0x68f   :  { %6512 = vmatprep.subr.bf16.mxu0 %v8830_v53 }
 0x692   :  { %6513 = vmatpush1.bf16.msra.mxu0 %v8828_v35 }
 0x695   :  { %7343 = vmatmul.mubr.msk.bf16.vlgmr.msra.gmra.mrb[100].mxu0 %vm1485_vm11, %v5044_v14 }
 0x768   :  { %v6540_v15 = vpop.f32.mrb[100].mxu0 }
 0x769   :  { %v7600_v16 = vadd.f32 %v6540_v15, %v6295_v30  ;;  %v6542_v38 = vpop.f32.mrb[101].mxu0 }
 0x76a   :  { %v7602_v6 = vadd.f32 %v6542_v38, %v6297_v8  ;;  %v6544_v24 = vpop.f32.mrb[102].mxu0 }
 0x76b   :  { %v6547_v18 = vmax.f32 %v7600_v16, 0.0  ;;  %v6545_v47 = vpop.f32.mrb[103].mxu0 }
 0x76c   :  { %v6548_v41 = vmax.f32 %v7602_v6, 0.0 }
 0x76d   :  { %v6549_v61 = vpack.c.bf16 %v6547_v18, %v6547_v18 }
 0x76e   :  { %v6550_v43 = vpack.c.bf16 %v6548_v41, %v6548_v41 }
 0x770   :  { %6718 = vmatprep.mubr.bf16.mxu1 %v6550_v43 }
 0x771   :  { %6719 = vmatmul.mubr.bf16.vlgmr.msra.gmra.mrb[48].mxu1 %v6549_v61 }
 0x844   :  { %v7581_v37 = vpop.f32.mrb[48].mxu1 }
 0x845   :  { %v7582_v28 = vpop.f32.mrb[49].mxu1 }
 0x846   :  { %v7583_v11 = vadd.f32 %v7582_v28, %v7581_v37  ;;  %v7584_v9 = vpop.f32.mrb[50].mxu1 }
 0x847   :  { %v7585_v54 = vpop.f32.mrb[51].mxu1 }
 0x848   :  { %v6721_v17 = vadd.f32 %v7583_v11, %v7344_v1 }
 0x84a   :  { %v6727_v55 = vsel %vm6726_vm15, %v6721_v17, -inf }
 0x84b   :  { %6728 = vmax.xlane.f32.xlu0 %v6727_v55 }
 0x8d8   :  { %v6729_v39 = vpop.xlane.xlu0 %6728 }
 0x8d9   :  { %v6730_v40 = vsub.f32 %v6721_v17, %v6729_v39 }
 0x8db   :  { %v6731_v34 = vmul.f32 1.442695, %v6730_v40 }
 0x8dd   :  { %8847 = vpow2.f32 %v6731_v34 }
 0x8e7   :  { %v8848_v48 = vpop.eup %8847 }
 0x8e8   :  { %v6733_v27 = vsel %vm6726_vm15, %v8848_v48, 0.0 }
 0x8e9   :  { %6734 = vadd.xlane.f32.xlu1 %v6733_v27 }
 0x976   :  { %v6735_v0 = vpop.xlane.xlu1 %6734 }
 0x977   :  { %8849 = vlog2.f32 %v6735_v0 }
 0x981   :  { %v8850_v60 = vpop.eup %8849 }
 0x982   :  { %v6737_v50 = vmul.f32 0.6931472, %v8850_v60 }
 0x984   :  { %v6738_v52 = vsub.f32 %v6730_v40, %v6737_v50 }
 0x986   :  { %6739 = vst [vmem:[#allocation2] sm:$0x3] %v6738_v52 }
 0x987   :  { %8868 = shalt.err (!%p8865_p4)
}
 0x988   :  { %s8869_s24 = scalar_lea.hbm %s12569_s9, 32 }
 0x989   :  { %p8870_p5 = scmp.ne.s32.totalorder %s12569_s9, %s8869_s24  ;;  %p8873_p6 = scmp.lt.u32.totalorder %s8869_s24, %s12569_s9 }
 0x98b   :  { %p8875_p7 = pnand %p8873_p6, %p8870_p5 }
 0x98d   :  { %8878 = shalt.err (!%p8875_p7)
}
 0x98e   :  { %6749 = dma.vmem_to_hbm [thread:$0]  %s6747_s19, 32, %s12569_s9, [#allocation3]  }
 0x98f   :  { %8879 = dma.done.wait [#allocation3], 32  }
 0x990   :  { %8880 = vsyncadd [#allocation3], 4294967264 }
 0x991   :  { %6753 = vsyncpa [#allocation3], 1 }

</bundles_post_ra>
